<compile_context>
chip_gen: v6e
topology: v6e:2x2x1
jax: 0.10.0
libtpu: 0.0.40
codegen_flags: <defaults>
</compile_context>

<pallas_src>
import functools
import math

import jax
import jax.numpy as jnp
from jax.experimental import pallas as pl
from jax.experimental.pallas import tpu as pltpu


# ---------------------------------------------------------------------------
# Fused EncoderLayer kernel: one grid step == `block_b` batch elements.
# ---------------------------------------------------------------------------
def encoder_layer_kernel(x_ref, bias_ref,
                         wqkv_ref, bqkv_ref, wo_ref, bo_ref,
                         g1_ref, be1_ref,
                         w1_ref, b1_ref, w2_ref, b2_ref,
                         g2_ref, be2_ref,
                         out_ref, ctx_ref, *, num_heads, eps=1e-5):
    Bt, S, D = x_ref.shape
    depth = D // num_heads
    M = Bt * S

    x = x_ref[...].reshape(M, D)                    # (Bt*S, D) f32
    x_bf = x.astype(jnp.bfloat16)

    # ---- fused QKV projection over the batch-flattened M dimension ---------
    # 1/sqrt(depth) is already folded into the Q columns of wqkv / bqkv.
    qkv = jnp.dot(x_bf, wqkv_ref[...],
                  preferred_element_type=jnp.float32) + bqkv_ref[...]
    q = qkv[:, 0 * D:1 * D].astype(jnp.bfloat16)
    k = qkv[:, 1 * D:2 * D].astype(jnp.bfloat16)
    v = qkv[:, 2 * D:3 * D].astype(jnp.bfloat16)

    # ---- attention: per batch element / per head, results written straight
    #      into the (M, D) context scratch (no concatenate / relayout) --------
    # TODO(synk): convert these static Python loops to lax.fori_loop for large
    # block_b * num_heads to bound live ranges.
    for b in range(Bt):
        r0 = b * S
        bias_b = bias_ref[b].astype(jnp.float32)    # (1, S) additive key bias
        qb = q[r0:r0 + S, :]
        kb = k[r0:r0 + S, :]
        vb = v[r0:r0 + S, :]
        for h in range(num_heads):
            lo = h * depth
            hi = lo + depth
            logits = jnp.einsum('qd,kd->qk', qb[:, lo:hi], kb[:, lo:hi],
                                preferred_element_type=jnp.float32) + bias_b
            logits = logits - jnp.max(logits, axis=-1, keepdims=True)
            p = jnp.exp(logits)
            attn = p * pl.reciprocal(jnp.sum(p, axis=-1, keepdims=True),
                                     approx=True)
            ctx_ref[r0:r0 + S, lo:hi] = jnp.dot(
                attn.astype(jnp.bfloat16), vb[:, lo:hi],
                preferred_element_type=jnp.float32)

    attn_out = jnp.dot(ctx_ref[...].astype(jnp.bfloat16), wo_ref[...],
                       preferred_element_type=jnp.float32) + bo_ref[...]

    def layer_norm(h, g, beta):
        mu = jnp.mean(h, axis=-1, keepdims=True)
        var = jnp.mean((h - mu) * (h - mu), axis=-1, keepdims=True)
        return (h - mu) * jax.lax.rsqrt(var + eps) * g + beta

    # ---- residual + LayerNorm1 (dropout == identity at eval) ----------------
    h = layer_norm(x + attn_out, g1_ref[...], be1_ref[...])

    # ---- feed-forward: relu(h W1 + b1) W2 + b2 ------------------------------
    f = jnp.dot(h.astype(jnp.bfloat16), w1_ref[...],
                preferred_element_type=jnp.float32) + b1_ref[...]
    f = jnp.maximum(f, 0.0)
    f = jnp.dot(f.astype(jnp.bfloat16), w2_ref[...],
                preferred_element_type=jnp.float32) + b2_ref[...]

    # ---- residual + LayerNorm2 ----------------------------------------------
    out = layer_norm(h + f, g2_ref[...], be2_ref[...])
    out_ref[...] = out.reshape(Bt, S, D).astype(out_ref.dtype)


# ---------------------------------------------------------------------------
# Wrappers
# ---------------------------------------------------------------------------
def _pick_block_b(B, S, target_rows=256):
    """Largest divisor of B such that block_b*S ~<= target_rows, keeping >=2
    grid steps when possible (megacore / pipeline occupancy)."""
    divisors = [d for d in range(1, B + 1) if B % d == 0]
    fitting = [d for d in divisors if d * S <= max(target_rows, S)] or [1]
    bb = max(fitting)
    if B // bb < 2:
        smaller = [d for d in divisors if d < bb and B // d >= 2]
        if smaller:
            bb = max(smaller)
    return bb


def _vmem_limit_bytes(block_b, S, D, d_ff):
    M = block_b * S
    # Resident bf16 matmul weights + f32 biases / LN params (single-buffered).
    w_bytes = 2 * (D * 3 * D + D * D + D * d_ff + d_ff * D)
    p_bytes = 4 * (3 * D + 4 * D + d_ff + 2 * D)
    # Double-buffered per-step tiles (x / out f32, (Bt,1,S) bf16 mask bias).
    tile_bytes = 2 * (4 * M * D + 4 * M * D + 2 * block_b * S)
    # Live intermediates inside one grid step + (M, D) f32 context scratch.
    inter_bytes = 4 * (3 * M * D + 2 * S * S + M * d_ff + 6 * M * D)
    scratch_bytes = 4 * M * D
    est = w_bytes + p_bytes + tile_bytes + inter_bytes + scratch_bytes + (8 << 20)
    try:
        cap = int(pltpu.get_tpu_info().vmem_capacity_bytes)
    except Exception:
        cap = 64 << 20   # conservative (v7x) if query unavailable
    budget = (cap * 3) // 4   # ~48 MiB on v7x, ~96 MiB on v5e/v6e
    return int(min(max(est, 16 << 20), budget))


def encoder_layer(x, mask_bias, layer_params, *, num_heads, block_b=None):
    """One fused encoder layer.

    x: (B, S, D) f32; mask_bias: (B, 1, S) bf16 additive key bias (0 / -1e9).
    """
    B, S, D = x.shape
    d_ff = layer_params['w1'].shape[1]
    if block_b is None:
        block_b = _pick_block_b(B, S)
    assert B % block_b == 0

    weight_order = ('wqkv', 'bqkv', 'wo', 'bo', 'g1', 'be1',
                    'w1', 'b1', 'w2', 'b2', 'g2', 'be2')
    weights = [layer_params[key] for key in weight_order]

    kernel = functools.partial(encoder_layer_kernel, num_heads=num_heads)

    def build(single_buffer_weights):
        def weight_spec(arr):
            nd = arr.ndim
            idx = lambda b, _nd=nd: (0,) * _nd
            if single_buffer_weights:
                # Constant index_map across the batch grid -> single buffer.
                return pl.BlockSpec(arr.shape, idx,
                                    pipeline_mode=pl.Buffered(1))
            return pl.BlockSpec(arr.shape, idx)

        in_specs = [pl.BlockSpec((block_b, S, D), lambda b: (b, 0, 0)),
                    pl.BlockSpec((block_b, 1, S), lambda b: (b, 0, 0))]
        in_specs += [weight_spec(w) for w in weights]

        return pl.pallas_call(
            kernel,
            out_shape=jax.ShapeDtypeStruct((B, S, D), x.dtype),
            grid_spec=pltpu.PrefetchScalarGridSpec(
                num_scalar_prefetch=0,
                grid=(B // block_b,),
                in_specs=in_specs,
                out_specs=pl.BlockSpec((block_b, S, D), lambda b: (b, 0, 0)),
                scratch_shapes=[pltpu.VMEM((block_b * S, D), jnp.float32)],
            ),
            compiler_params=pltpu.CompilerParams(
                dimension_semantics=("parallel",),
                vmem_limit_bytes=_vmem_limit_bytes(block_b, S, D, d_ff)),
        )

    try:
        return build(True)(x, mask_bias, *weights)
    except Exception:
        # Fallback for JAX versions without BlockSpec(pipeline_mode=...).
        return build(False)(x, mask_bias, *weights)


def positional_encoding(seq_len, d_model):
    position = jnp.arange(seq_len, dtype=jnp.float32)[:, None]
    div_term = jnp.exp(jnp.arange(0, d_model, 2, dtype=jnp.float32)
                       * (-math.log(10000.0) / d_model))
    ang = position * div_term
    pe = jnp.zeros((seq_len, d_model), jnp.float32)
    pe = pe.at[:, 0::2].set(jnp.sin(ang))
    pe = pe.at[:, 1::2].set(jnp.cos(ang))
    return pe


def prepare_layer_params(raw, *, num_heads):
    """Fuse QKV weights/biases (folding the 1/sqrt(depth) scale into Q) and
    cast matmul weights to bf16 for the kernel."""
    D = raw['wq'].shape[0]
    depth = D // num_heads
    scale = jnp.float32(1.0 / math.sqrt(depth))
    wqkv = jnp.concatenate([raw['wq'] * scale, raw['wk'], raw['wv']], axis=1)
    bqkv = jnp.concatenate([raw['bq'] * scale, raw['bk'], raw['bv']], axis=1)
    return {
        'wqkv': wqkv.astype(jnp.bfloat16), 'bqkv': bqkv.astype(jnp.float32),
        'wo': raw['wo'].astype(jnp.bfloat16), 'bo': raw['bo'].astype(jnp.float32),
        'g1': raw['g1'].astype(jnp.float32), 'be1': raw['be1'].astype(jnp.float32),
        'w1': raw['w1'].astype(jnp.bfloat16), 'b1': raw['b1'].astype(jnp.float32),
        'w2': raw['w2'].astype(jnp.bfloat16), 'b2': raw['b2'].astype(jnp.float32),
        'g2': raw['g2'].astype(jnp.float32), 'be2': raw['be2'].astype(jnp.float32),
    }


def encoder_forward(tokens, mask, params, *, num_heads):
    """Full Encoder forward (eval mode: all dropouts are identity).

    tokens: (B, S) int32; mask: (B, 1, S) bool key-padding mask (True==masked).
    """
    B, S = tokens.shape
    D = params['embedding'].shape[1]
    # TODO(synk): the embedding row gather is left to XLA; a data-dependent
    # gather is not expressible with a rectangular BlockSpec here.
    x = jnp.take(params['embedding'], tokens, axis=0) * jnp.float32(math.sqrt(D))
    x = x + positional_encoding(S, D)[None]
    # Additive bf16 key bias (0 / -1e9); NOTE: -1e9 rounds to ~-9.97e8 in bf16,
    # still fully suppresses masked keys after max-subtraction.
    mask_bias = jnp.where(mask, jnp.float32(-1e9),
                          jnp.float32(0.0)).astype(jnp.bfloat16)
    for lp in params['layers']:
        x = encoder_layer(x, mask_bias,
                          prepare_layer_params(lp, num_heads=num_heads),
                          num_heads=num_heads)
    return x


# ---------------------------------------------------------------------------
# Pure-JAX f32 reference (mirrors the PyTorch module, eval mode)
# ---------------------------------------------------------------------------
def encoder_layer_ref(x, mask, p, *, num_heads, eps=1e-5):
    B, S, D = x.shape
    depth = D // num_heads

    def ln(h, g, b):
        mu = jnp.mean(h, axis=-1, keepdims=True)
        var = jnp.mean((h - mu) ** 2, axis=-1, keepdims=True)
        return (h - mu) / jnp.sqrt(var + eps) * g + b

    q = x @ p['wq'] + p['bq']
    k = x @ p['wk'] + p['bk']
    v = x @ p['wv'] + p['bv']

    def split(t):
        return t.reshape(B, S, num_heads, depth).transpose(0, 2, 1, 3)

    qh, kh, vh = split(q), split(k), split(v)
    logits = jnp.einsum('bhqd,bhkd->bhqk', qh, kh) / math.sqrt(depth)
    logits = jnp.where(mask[:, None, :, :], -1e9, logits)
    attn = jax.nn.softmax(logits, axis=-1)
    ctx = jnp.einsum('bhqk,bhkd->bhqd', attn, vh)
    ctx = ctx.transpose(0, 2, 1, 3).reshape(B, S, D)
    attn_out = ctx @ p['wo'] + p['bo']

    h = ln(x + attn_out, p['g1'], p['be1'])
    f = jnp.maximum(h @ p['w1'] + p['b1'], 0.0) @ p['w2'] + p['b2']
    return ln(h + f, p['g2'], p['be2'])


def encoder_ref(tokens, mask, params, *, num_heads):
    D = params['embedding'].shape[1]
    S = tokens.shape[1]
    x = params['embedding'][tokens] * math.sqrt(D) + positional_encoding(S, D)[None]
    for lp in params['layers']:
        x = encoder_layer_ref(x, mask, lp, num_heads=num_heads)
    return x


if __name__ == "__main__":
    # Small lane-aligned demo shapes: D multiple of 128, head_dim = 128.
    B, S, VOCAB, D, H, FF, LAYERS, PAD = 4, 16, 64, 256, 2, 512, 2, 0

    key = jax.random.PRNGKey(0)
    keys = iter(jax.random.split(key, 64))

    def w(shape, scale=0.02):
        return jax.random.normal(next(keys), shape, jnp.float32) * scale

    def make_layer():
        return {
            'wq': w((D, D)), 'bq': w((1, D)),
            'wk': w((D, D)), 'bk': w((1, D)),
            'wv': w((D, D)), 'bv': w((1, D)),
            'wo': w((D, D)), 'bo': w((1, D)),
            'g1': 1.0 + w((1, D), 0.1), 'be1': w((1, D), 0.1),
            'w1': w((D, FF)), 'b1': w((1, FF)),
            'w2': w((FF, D)), 'b2': w((1, D)),
            'g2': 1.0 + w((1, D), 0.1), 'be2': w((1, D), 0.1),
        }

    params = {
        'embedding': w((VOCAB, D), 1.0 / math.sqrt(D)),
        'layers': [make_layer() for _ in range(LAYERS)],
    }

    tokens = jax.random.randint(next(keys), (B, S), 1, VOCAB, dtype=jnp.int32)
    tokens = tokens.at[:, -3:].set(PAD)            # pad the last three positions
    key_pad = (tokens == PAD)                      # (B, S), True == masked key
    mask = key_pad[:, None, :]                     # (B, 1, S) key-padding mask

    out = encoder_forward(tokens, mask, params, num_heads=H)
    out = jax.block_until_ready(out)

    ref = encoder_ref(tokens, mask, params, num_heads=H)
    assert out.shape == (B, S, D)
    err = jnp.max(jnp.abs(out - ref))
    # bf16 MXU operands + approx reciprocal -> small drift vs f32 reference.
    assert jnp.allclose(out, ref, atol=5e-2, rtol=5e-2), f"max abs err {err}"

    print("KERNEL_OK")
</pallas_src>

<mosaic_0001>
module attributes {stable_mosaic.version = 11 : i64} {
  func.func @encoder_layer_kernel(%arg0: i32, %arg1: memref<2x16x256xf32, #tpu.memory_space<vmem>>, %arg2: memref<2x1x16xbf16, #tpu.memory_space<vmem>>, %arg3: memref<256x768xbf16, #tpu.memory_space<vmem>>, %arg4: memref<1x768xf32, #tpu.memory_space<vmem>>, %arg5: memref<256x256xbf16, #tpu.memory_space<vmem>>, %arg6: memref<1x256xf32, #tpu.memory_space<vmem>>, %arg7: memref<1x256xf32, #tpu.memory_space<vmem>>, %arg8: memref<1x256xf32, #tpu.memory_space<vmem>>, %arg9: memref<256x512xbf16, #tpu.memory_space<vmem>>, %arg10: memref<1x512xf32, #tpu.memory_space<vmem>>, %arg11: memref<512x256xbf16, #tpu.memory_space<vmem>>, %arg12: memref<1x256xf32, #tpu.memory_space<vmem>>, %arg13: memref<1x256xf32, #tpu.memory_space<vmem>>, %arg14: memref<1x256xf32, #tpu.memory_space<vmem>>, %arg15: memref<2x16x256xf32, #tpu.memory_space<vmem>>, %arg16: memref<32x256xf32, #tpu.memory_space<vmem>>) attributes {dimension_semantics = [#tpu.dimension_semantics<parallel>], iteration_bounds = array<i64: 2>, scalar_prefetch = 0 : i64, scratch_operands = 1 : i64, tpu.core_type = #tpu.core_type<tc>, window_params = [{transform_indices = @transform_0, window_bounds = array<i64: 2, 16, 256>}, {transform_indices = @transform_1, window_bounds = array<i64: 2, 1, 16>}, {pipeline_mode = #tpu.pipeline_mode<synchronous>, transform_indices = @transform_2, window_bounds = array<i64: 256, 768>}, {pipeline_mode = #tpu.pipeline_mode<synchronous>, transform_indices = @transform_3, window_bounds = array<i64: 1, 768>}, {pipeline_mode = #tpu.pipeline_mode<synchronous>, transform_indices = @transform_4, window_bounds = array<i64: 256, 256>}, {pipeline_mode = #tpu.pipeline_mode<synchronous>, transform_indices = @transform_5, window_bounds = array<i64: 1, 256>}, {pipeline_mode = #tpu.pipeline_mode<synchronous>, transform_indices = @transform_6, window_bounds = array<i64: 1, 256>}, {pipeline_mode = #tpu.pipeline_mode<synchronous>, transform_indices = @transform_7, window_bounds = array<i64: 1, 256>}, {pipeline_mode = #tpu.pipeline_mode<synchronous>, transform_indices = @transform_8, window_bounds = array<i64: 256, 512>}, {pipeline_mode = #tpu.pipeline_mode<synchronous>, transform_indices = @transform_9, window_bounds = array<i64: 1, 512>}, {pipeline_mode = #tpu.pipeline_mode<synchronous>, transform_indices = @transform_10, window_bounds = array<i64: 512, 256>}, {pipeline_mode = #tpu.pipeline_mode<synchronous>, transform_indices = @transform_11, window_bounds = array<i64: 1, 256>}, {pipeline_mode = #tpu.pipeline_mode<synchronous>, transform_indices = @transform_12, window_bounds = array<i64: 1, 256>}, {pipeline_mode = #tpu.pipeline_mode<synchronous>, transform_indices = @transform_13, window_bounds = array<i64: 1, 256>}, {transform_indices = @transform_14, window_bounds = array<i64: 2, 16, 256>}]} {
    %c0 = arith.constant 0 : index
    %c0_0 = arith.constant 0 : index
    %c0_1 = arith.constant 0 : index
    %0 = vector.load %arg1[%c0, %c0_0, %c0_1] : memref<2x16x256xf32, #tpu.memory_space<vmem>>, vector<2x16x256xf32>
    %1 = vector.shape_cast %0 : vector<2x16x256xf32> to vector<32x256xf32>
    %2 = arith.truncf %1 : vector<32x256xf32> to vector<32x256xbf16>
    %c0_2 = arith.constant 0 : index
    %c0_3 = arith.constant 0 : index
    %3 = vector.load %arg3[%c0_2, %c0_3] : memref<256x768xbf16, #tpu.memory_space<vmem>>, vector<256x768xbf16>
    %cst = arith.constant dense<0.000000e+00> : vector<32x768xf32>
    %4 = tpu.matmul %2, %3, %cst {dimension_numbers = #tpu.dot_dimension_numbers<[1], [0], [0], [1], [0, 0, 1, 1], [], []>} : vector<32x256xbf16>, vector<256x768xbf16>, vector<32x768xf32> -> vector<32x768xf32>
    %c0_4 = arith.constant 0 : index
    %c0_5 = arith.constant 0 : index
    %5 = vector.load %arg4[%c0_4, %c0_5] : memref<1x768xf32, #tpu.memory_space<vmem>>, vector<1x768xf32>
    %6 = vector.broadcast %5 : vector<1x768xf32> to vector<32x768xf32>
    %7 = arith.addf %4, %6 : vector<32x768xf32>
    %8 = vector.extract_strided_slice %7 {offsets = [0, 0], sizes = [32, 256], strides = [1, 1]} : vector<32x768xf32> to vector<32x256xf32>
    %9 = arith.truncf %8 : vector<32x256xf32> to vector<32x256xbf16>
    %10 = vector.extract_strided_slice %7 {offsets = [0, 256], sizes = [32, 256], strides = [1, 1]} : vector<32x768xf32> to vector<32x256xf32>
    %11 = arith.truncf %10 : vector<32x256xf32> to vector<32x256xbf16>
    %12 = vector.extract_strided_slice %7 {offsets = [0, 512], sizes = [32, 256], strides = [1, 1]} : vector<32x768xf32> to vector<32x256xf32>
    %13 = arith.truncf %12 : vector<32x256xf32> to vector<32x256xbf16>
    %c0_6 = arith.constant 0 : index
    %c0_7 = arith.constant 0 : index
    %c0_8 = arith.constant 0 : index
    %14 = vector.load %arg2[%c0_6, %c0_7, %c0_8] : memref<2x1x16xbf16, #tpu.memory_space<vmem>>, vector<1x1x16xbf16>
    %15 = vector.shape_cast %14 : vector<1x1x16xbf16> to vector<1x16xbf16>
    %16 = arith.extf %15 : vector<1x16xbf16> to vector<1x16xf32>
    %17 = vector.extract_strided_slice %9 {offsets = [0, 0], sizes = [16, 256], strides = [1, 1]} : vector<32x256xbf16> to vector<16x256xbf16>
    %18 = vector.extract_strided_slice %11 {offsets = [0, 0], sizes = [16, 256], strides = [1, 1]} : vector<32x256xbf16> to vector<16x256xbf16>
    %19 = vector.extract_strided_slice %13 {offsets = [0, 0], sizes = [16, 256], strides = [1, 1]} : vector<32x256xbf16> to vector<16x256xbf16>
    %20 = vector.extract_strided_slice %17 {offsets = [0, 0], sizes = [16, 128], strides = [1, 1]} : vector<16x256xbf16> to vector<16x128xbf16>
    %21 = vector.extract_strided_slice %18 {offsets = [0, 0], sizes = [16, 128], strides = [1, 1]} : vector<16x256xbf16> to vector<16x128xbf16>
    "tpu.trace_start"() <{level = 10 : i32, message = "qd,kd->qk"}> : () -> ()
    %cst_9 = arith.constant dense<0.000000e+00> : vector<16x16xf32>
    %22 = tpu.matmul %20, %21, %cst_9 {dimension_numbers = #tpu.dot_dimension_numbers<[1], [1], [0], [0], [0, 0, 1, 0], [], []>} : vector<16x128xbf16>, vector<16x128xbf16>, vector<16x16xf32> -> vector<16x16xf32>
    "tpu.trace_stop"() : () -> ()
    %23 = vector.broadcast %16 : vector<1x16xf32> to vector<16x16xf32>
    %24 = arith.addf %22, %23 : vector<16x16xf32>
    %cst_10 = arith.constant dense<0xFF800000> : vector<16xf32>
    %25 = vector.multi_reduction <maximumf>, %24, %cst_10 [1] : vector<16x16xf32> to vector<16xf32>
    %26 = vector.shape_cast %25 : vector<16xf32> to vector<16x1xf32>
    %27 = vector.broadcast %26 : vector<16x1xf32> to vector<16x16xf32>
    %28 = arith.subf %24, %27 : vector<16x16xf32>
    %29 = math.exp %28 : vector<16x16xf32>
    %cst_11 = arith.constant dense<0.000000e+00> : vector<16xf32>
    %30 = vector.multi_reduction <add>, %29, %cst_11 [1] : vector<16x16xf32> to vector<16xf32>
    %31 = vector.shape_cast %30 : vector<16xf32> to vector<16x1xf32>
    %32 = tpu.reciprocal %31 {approx = true} : vector<16x1xf32> -> vector<16x1xf32>
    %33 = vector.broadcast %32 : vector<16x1xf32> to vector<16x16xf32>
    %34 = arith.mulf %29, %33 : vector<16x16xf32>
    %35 = arith.truncf %34 : vector<16x16xf32> to vector<16x16xbf16>
    %36 = vector.extract_strided_slice %19 {offsets = [0, 0], sizes = [16, 128], strides = [1, 1]} : vector<16x256xbf16> to vector<16x128xbf16>
    %cst_12 = arith.constant dense<0.000000e+00> : vector<16x128xf32>
    %37 = tpu.matmul %35, %36, %cst_12 {dimension_numbers = #tpu.dot_dimension_numbers<[1], [0], [0], [1], [0, 0, 1, 1], [], []>} : vector<16x16xbf16>, vector<16x128xbf16>, vector<16x128xf32> -> vector<16x128xf32>
    %c0_13 = arith.constant 0 : index
    %c0_14 = arith.constant 0 : index
    %38 = vector.load %arg16[%c0_13, %c0_14] : memref<32x256xf32, #tpu.memory_space<vmem>>, vector<16x128xf32>
    tpu.vector_store %arg16[%c0_13, %c0_14], %37 {strides = array<i32>} : memref<32x256xf32, #tpu.memory_space<vmem>>, vector<16x128xf32>,
    %39 = vector.extract_strided_slice %17 {offsets = [0, 128], sizes = [16, 128], strides = [1, 1]} : vector<16x256xbf16> to vector<16x128xbf16>
    %40 = vector.extract_strided_slice %18 {offsets = [0, 128], sizes = [16, 128], strides = [1, 1]} : vector<16x256xbf16> to vector<16x128xbf16>
    "tpu.trace_start"() <{level = 10 : i32, message = "qd,kd->qk"}> : () -> ()
    %cst_15 = arith.constant dense<0.000000e+00> : vector<16x16xf32>
    %41 = tpu.matmul %39, %40, %cst_15 {dimension_numbers = #tpu.dot_dimension_numbers<[1], [1], [0], [0], [0, 0, 1, 0], [], []>} : vector<16x128xbf16>, vector<16x128xbf16>, vector<16x16xf32> -> vector<16x16xf32>
    "tpu.trace_stop"() : () -> ()
    %42 = vector.broadcast %16 : vector<1x16xf32> to vector<16x16xf32>
    %43 = arith.addf %41, %42 : vector<16x16xf32>
    %cst_16 = arith.constant dense<0xFF800000> : vector<16xf32>
    %44 = vector.multi_reduction <maximumf>, %43, %cst_16 [1] : vector<16x16xf32> to vector<16xf32>
    %45 = vector.shape_cast %44 : vector<16xf32> to vector<16x1xf32>
    %46 = vector.broadcast %45 : vector<16x1xf32> to vector<16x16xf32>
    %47 = arith.subf %43, %46 : vector<16x16xf32>
    %48 = math.exp %47 : vector<16x16xf32>
    %cst_17 = arith.constant dense<0.000000e+00> : vector<16xf32>
    %49 = vector.multi_reduction <add>, %48, %cst_17 [1] : vector<16x16xf32> to vector<16xf32>
    %50 = vector.shape_cast %49 : vector<16xf32> to vector<16x1xf32>
    %51 = tpu.reciprocal %50 {approx = true} : vector<16x1xf32> -> vector<16x1xf32>
    %52 = vector.broadcast %51 : vector<16x1xf32> to vector<16x16xf32>
    %53 = arith.mulf %48, %52 : vector<16x16xf32>
    %54 = arith.truncf %53 : vector<16x16xf32> to vector<16x16xbf16>
    %55 = vector.extract_strided_slice %19 {offsets = [0, 128], sizes = [16, 128], strides = [1, 1]} : vector<16x256xbf16> to vector<16x128xbf16>
    %cst_18 = arith.constant dense<0.000000e+00> : vector<16x128xf32>
    %56 = tpu.matmul %54, %55, %cst_18 {dimension_numbers = #tpu.dot_dimension_numbers<[1], [0], [0], [1], [0, 0, 1, 1], [], []>} : vector<16x16xbf16>, vector<16x128xbf16>, vector<16x128xf32> -> vector<16x128xf32>
    %c0_19 = arith.constant 0 : index
    %c128 = arith.constant 128 : index
    %57 = vector.load %arg16[%c0_19, %c128] : memref<32x256xf32, #tpu.memory_space<vmem>>, vector<16x128xf32>
    tpu.vector_store %arg16[%c0_19, %c128], %56 {strides = array<i32>} : memref<32x256xf32, #tpu.memory_space<vmem>>, vector<16x128xf32>,
    %c1 = arith.constant 1 : index
    %c0_20 = arith.constant 0 : index
    %c0_21 = arith.constant 0 : index
    %58 = vector.load %arg2[%c1, %c0_20, %c0_21] : memref<2x1x16xbf16, #tpu.memory_space<vmem>>, vector<1x1x16xbf16>
    %59 = vector.shape_cast %58 : vector<1x1x16xbf16> to vector<1x16xbf16>
    %60 = arith.extf %59 : vector<1x16xbf16> to vector<1x16xf32>
    %61 = vector.extract_strided_slice %9 {offsets = [16, 0], sizes = [16, 256], strides = [1, 1]} : vector<32x256xbf16> to vector<16x256xbf16>
    %62 = vector.extract_strided_slice %11 {offsets = [16, 0], sizes = [16, 256], strides = [1, 1]} : vector<32x256xbf16> to vector<16x256xbf16>
    %63 = vector.extract_strided_slice %13 {offsets = [16, 0], sizes = [16, 256], strides = [1, 1]} : vector<32x256xbf16> to vector<16x256xbf16>
    %64 = vector.extract_strided_slice %61 {offsets = [0, 0], sizes = [16, 128], strides = [1, 1]} : vector<16x256xbf16> to vector<16x128xbf16>
    %65 = vector.extract_strided_slice %62 {offsets = [0, 0], sizes = [16, 128], strides = [1, 1]} : vector<16x256xbf16> to vector<16x128xbf16>
    "tpu.trace_start"() <{level = 10 : i32, message = "qd,kd->qk"}> : () -> ()
    %cst_22 = arith.constant dense<0.000000e+00> : vector<16x16xf32>
    %66 = tpu.matmul %64, %65, %cst_22 {dimension_numbers = #tpu.dot_dimension_numbers<[1], [1], [0], [0], [0, 0, 1, 0], [], []>} : vector<16x128xbf16>, vector<16x128xbf16>, vector<16x16xf32> -> vector<16x16xf32>
    "tpu.trace_stop"() : () -> ()
    %67 = vector.broadcast %60 : vector<1x16xf32> to vector<16x16xf32>
    %68 = arith.addf %66, %67 : vector<16x16xf32>
    %cst_23 = arith.constant dense<0xFF800000> : vector<16xf32>
    %69 = vector.multi_reduction <maximumf>, %68, %cst_23 [1] : vector<16x16xf32> to vector<16xf32>
    %70 = vector.shape_cast %69 : vector<16xf32> to vector<16x1xf32>
    %71 = vector.broadcast %70 : vector<16x1xf32> to vector<16x16xf32>
    %72 = arith.subf %68, %71 : vector<16x16xf32>
    %73 = math.exp %72 : vector<16x16xf32>
    %cst_24 = arith.constant dense<0.000000e+00> : vector<16xf32>
    %74 = vector.multi_reduction <add>, %73, %cst_24 [1] : vector<16x16xf32> to vector<16xf32>
    %75 = vector.shape_cast %74 : vector<16xf32> to vector<16x1xf32>
    %76 = tpu.reciprocal %75 {approx = true} : vector<16x1xf32> -> vector<16x1xf32>
    %77 = vector.broadcast %76 : vector<16x1xf32> to vector<16x16xf32>
    %78 = arith.mulf %73, %77 : vector<16x16xf32>
    %79 = arith.truncf %78 : vector<16x16xf32> to vector<16x16xbf16>
    %80 = vector.extract_strided_slice %63 {offsets = [0, 0], sizes = [16, 128], strides = [1, 1]} : vector<16x256xbf16> to vector<16x128xbf16>
    %cst_25 = arith.constant dense<0.000000e+00> : vector<16x128xf32>
    %81 = tpu.matmul %79, %80, %cst_25 {dimension_numbers = #tpu.dot_dimension_numbers<[1], [0], [0], [1], [0, 0, 1, 1], [], []>} : vector<16x16xbf16>, vector<16x128xbf16>, vector<16x128xf32> -> vector<16x128xf32>
    %c16 = arith.constant 16 : index
    %c0_26 = arith.constant 0 : index
    %82 = vector.load %arg16[%c16, %c0_26] : memref<32x256xf32, #tpu.memory_space<vmem>>, vector<16x128xf32>
    tpu.vector_store %arg16[%c16, %c0_26], %81 {strides = array<i32>} : memref<32x256xf32, #tpu.memory_space<vmem>>, vector<16x128xf32>,
    %83 = vector.extract_strided_slice %61 {offsets = [0, 128], sizes = [16, 128], strides = [1, 1]} : vector<16x256xbf16> to vector<16x128xbf16>
    %84 = vector.extract_strided_slice %62 {offsets = [0, 128], sizes = [16, 128], strides = [1, 1]} : vector<16x256xbf16> to vector<16x128xbf16>
    "tpu.trace_start"() <{level = 10 : i32, message = "qd,kd->qk"}> : () -> ()
    %cst_27 = arith.constant dense<0.000000e+00> : vector<16x16xf32>
    %85 = tpu.matmul %83, %84, %cst_27 {dimension_numbers = #tpu.dot_dimension_numbers<[1], [1], [0], [0], [0, 0, 1, 0], [], []>} : vector<16x128xbf16>, vector<16x128xbf16>, vector<16x16xf32> -> vector<16x16xf32>
    "tpu.trace_stop"() : () -> ()
    %86 = vector.broadcast %60 : vector<1x16xf32> to vector<16x16xf32>
    %87 = arith.addf %85, %86 : vector<16x16xf32>
    %cst_28 = arith.constant dense<0xFF800000> : vector<16xf32>
    %88 = vector.multi_reduction <maximumf>, %87, %cst_28 [1] : vector<16x16xf32> to vector<16xf32>
    %89 = vector.shape_cast %88 : vector<16xf32> to vector<16x1xf32>
    %90 = vector.broadcast %89 : vector<16x1xf32> to vector<16x16xf32>
    %91 = arith.subf %87, %90 : vector<16x16xf32>
    %92 = math.exp %91 : vector<16x16xf32>
    %cst_29 = arith.constant dense<0.000000e+00> : vector<16xf32>
    %93 = vector.multi_reduction <add>, %92, %cst_29 [1] : vector<16x16xf32> to vector<16xf32>
    %94 = vector.shape_cast %93 : vector<16xf32> to vector<16x1xf32>
    %95 = tpu.reciprocal %94 {approx = true} : vector<16x1xf32> -> vector<16x1xf32>
    %96 = vector.broadcast %95 : vector<16x1xf32> to vector<16x16xf32>
    %97 = arith.mulf %92, %96 : vector<16x16xf32>
    %98 = arith.truncf %97 : vector<16x16xf32> to vector<16x16xbf16>
    %99 = vector.extract_strided_slice %63 {offsets = [0, 128], sizes = [16, 128], strides = [1, 1]} : vector<16x256xbf16> to vector<16x128xbf16>
    %cst_30 = arith.constant dense<0.000000e+00> : vector<16x128xf32>
    %100 = tpu.matmul %98, %99, %cst_30 {dimension_numbers = #tpu.dot_dimension_numbers<[1], [0], [0], [1], [0, 0, 1, 1], [], []>} : vector<16x16xbf16>, vector<16x128xbf16>, vector<16x128xf32> -> vector<16x128xf32>
    %c16_31 = arith.constant 16 : index
    %c128_32 = arith.constant 128 : index
    %101 = vector.load %arg16[%c16_31, %c128_32] : memref<32x256xf32, #tpu.memory_space<vmem>>, vector<16x128xf32>
    tpu.vector_store %arg16[%c16_31, %c128_32], %100 {strides = array<i32>} : memref<32x256xf32, #tpu.memory_space<vmem>>, vector<16x128xf32>,
    %c0_33 = arith.constant 0 : index
    %c0_34 = arith.constant 0 : index
    %102 = vector.load %arg16[%c0_33, %c0_34] : memref<32x256xf32, #tpu.memory_space<vmem>>, vector<32x256xf32>
    %103 = arith.truncf %102 : vector<32x256xf32> to vector<32x256xbf16>
    %c0_35 = arith.constant 0 : index
    %c0_36 = arith.constant 0 : index
    %104 = vector.load %arg5[%c0_35, %c0_36] : memref<256x256xbf16, #tpu.memory_space<vmem>>, vector<256x256xbf16>
    %cst_37 = arith.constant dense<0.000000e+00> : vector<32x256xf32>
    %105 = tpu.matmul %103, %104, %cst_37 {dimension_numbers = #tpu.dot_dimension_numbers<[1], [0], [0], [1], [0, 0, 1, 1], [], []>} : vector<32x256xbf16>, vector<256x256xbf16>, vector<32x256xf32> -> vector<32x256xf32>
    %c0_38 = arith.constant 0 : index
    %c0_39 = arith.constant 0 : index
    %106 = vector.load %arg6[%c0_38, %c0_39] : memref<1x256xf32, #tpu.memory_space<vmem>>, vector<1x256xf32>
    %107 = vector.broadcast %106 : vector<1x256xf32> to vector<32x256xf32>
    %108 = arith.addf %105, %107 : vector<32x256xf32>
    %109 = arith.addf %1, %108 : vector<32x256xf32>
    %c0_40 = arith.constant 0 : index
    %c0_41 = arith.constant 0 : index
    %110 = vector.load %arg7[%c0_40, %c0_41] : memref<1x256xf32, #tpu.memory_space<vmem>>, vector<1x256xf32>
    %c0_42 = arith.constant 0 : index
    %c0_43 = arith.constant 0 : index
    %111 = vector.load %arg8[%c0_42, %c0_43] : memref<1x256xf32, #tpu.memory_space<vmem>>, vector<1x256xf32>
    %cst_44 = arith.constant dense<0.000000e+00> : vector<32xf32>
    %112 = vector.multi_reduction <add>, %109, %cst_44 [1] : vector<32x256xf32> to vector<32xf32>
    %113 = vector.shape_cast %112 : vector<32xf32> to vector<32x1xf32>
    %cst_45 = arith.constant 2.560000e+02 : f32
    %114 = vector.broadcast %cst_45 : f32 to vector<32x1xf32>
    %115 = arith.divf %113, %114 : vector<32x1xf32>
    %116 = vector.broadcast %115 : vector<32x1xf32> to vector<32x256xf32>
    %117 = arith.subf %109, %116 : vector<32x256xf32>
    %118 = vector.broadcast %115 : vector<32x1xf32> to vector<32x256xf32>
    %119 = arith.subf %109, %118 : vector<32x256xf32>
    %120 = arith.mulf %117, %119 : vector<32x256xf32>
    %cst_46 = arith.constant dense<0.000000e+00> : vector<32xf32>
    %121 = vector.multi_reduction <add>, %120, %cst_46 [1] : vector<32x256xf32> to vector<32xf32>
    %122 = vector.shape_cast %121 : vector<32xf32> to vector<32x1xf32>
    %cst_47 = arith.constant 2.560000e+02 : f32
    %123 = vector.broadcast %cst_47 : f32 to vector<32x1xf32>
    %124 = arith.divf %122, %123 : vector<32x1xf32>
    %125 = vector.broadcast %115 : vector<32x1xf32> to vector<32x256xf32>
    %126 = arith.subf %109, %125 : vector<32x256xf32>
    %cst_48 = arith.constant 9.99999974E-6 : f32
    %127 = vector.broadcast %cst_48 : f32 to vector<32x1xf32>
    %128 = arith.addf %124, %127 : vector<32x1xf32>
    %129 = math.rsqrt %128 : vector<32x1xf32>
    %130 = vector.broadcast %129 : vector<32x1xf32> to vector<32x256xf32>
    %131 = arith.mulf %126, %130 : vector<32x256xf32>
    %132 = vector.broadcast %110 : vector<1x256xf32> to vector<32x256xf32>
    %133 = arith.mulf %131, %132 : vector<32x256xf32>
    %134 = vector.broadcast %111 : vector<1x256xf32> to vector<32x256xf32>
    %135 = arith.addf %133, %134 : vector<32x256xf32>
    %136 = arith.truncf %135 : vector<32x256xf32> to vector<32x256xbf16>
    %c0_49 = arith.constant 0 : index
    %c0_50 = arith.constant 0 : index
    %137 = vector.load %arg9[%c0_49, %c0_50] : memref<256x512xbf16, #tpu.memory_space<vmem>>, vector<256x512xbf16>
    %cst_51 = arith.constant dense<0.000000e+00> : vector<32x512xf32>
    %138 = tpu.matmul %136, %137, %cst_51 {dimension_numbers = #tpu.dot_dimension_numbers<[1], [0], [0], [1], [0, 0, 1, 1], [], []>} : vector<32x256xbf16>, vector<256x512xbf16>, vector<32x512xf32> -> vector<32x512xf32>
    %c0_52 = arith.constant 0 : index
    %c0_53 = arith.constant 0 : index
    %139 = vector.load %arg10[%c0_52, %c0_53] : memref<1x512xf32, #tpu.memory_space<vmem>>, vector<1x512xf32>
    %140 = vector.broadcast %139 : vector<1x512xf32> to vector<32x512xf32>
    %141 = arith.addf %138, %140 : vector<32x512xf32>
    %cst_54 = arith.constant 0.000000e+00 : f32
    %142 = vector.broadcast %cst_54 : f32 to vector<32x512xf32>
    %143 = arith.maximumf %141, %142 : vector<32x512xf32>
    %144 = arith.truncf %143 : vector<32x512xf32> to vector<32x512xbf16>
    %c0_55 = arith.constant 0 : index
    %c0_56 = arith.constant 0 : index
    %145 = vector.load %arg11[%c0_55, %c0_56] : memref<512x256xbf16, #tpu.memory_space<vmem>>, vector<512x256xbf16>
    %cst_57 = arith.constant dense<0.000000e+00> : vector<32x256xf32>
    %146 = tpu.matmul %144, %145, %cst_57 {dimension_numbers = #tpu.dot_dimension_numbers<[1], [0], [0], [1], [0, 0, 1, 1], [], []>} : vector<32x512xbf16>, vector<512x256xbf16>, vector<32x256xf32> -> vector<32x256xf32>
    %c0_58 = arith.constant 0 : index
    %c0_59 = arith.constant 0 : index
    %147 = vector.load %arg12[%c0_58, %c0_59] : memref<1x256xf32, #tpu.memory_space<vmem>>, vector<1x256xf32>
    %148 = vector.broadcast %147 : vector<1x256xf32> to vector<32x256xf32>
    %149 = arith.addf %146, %148 : vector<32x256xf32>
    %150 = arith.addf %135, %149 : vector<32x256xf32>
    %c0_60 = arith.constant 0 : index
    %c0_61 = arith.constant 0 : index
    %151 = vector.load %arg13[%c0_60, %c0_61] : memref<1x256xf32, #tpu.memory_space<vmem>>, vector<1x256xf32>
    %c0_62 = arith.constant 0 : index
    %c0_63 = arith.constant 0 : index
    %152 = vector.load %arg14[%c0_62, %c0_63] : memref<1x256xf32, #tpu.memory_space<vmem>>, vector<1x256xf32>
    %cst_64 = arith.constant dense<0.000000e+00> : vector<32xf32>
    %153 = vector.multi_reduction <add>, %150, %cst_64 [1] : vector<32x256xf32> to vector<32xf32>
    %154 = vector.shape_cast %153 : vector<32xf32> to vector<32x1xf32>
    %cst_65 = arith.constant 2.560000e+02 : f32
    %155 = vector.broadcast %cst_65 : f32 to vector<32x1xf32>
    %156 = arith.divf %154, %155 : vector<32x1xf32>
    %157 = vector.broadcast %156 : vector<32x1xf32> to vector<32x256xf32>
    %158 = arith.subf %150, %157 : vector<32x256xf32>
    %159 = vector.broadcast %156 : vector<32x1xf32> to vector<32x256xf32>
    %160 = arith.subf %150, %159 : vector<32x256xf32>
    %161 = arith.mulf %158, %160 : vector<32x256xf32>
    %cst_66 = arith.constant dense<0.000000e+00> : vector<32xf32>
    %162 = vector.multi_reduction <add>, %161, %cst_66 [1] : vector<32x256xf32> to vector<32xf32>
    %163 = vector.shape_cast %162 : vector<32xf32> to vector<32x1xf32>
    %cst_67 = arith.constant 2.560000e+02 : f32
    %164 = vector.broadcast %cst_67 : f32 to vector<32x1xf32>
    %165 = arith.divf %163, %164 : vector<32x1xf32>
    %166 = vector.broadcast %156 : vector<32x1xf32> to vector<32x256xf32>
    %167 = arith.subf %150, %166 : vector<32x256xf32>
    %cst_68 = arith.constant 9.99999974E-6 : f32
    %168 = vector.broadcast %cst_68 : f32 to vector<32x1xf32>
    %169 = arith.addf %165, %168 : vector<32x1xf32>
    %170 = math.rsqrt %169 : vector<32x1xf32>
    %171 = vector.broadcast %170 : vector<32x1xf32> to vector<32x256xf32>
    %172 = arith.mulf %167, %171 : vector<32x256xf32>
    %173 = vector.broadcast %151 : vector<1x256xf32> to vector<32x256xf32>
    %174 = arith.mulf %172, %173 : vector<32x256xf32>
    %175 = vector.broadcast %152 : vector<1x256xf32> to vector<32x256xf32>
    %176 = arith.addf %174, %175 : vector<32x256xf32>
    %177 = vector.shape_cast %176 : vector<32x256xf32> to vector<2x16x256xf32>
    %c0_69 = arith.constant 0 : index
    %c0_70 = arith.constant 0 : index
    %c0_71 = arith.constant 0 : index
    %178 = vector.load %arg15[%c0_69, %c0_70, %c0_71] : memref<2x16x256xf32, #tpu.memory_space<vmem>>, vector<2x16x256xf32>
    tpu.vector_store %arg15[%c0_69, %c0_70, %c0_71], %177 {strides = array<i32>} : memref<2x16x256xf32, #tpu.memory_space<vmem>>, vector<2x16x256xf32>,
    return
  }
  func.func @transform_0(%arg0: i32) -> (i32, i32, i32) {
    %c0_i32 = arith.constant 0 : i32
    %c0_i32_0 = arith.constant 0 : i32
    %c0_i32_1 = arith.constant 0 : i32
    return %arg0, %c0_i32, %c0_i32_0 : i32, i32, i32
  }
  func.func @transform_1(%arg0: i32) -> (i32, i32, i32) {
    %c0_i32 = arith.constant 0 : i32
    %c0_i32_0 = arith.constant 0 : i32
    %c0_i32_1 = arith.constant 0 : i32
    return %arg0, %c0_i32, %c0_i32_0 : i32, i32, i32
  }
  func.func @transform_2(%arg0: i32) -> (i32, i32) {
    %c0_i32 = arith.constant 0 : i32
    %c0_i32_0 = arith.constant 0 : i32
    %c0_i32_1 = arith.constant 0 : i32
    return %c0_i32, %c0_i32_0 : i32, i32
  }
  func.func @transform_3(%arg0: i32) -> (i32, i32) {
    %c0_i32 = arith.constant 0 : i32
    %c0_i32_0 = arith.constant 0 : i32
    %c0_i32_1 = arith.constant 0 : i32
    return %c0_i32, %c0_i32_0 : i32, i32
  }
  func.func @transform_4(%arg0: i32) -> (i32, i32) {
    %c0_i32 = arith.constant 0 : i32
    %c0_i32_0 = arith.constant 0 : i32
    %c0_i32_1 = arith.constant 0 : i32
    return %c0_i32, %c0_i32_0 : i32, i32
  }
  func.func @transform_5(%arg0: i32) -> (i32, i32) {
    %c0_i32 = arith.constant 0 : i32
    %c0_i32_0 = arith.constant 0 : i32
    %c0_i32_1 = arith.constant 0 : i32
    return %c0_i32, %c0_i32_0 : i32, i32
  }
  func.func @transform_6(%arg0: i32) -> (i32, i32) {
    %c0_i32 = arith.constant 0 : i32
    %c0_i32_0 = arith.constant 0 : i32
    %c0_i32_1 = arith.constant 0 : i32
    return %c0_i32, %c0_i32_0 : i32, i32
  }
  func.func @transform_7(%arg0: i32) -> (i32, i32) {
    %c0_i32 = arith.constant 0 : i32
    %c0_i32_0 = arith.constant 0 : i32
    %c0_i32_1 = arith.constant 0 : i32
    return %c0_i32, %c0_i32_0 : i32, i32
  }
  func.func @transform_8(%arg0: i32) -> (i32, i32) {
    %c0_i32 = arith.constant 0 : i32
    %c0_i32_0 = arith.constant 0 : i32
    %c0_i32_1 = arith.constant 0 : i32
    return %c0_i32, %c0_i32_0 : i32, i32
  }
  func.func @transform_9(%arg0: i32) -> (i32, i32) {
    %c0_i32 = arith.constant 0 : i32
    %c0_i32_0 = arith.constant 0 : i32
    %c0_i32_1 = arith.constant 0 : i32
    return %c0_i32, %c0_i32_0 : i32, i32
  }
  func.func @transform_10(%arg0: i32) -> (i32, i32) {
    %c0_i32 = arith.constant 0 : i32
    %c0_i32_0 = arith.constant 0 : i32
    %c0_i32_1 = arith.constant 0 : i32
    return %c0_i32, %c0_i32_0 : i32, i32
  }
  func.func @transform_11(%arg0: i32) -> (i32, i32) {
    %c0_i32 = arith.constant 0 : i32
    %c0_i32_0 = arith.constant 0 : i32
    %c0_i32_1 = arith.constant 0 : i32
    return %c0_i32, %c0_i32_0 : i32, i32
  }
  func.func @transform_12(%arg0: i32) -> (i32, i32) {
    %c0_i32 = arith.constant 0 : i32
    %c0_i32_0 = arith.constant 0 : i32
    %c0_i32_1 = arith.constant 0 : i32
    return %c0_i32, %c0_i32_0 : i32, i32
  }
  func.func @transform_13(%arg0: i32) -> (i32, i32) {
    %c0_i32 = arith.constant 0 : i32
    %c0_i32_0 = arith.constant 0 : i32
    %c0_i32_1 = arith.constant 0 : i32
    return %c0_i32, %c0_i32_0 : i32, i32
  }
  func.func @transform_14(%arg0: i32) -> (i32, i32, i32) {
    %c0_i32 = arith.constant 0 : i32
    %c0_i32_0 = arith.constant 0 : i32
    %c0_i32_1 = arith.constant 0 : i32
    return %arg0, %c0_i32, %c0_i32_0 : i32, i32, i32
  }
}

module attributes {stable_mosaic.version = 11 : i64} {
  func.func @encoder_layer_kernel(%arg0: i32, %arg1: memref<2x16x256xf32, #tpu.memory_space<vmem>>, %arg2: memref<2x1x16xbf16, #tpu.memory_space<vmem>>, %arg3: memref<256x768xbf16, #tpu.memory_space<vmem>>, %arg4: memref<1x768xf32, #tpu.memory_space<vmem>>, %arg5: memref<256x256xbf16, #tpu.memory_space<vmem>>, %arg6: memref<1x256xf32, #tpu.memory_space<vmem>>, %arg7: memref<1x256xf32, #tpu.memory_space<vmem>>, %arg8: memref<1x256xf32, #tpu.memory_space<vmem>>, %arg9: memref<256x512xbf16, #tpu.memory_space<vmem>>, %arg10: memref<1x512xf32, #tpu.memory_space<vmem>>, %arg11: memref<512x256xbf16, #tpu.memory_space<vmem>>, %arg12: memref<1x256xf32, #tpu.memory_space<vmem>>, %arg13: memref<1x256xf32, #tpu.memory_space<vmem>>, %arg14: memref<1x256xf32, #tpu.memory_space<vmem>>, %arg15: memref<2x16x256xf32, #tpu.memory_space<vmem>>, %arg16: memref<32x256xf32, #tpu.memory_space<vmem>>) attributes {dimension_semantics = [#tpu.dimension_semantics<parallel>], iteration_bounds = array<i64: 2>, scalar_prefetch = 0 : i64, scratch_operands = 1 : i64, tpu.core_type = #tpu.core_type<tc>, window_params = [{transform_indices = @transform_0, window_bounds = array<i64: 2, 16, 256>}, {transform_indices = @transform_1, window_bounds = array<i64: 2, 1, 16>}, {pipeline_mode = #tpu.pipeline_mode<synchronous>, transform_indices = @transform_2, window_bounds = array<i64: 256, 768>}, {pipeline_mode = #tpu.pipeline_mode<synchronous>, transform_indices = @transform_3, window_bounds = array<i64: 1, 768>}, {pipeline_mode = #tpu.pipeline_mode<synchronous>, transform_indices = @transform_4, window_bounds = array<i64: 256, 256>}, {pipeline_mode = #tpu.pipeline_mode<synchronous>, transform_indices = @transform_5, window_bounds = array<i64: 1, 256>}, {pipeline_mode = #tpu.pipeline_mode<synchronous>, transform_indices = @transform_6, window_bounds = array<i64: 1, 256>}, {pipeline_mode = #tpu.pipeline_mode<synchronous>, transform_indices = @transform_7, window_bounds = array<i64: 1, 256>}, {pipeline_mode = #tpu.pipeline_mode<synchronous>, transform_indices = @transform_8, window_bounds = array<i64: 256, 512>}, {pipeline_mode = #tpu.pipeline_mode<synchronous>, transform_indices = @transform_9, window_bounds = array<i64: 1, 512>}, {pipeline_mode = #tpu.pipeline_mode<synchronous>, transform_indices = @transform_10, window_bounds = array<i64: 512, 256>}, {pipeline_mode = #tpu.pipeline_mode<synchronous>, transform_indices = @transform_11, window_bounds = array<i64: 1, 256>}, {pipeline_mode = #tpu.pipeline_mode<synchronous>, transform_indices = @transform_12, window_bounds = array<i64: 1, 256>}, {pipeline_mode = #tpu.pipeline_mode<synchronous>, transform_indices = @transform_13, window_bounds = array<i64: 1, 256>}, {transform_indices = @transform_14, window_bounds = array<i64: 2, 16, 256>}]} {
    %c0 = arith.constant 0 : index
    %c0_0 = arith.constant 0 : index
    %c0_1 = arith.constant 0 : index
    %0 = vector.load %arg1[%c0, %c0_0, %c0_1] : memref<2x16x256xf32, #tpu.memory_space<vmem>>, vector<2x16x256xf32>
    %1 = vector.shape_cast %0 : vector<2x16x256xf32> to vector<32x256xf32>
    %2 = arith.truncf %1 : vector<32x256xf32> to vector<32x256xbf16>
    %c0_2 = arith.constant 0 : index
    %c0_3 = arith.constant 0 : index
    %3 = vector.load %arg3[%c0_2, %c0_3] : memref<256x768xbf16, #tpu.memory_space<vmem>>, vector<256x768xbf16>
    %cst = arith.constant dense<0.000000e+00> : vector<32x768xf32>
    %4 = tpu.matmul %2, %3, %cst {dimension_numbers = #tpu.dot_dimension_numbers<[1], [0], [0], [1], [0, 0, 1, 1], [], []>} : vector<32x256xbf16>, vector<256x768xbf16>, vector<32x768xf32> -> vector<32x768xf32>
    %c0_4 = arith.constant 0 : index
    %c0_5 = arith.constant 0 : index
    %5 = vector.load %arg4[%c0_4, %c0_5] : memref<1x768xf32, #tpu.memory_space<vmem>>, vector<1x768xf32>
    %6 = vector.broadcast %5 : vector<1x768xf32> to vector<32x768xf32>
    %7 = arith.addf %4, %6 : vector<32x768xf32>
    %8 = vector.extract_strided_slice %7 {offsets = [0, 0], sizes = [32, 256], strides = [1, 1]} : vector<32x768xf32> to vector<32x256xf32>
    %9 = arith.truncf %8 : vector<32x256xf32> to vector<32x256xbf16>
    %10 = vector.extract_strided_slice %7 {offsets = [0, 256], sizes = [32, 256], strides = [1, 1]} : vector<32x768xf32> to vector<32x256xf32>
    %11 = arith.truncf %10 : vector<32x256xf32> to vector<32x256xbf16>
    %12 = vector.extract_strided_slice %7 {offsets = [0, 512], sizes = [32, 256], strides = [1, 1]} : vector<32x768xf32> to vector<32x256xf32>
    %13 = arith.truncf %12 : vector<32x256xf32> to vector<32x256xbf16>
    %c0_6 = arith.constant 0 : index
    %c0_7 = arith.constant 0 : index
    %c0_8 = arith.constant 0 : index
    %14 = vector.load %arg2[%c0_6, %c0_7, %c0_8] : memref<2x1x16xbf16, #tpu.memory_space<vmem>>, vector<1x1x16xbf16>
    %15 = vector.shape_cast %14 : vector<1x1x16xbf16> to vector<1x16xbf16>
    %16 = arith.extf %15 : vector<1x16xbf16> to vector<1x16xf32>
    %17 = vector.extract_strided_slice %9 {offsets = [0, 0], sizes = [16, 256], strides = [1, 1]} : vector<32x256xbf16> to vector<16x256xbf16>
    %18 = vector.extract_strided_slice %11 {offsets = [0, 0], sizes = [16, 256], strides = [1, 1]} : vector<32x256xbf16> to vector<16x256xbf16>
    %19 = vector.extract_strided_slice %13 {offsets = [0, 0], sizes = [16, 256], strides = [1, 1]} : vector<32x256xbf16> to vector<16x256xbf16>
    %20 = vector.extract_strided_slice %17 {offsets = [0, 0], sizes = [16, 128], strides = [1, 1]} : vector<16x256xbf16> to vector<16x128xbf16>
    %21 = vector.extract_strided_slice %18 {offsets = [0, 0], sizes = [16, 128], strides = [1, 1]} : vector<16x256xbf16> to vector<16x128xbf16>
    "tpu.trace_start"() <{level = 10 : i32, message = "qd,kd->qk"}> : () -> ()
    %cst_9 = arith.constant dense<0.000000e+00> : vector<16x16xf32>
    %22 = tpu.matmul %20, %21, %cst_9 {dimension_numbers = #tpu.dot_dimension_numbers<[1], [1], [0], [0], [0, 0, 1, 0], [], []>} : vector<16x128xbf16>, vector<16x128xbf16>, vector<16x16xf32> -> vector<16x16xf32>
    "tpu.trace_stop"() : () -> ()
    %23 = vector.broadcast %16 : vector<1x16xf32> to vector<16x16xf32>
    %24 = arith.addf %22, %23 : vector<16x16xf32>
    %cst_10 = arith.constant dense<0xFF800000> : vector<16xf32>
    %25 = vector.multi_reduction <maximumf>, %24, %cst_10 [1] : vector<16x16xf32> to vector<16xf32>
    %26 = vector.shape_cast %25 : vector<16xf32> to vector<16x1xf32>
    %27 = vector.broadcast %26 : vector<16x1xf32> to vector<16x16xf32>
    %28 = arith.subf %24, %27 : vector<16x16xf32>
    %29 = math.exp %28 : vector<16x16xf32>
    %cst_11 = arith.constant dense<0.000000e+00> : vector<16xf32>
    %30 = vector.multi_reduction <add>, %29, %cst_11 [1] : vector<16x16xf32> to vector<16xf32>
    %31 = vector.shape_cast %30 : vector<16xf32> to vector<16x1xf32>
    %32 = tpu.reciprocal %31 {approx = true} : vector<16x1xf32> -> vector<16x1xf32>
    %33 = vector.broadcast %32 : vector<16x1xf32> to vector<16x16xf32>
    %34 = arith.mulf %29, %33 : vector<16x16xf32>
    %35 = arith.truncf %34 : vector<16x16xf32> to vector<16x16xbf16>
    %36 = vector.extract_strided_slice %19 {offsets = [0, 0], sizes = [16, 128], strides = [1, 1]} : vector<16x256xbf16> to vector<16x128xbf16>
    %cst_12 = arith.constant dense<0.000000e+00> : vector<16x128xf32>
    %37 = tpu.matmul %35, %36, %cst_12 {dimension_numbers = #tpu.dot_dimension_numbers<[1], [0], [0], [1], [0, 0, 1, 1], [], []>} : vector<16x16xbf16>, vector<16x128xbf16>, vector<16x128xf32> -> vector<16x128xf32>
    %c0_13 = arith.constant 0 : index
    %c0_14 = arith.constant 0 : index
    %38 = vector.load %arg16[%c0_13, %c0_14] : memref<32x256xf32, #tpu.memory_space<vmem>>, vector<16x128xf32>
    tpu.vector_store %arg16[%c0_13, %c0_14], %37 {strides = array<i32>} : memref<32x256xf32, #tpu.memory_space<vmem>>, vector<16x128xf32>,
    %39 = vector.extract_strided_slice %17 {offsets = [0, 128], sizes = [16, 128], strides = [1, 1]} : vector<16x256xbf16> to vector<16x128xbf16>
    %40 = vector.extract_strided_slice %18 {offsets = [0, 128], sizes = [16, 128], strides = [1, 1]} : vector<16x256xbf16> to vector<16x128xbf16>
    "tpu.trace_start"() <{level = 10 : i32, message = "qd,kd->qk"}> : () -> ()
    %cst_15 = arith.constant dense<0.000000e+00> : vector<16x16xf32>
    %41 = tpu.matmul %39, %40, %cst_15 {dimension_numbers = #tpu.dot_dimension_numbers<[1], [1], [0], [0], [0, 0, 1, 0], [], []>} : vector<16x128xbf16>, vector<16x128xbf16>, vector<16x16xf32> -> vector<16x16xf32>
    "tpu.trace_stop"() : () -> ()
    %42 = vector.broadcast %16 : vector<1x16xf32> to vector<16x16xf32>
    %43 = arith.addf %41, %42 : vector<16x16xf32>
    %cst_16 = arith.constant dense<0xFF800000> : vector<16xf32>
    %44 = vector.multi_reduction <maximumf>, %43, %cst_16 [1] : vector<16x16xf32> to vector<16xf32>
    %45 = vector.shape_cast %44 : vector<16xf32> to vector<16x1xf32>
    %46 = vector.broadcast %45 : vector<16x1xf32> to vector<16x16xf32>
    %47 = arith.subf %43, %46 : vector<16x16xf32>
    %48 = math.exp %47 : vector<16x16xf32>
    %cst_17 = arith.constant dense<0.000000e+00> : vector<16xf32>
    %49 = vector.multi_reduction <add>, %48, %cst_17 [1] : vector<16x16xf32> to vector<16xf32>
    %50 = vector.shape_cast %49 : vector<16xf32> to vector<16x1xf32>
    %51 = tpu.reciprocal %50 {approx = true} : vector<16x1xf32> -> vector<16x1xf32>
    %52 = vector.broadcast %51 : vector<16x1xf32> to vector<16x16xf32>
    %53 = arith.mulf %48, %52 : vector<16x16xf32>
    %54 = arith.truncf %53 : vector<16x16xf32> to vector<16x16xbf16>
    %55 = vector.extract_strided_slice %19 {offsets = [0, 128], sizes = [16, 128], strides = [1, 1]} : vector<16x256xbf16> to vector<16x128xbf16>
    %cst_18 = arith.constant dense<0.000000e+00> : vector<16x128xf32>
    %56 = tpu.matmul %54, %55, %cst_18 {dimension_numbers = #tpu.dot_dimension_numbers<[1], [0], [0], [1], [0, 0, 1, 1], [], []>} : vector<16x16xbf16>, vector<16x128xbf16>, vector<16x128xf32> -> vector<16x128xf32>
    %c0_19 = arith.constant 0 : index
    %c128 = arith.constant 128 : index
    %57 = vector.load %arg16[%c0_19, %c128] : memref<32x256xf32, #tpu.memory_space<vmem>>, vector<16x128xf32>
    tpu.vector_store %arg16[%c0_19, %c128], %56 {strides = array<i32>} : memref<32x256xf32, #tpu.memory_space<vmem>>, vector<16x128xf32>,
    %c1 = arith.constant 1 : index
    %c0_20 = arith.constant 0 : index
    %c0_21 = arith.constant 0 : index
    %58 = vector.load %arg2[%c1, %c0_20, %c0_21] : memref<2x1x16xbf16, #tpu.memory_space<vmem>>, vector<1x1x16xbf16>
    %59 = vector.shape_cast %58 : vector<1x1x16xbf16> to vector<1x16xbf16>
    %60 = arith.extf %59 : vector<1x16xbf16> to vector<1x16xf32>
    %61 = vector.extract_strided_slice %9 {offsets = [16, 0], sizes = [16, 256], strides = [1, 1]} : vector<32x256xbf16> to vector<16x256xbf16>
    %62 = vector.extract_strided_slice %11 {offsets = [16, 0], sizes = [16, 256], strides = [1, 1]} : vector<32x256xbf16> to vector<16x256xbf16>
    %63 = vector.extract_strided_slice %13 {offsets = [16, 0], sizes = [16, 256], strides = [1, 1]} : vector<32x256xbf16> to vector<16x256xbf16>
    %64 = vector.extract_strided_slice %61 {offsets = [0, 0], sizes = [16, 128], strides = [1, 1]} : vector<16x256xbf16> to vector<16x128xbf16>
    %65 = vector.extract_strided_slice %62 {offsets = [0, 0], sizes = [16, 128], strides = [1, 1]} : vector<16x256xbf16> to vector<16x128xbf16>
    "tpu.trace_start"() <{level = 10 : i32, message = "qd,kd->qk"}> : () -> ()
    %cst_22 = arith.constant dense<0.000000e+00> : vector<16x16xf32>
    %66 = tpu.matmul %64, %65, %cst_22 {dimension_numbers = #tpu.dot_dimension_numbers<[1], [1], [0], [0], [0, 0, 1, 0], [], []>} : vector<16x128xbf16>, vector<16x128xbf16>, vector<16x16xf32> -> vector<16x16xf32>
    "tpu.trace_stop"() : () -> ()
    %67 = vector.broadcast %60 : vector<1x16xf32> to vector<16x16xf32>
    %68 = arith.addf %66, %67 : vector<16x16xf32>
    %cst_23 = arith.constant dense<0xFF800000> : vector<16xf32>
    %69 = vector.multi_reduction <maximumf>, %68, %cst_23 [1] : vector<16x16xf32> to vector<16xf32>
    %70 = vector.shape_cast %69 : vector<16xf32> to vector<16x1xf32>
    %71 = vector.broadcast %70 : vector<16x1xf32> to vector<16x16xf32>
    %72 = arith.subf %68, %71 : vector<16x16xf32>
    %73 = math.exp %72 : vector<16x16xf32>
    %cst_24 = arith.constant dense<0.000000e+00> : vector<16xf32>
    %74 = vector.multi_reduction <add>, %73, %cst_24 [1] : vector<16x16xf32> to vector<16xf32>
    %75 = vector.shape_cast %74 : vector<16xf32> to vector<16x1xf32>
    %76 = tpu.reciprocal %75 {approx = true} : vector<16x1xf32> -> vector<16x1xf32>
    %77 = vector.broadcast %76 : vector<16x1xf32> to vector<16x16xf32>
    %78 = arith.mulf %73, %77 : vector<16x16xf32>
    %79 = arith.truncf %78 : vector<16x16xf32> to vector<16x16xbf16>
    %80 = vector.extract_strided_slice %63 {offsets = [0, 0], sizes = [16, 128], strides = [1, 1]} : vector<16x256xbf16> to vector<16x128xbf16>
    %cst_25 = arith.constant dense<0.000000e+00> : vector<16x128xf32>
    %81 = tpu.matmul %79, %80, %cst_25 {dimension_numbers = #tpu.dot_dimension_numbers<[1], [0], [0], [1], [0, 0, 1, 1], [], []>} : vector<16x16xbf16>, vector<16x128xbf16>, vector<16x128xf32> -> vector<16x128xf32>
    %c16 = arith.constant 16 : index
    %c0_26 = arith.constant 0 : index
    %82 = vector.load %arg16[%c16, %c0_26] : memref<32x256xf32, #tpu.memory_space<vmem>>, vector<16x128xf32>
    tpu.vector_store %arg16[%c16, %c0_26], %81 {strides = array<i32>} : memref<32x256xf32, #tpu.memory_space<vmem>>, vector<16x128xf32>,
    %83 = vector.extract_strided_slice %61 {offsets = [0, 128], sizes = [16, 128], strides = [1, 1]} : vector<16x256xbf16> to vector<16x128xbf16>
    %84 = vector.extract_strided_slice %62 {offsets = [0, 128], sizes = [16, 128], strides = [1, 1]} : vector<16x256xbf16> to vector<16x128xbf16>
    "tpu.trace_start"() <{level = 10 : i32, message = "qd,kd->qk"}> : () -> ()
    %cst_27 = arith.constant dense<0.000000e+00> : vector<16x16xf32>
    %85 = tpu.matmul %83, %84, %cst_27 {dimension_numbers = #tpu.dot_dimension_numbers<[1], [1], [0], [0], [0, 0, 1, 0], [], []>} : vector<16x128xbf16>, vector<16x128xbf16>, vector<16x16xf32> -> vector<16x16xf32>
    "tpu.trace_stop"() : () -> ()
    %86 = vector.broadcast %60 : vector<1x16xf32> to vector<16x16xf32>
    %87 = arith.addf %85, %86 : vector<16x16xf32>
    %cst_28 = arith.constant dense<0xFF800000> : vector<16xf32>
    %88 = vector.multi_reduction <maximumf>, %87, %cst_28 [1] : vector<16x16xf32> to vector<16xf32>
    %89 = vector.shape_cast %88 : vector<16xf32> to vector<16x1xf32>
    %90 = vector.broadcast %89 : vector<16x1xf32> to vector<16x16xf32>
    %91 = arith.subf %87, %90 : vector<16x16xf32>
    %92 = math.exp %91 : vector<16x16xf32>
    %cst_29 = arith.constant dense<0.000000e+00> : vector<16xf32>
    %93 = vector.multi_reduction <add>, %92, %cst_29 [1] : vector<16x16xf32> to vector<16xf32>
    %94 = vector.shape_cast %93 : vector<16xf32> to vector<16x1xf32>
    %95 = tpu.reciprocal %94 {approx = true} : vector<16x1xf32> -> vector<16x1xf32>
    %96 = vector.broadcast %95 : vector<16x1xf32> to vector<16x16xf32>
    %97 = arith.mulf %92, %96 : vector<16x16xf32>
    %98 = arith.truncf %97 : vector<16x16xf32> to vector<16x16xbf16>
    %99 = vector.extract_strided_slice %63 {offsets = [0, 128], sizes = [16, 128], strides = [1, 1]} : vector<16x256xbf16> to vector<16x128xbf16>
    %cst_30 = arith.constant dense<0.000000e+00> : vector<16x128xf32>
    %100 = tpu.matmul %98, %99, %cst_30 {dimension_numbers = #tpu.dot_dimension_numbers<[1], [0], [0], [1], [0, 0, 1, 1], [], []>} : vector<16x16xbf16>, vector<16x128xbf16>, vector<16x128xf32> -> vector<16x128xf32>
    %c16_31 = arith.constant 16 : index
    %c128_32 = arith.constant 128 : index
    %101 = vector.load %arg16[%c16_31, %c128_32] : memref<32x256xf32, #tpu.memory_space<vmem>>, vector<16x128xf32>
    tpu.vector_store %arg16[%c16_31, %c128_32], %100 {strides = array<i32>} : memref<32x256xf32, #tpu.memory_space<vmem>>, vector<16x128xf32>,
    %c0_33 = arith.constant 0 : index
    %c0_34 = arith.constant 0 : index
    %102 = vector.load %arg16[%c0_33, %c0_34] : memref<32x256xf32, #tpu.memory_space<vmem>>, vector<32x256xf32>
    %103 = arith.truncf %102 : vector<32x256xf32> to vector<32x256xbf16>
    %c0_35 = arith.constant 0 : index
    %c0_36 = arith.constant 0 : index
    %104 = vector.load %arg5[%c0_35, %c0_36] : memref<256x256xbf16, #tpu.memory_space<vmem>>, vector<256x256xbf16>
    %cst_37 = arith.constant dense<0.000000e+00> : vector<32x256xf32>
    %105 = tpu.matmul %103, %104, %cst_37 {dimension_numbers = #tpu.dot_dimension_numbers<[1], [0], [0], [1], [0, 0, 1, 1], [], []>} : vector<32x256xbf16>, vector<256x256xbf16>, vector<32x256xf32> -> vector<32x256xf32>
    %c0_38 = arith.constant 0 : index
    %c0_39 = arith.constant 0 : index
    %106 = vector.load %arg6[%c0_38, %c0_39] : memref<1x256xf32, #tpu.memory_space<vmem>>, vector<1x256xf32>
    %107 = vector.broadcast %106 : vector<1x256xf32> to vector<32x256xf32>
    %108 = arith.addf %105, %107 : vector<32x256xf32>
    %109 = arith.addf %1, %108 : vector<32x256xf32>
    %c0_40 = arith.constant 0 : index
    %c0_41 = arith.constant 0 : index
    %110 = vector.load %arg7[%c0_40, %c0_41] : memref<1x256xf32, #tpu.memory_space<vmem>>, vector<1x256xf32>
    %c0_42 = arith.constant 0 : index
    %c0_43 = arith.constant 0 : index
    %111 = vector.load %arg8[%c0_42, %c0_43] : memref<1x256xf32, #tpu.memory_space<vmem>>, vector<1x256xf32>
    %cst_44 = arith.constant dense<0.000000e+00> : vector<32xf32>
    %112 = vector.multi_reduction <add>, %109, %cst_44 [1] : vector<32x256xf32> to vector<32xf32>
    %113 = vector.shape_cast %112 : vector<32xf32> to vector<32x1xf32>
    %cst_45 = arith.constant 2.560000e+02 : f32
    %114 = vector.broadcast %cst_45 : f32 to vector<32x1xf32>
    %115 = arith.divf %113, %114 : vector<32x1xf32>
    %116 = vector.broadcast %115 : vector<32x1xf32> to vector<32x256xf32>
    %117 = arith.subf %109, %116 : vector<32x256xf32>
    %118 = vector.broadcast %115 : vector<32x1xf32> to vector<32x256xf32>
    %119 = arith.subf %109, %118 : vector<32x256xf32>
    %120 = arith.mulf %117, %119 : vector<32x256xf32>
    %cst_46 = arith.constant dense<0.000000e+00> : vector<32xf32>
    %121 = vector.multi_reduction <add>, %120, %cst_46 [1] : vector<32x256xf32> to vector<32xf32>
    %122 = vector.shape_cast %121 : vector<32xf32> to vector<32x1xf32>
    %cst_47 = arith.constant 2.560000e+02 : f32
    %123 = vector.broadcast %cst_47 : f32 to vector<32x1xf32>
    %124 = arith.divf %122, %123 : vector<32x1xf32>
    %125 = vector.broadcast %115 : vector<32x1xf32> to vector<32x256xf32>
    %126 = arith.subf %109, %125 : vector<32x256xf32>
    %cst_48 = arith.constant 9.99999974E-6 : f32
    %127 = vector.broadcast %cst_48 : f32 to vector<32x1xf32>
    %128 = arith.addf %124, %127 : vector<32x1xf32>
    %129 = math.rsqrt %128 : vector<32x1xf32>
    %130 = vector.broadcast %129 : vector<32x1xf32> to vector<32x256xf32>
    %131 = arith.mulf %126, %130 : vector<32x256xf32>
    %132 = vector.broadcast %110 : vector<1x256xf32> to vector<32x256xf32>
    %133 = arith.mulf %131, %132 : vector<32x256xf32>
    %134 = vector.broadcast %111 : vector<1x256xf32> to vector<32x256xf32>
    %135 = arith.addf %133, %134 : vector<32x256xf32>
    %136 = arith.truncf %135 : vector<32x256xf32> to vector<32x256xbf16>
    %c0_49 = arith.constant 0 : index
    %c0_50 = arith.constant 0 : index
    %137 = vector.load %arg9[%c0_49, %c0_50] : memref<256x512xbf16, #tpu.memory_space<vmem>>, vector<256x512xbf16>
    %cst_51 = arith.constant dense<0.000000e+00> : vector<32x512xf32>
    %138 = tpu.matmul %136, %137, %cst_51 {dimension_numbers = #tpu.dot_dimension_numbers<[1], [0], [0], [1], [0, 0, 1, 1], [], []>} : vector<32x256xbf16>, vector<256x512xbf16>, vector<32x512xf32> -> vector<32x512xf32>
    %c0_52 = arith.constant 0 : index
    %c0_53 = arith.constant 0 : index
    %139 = vector.load %arg10[%c0_52, %c0_53] : memref<1x512xf32, #tpu.memory_space<vmem>>, vector<1x512xf32>
    %140 = vector.broadcast %139 : vector<1x512xf32> to vector<32x512xf32>
    %141 = arith.addf %138, %140 : vector<32x512xf32>
    %cst_54 = arith.constant 0.000000e+00 : f32
    %142 = vector.broadcast %cst_54 : f32 to vector<32x512xf32>
    %143 = arith.maximumf %141, %142 : vector<32x512xf32>
    %144 = arith.truncf %143 : vector<32x512xf32> to vector<32x512xbf16>
    %c0_55 = arith.constant 0 : index
    %c0_56 = arith.constant 0 : index
    %145 = vector.load %arg11[%c0_55, %c0_56] : memref<512x256xbf16, #tpu.memory_space<vmem>>, vector<512x256xbf16>
    %cst_57 = arith.constant dense<0.000000e+00> : vector<32x256xf32>
    %146 = tpu.matmul %144, %145, %cst_57 {dimension_numbers = #tpu.dot_dimension_numbers<[1], [0], [0], [1], [0, 0, 1, 1], [], []>} : vector<32x512xbf16>, vector<512x256xbf16>, vector<32x256xf32> -> vector<32x256xf32>
    %c0_58 = arith.constant 0 : index
    %c0_59 = arith.constant 0 : index
    %147 = vector.load %arg12[%c0_58, %c0_59] : memref<1x256xf32, #tpu.memory_space<vmem>>, vector<1x256xf32>
    %148 = vector.broadcast %147 : vector<1x256xf32> to vector<32x256xf32>
    %149 = arith.addf %146, %148 : vector<32x256xf32>
    %150 = arith.addf %135, %149 : vector<32x256xf32>
    %c0_60 = arith.constant 0 : index
    %c0_61 = arith.constant 0 : index
    %151 = vector.load %arg13[%c0_60, %c0_61] : memref<1x256xf32, #tpu.memory_space<vmem>>, vector<1x256xf32>
    %c0_62 = arith.constant 0 : index
    %c0_63 = arith.constant 0 : index
    %152 = vector.load %arg14[%c0_62, %c0_63] : memref<1x256xf32, #tpu.memory_space<vmem>>, vector<1x256xf32>
    %cst_64 = arith.constant dense<0.000000e+00> : vector<32xf32>
    %153 = vector.multi_reduction <add>, %150, %cst_64 [1] : vector<32x256xf32> to vector<32xf32>
    %154 = vector.shape_cast %153 : vector<32xf32> to vector<32x1xf32>
    %cst_65 = arith.constant 2.560000e+02 : f32
    %155 = vector.broadcast %cst_65 : f32 to vector<32x1xf32>
    %156 = arith.divf %154, %155 : vector<32x1xf32>
    %157 = vector.broadcast %156 : vector<32x1xf32> to vector<32x256xf32>
    %158 = arith.subf %150, %157 : vector<32x256xf32>
    %159 = vector.broadcast %156 : vector<32x1xf32> to vector<32x256xf32>
    %160 = arith.subf %150, %159 : vector<32x256xf32>
    %161 = arith.mulf %158, %160 : vector<32x256xf32>
    %cst_66 = arith.constant dense<0.000000e+00> : vector<32xf32>
    %162 = vector.multi_reduction <add>, %161, %cst_66 [1] : vector<32x256xf32> to vector<32xf32>
    %163 = vector.shape_cast %162 : vector<32xf32> to vector<32x1xf32>
    %cst_67 = arith.constant 2.560000e+02 : f32
    %164 = vector.broadcast %cst_67 : f32 to vector<32x1xf32>
    %165 = arith.divf %163, %164 : vector<32x1xf32>
    %166 = vector.broadcast %156 : vector<32x1xf32> to vector<32x256xf32>
    %167 = arith.subf %150, %166 : vector<32x256xf32>
    %cst_68 = arith.constant 9.99999974E-6 : f32
    %168 = vector.broadcast %cst_68 : f32 to vector<32x1xf32>
    %169 = arith.addf %165, %168 : vector<32x1xf32>
    %170 = math.rsqrt %169 : vector<32x1xf32>
    %171 = vector.broadcast %170 : vector<32x1xf32> to vector<32x256xf32>
    %172 = arith.mulf %167, %171 : vector<32x256xf32>
    %173 = vector.broadcast %151 : vector<1x256xf32> to vector<32x256xf32>
    %174 = arith.mulf %172, %173 : vector<32x256xf32>
    %175 = vector.broadcast %152 : vector<1x256xf32> to vector<32x256xf32>
    %176 = arith.addf %174, %175 : vector<32x256xf32>
    %177 = vector.shape_cast %176 : vector<32x256xf32> to vector<2x16x256xf32>
    %c0_69 = arith.constant 0 : index
    %c0_70 = arith.constant 0 : index
    %c0_71 = arith.constant 0 : index
    %178 = vector.load %arg15[%c0_69, %c0_70, %c0_71] : memref<2x16x256xf32, #tpu.memory_space<vmem>>, vector<2x16x256xf32>
    tpu.vector_store %arg15[%c0_69, %c0_70, %c0_71], %177 {strides = array<i32>} : memref<2x16x256xf32, #tpu.memory_space<vmem>>, vector<2x16x256xf32>,
    return
  }
  func.func @transform_0(%arg0: i32) -> (i32, i32, i32) {
    %c0_i32 = arith.constant 0 : i32
    %c0_i32_0 = arith.constant 0 : i32
    %c0_i32_1 = arith.constant 0 : i32
    return %arg0, %c0_i32, %c0_i32_0 : i32, i32, i32
  }
  func.func @transform_1(%arg0: i32) -> (i32, i32, i32) {
    %c0_i32 = arith.constant 0 : i32
    %c0_i32_0 = arith.constant 0 : i32
    %c0_i32_1 = arith.constant 0 : i32
    return %arg0, %c0_i32, %c0_i32_0 : i32, i32, i32
  }
  func.func @transform_2(%arg0: i32) -> (i32, i32) {
    %c0_i32 = arith.constant 0 : i32
    %c0_i32_0 = arith.constant 0 : i32
    %c0_i32_1 = arith.constant 0 : i32
    return %c0_i32, %c0_i32_0 : i32, i32
  }
  func.func @transform_3(%arg0: i32) -> (i32, i32) {
    %c0_i32 = arith.constant 0 : i32
    %c0_i32_0 = arith.constant 0 : i32
    %c0_i32_1 = arith.constant 0 : i32
    return %c0_i32, %c0_i32_0 : i32, i32
  }
  func.func @transform_4(%arg0: i32) -> (i32, i32) {
    %c0_i32 = arith.constant 0 : i32
    %c0_i32_0 = arith.constant 0 : i32
    %c0_i32_1 = arith.constant 0 : i32
    return %c0_i32, %c0_i32_0 : i32, i32
  }
  func.func @transform_5(%arg0: i32) -> (i32, i32) {
    %c0_i32 = arith.constant 0 : i32
    %c0_i32_0 = arith.constant 0 : i32
    %c0_i32_1 = arith.constant 0 : i32
    return %c0_i32, %c0_i32_0 : i32, i32
  }
  func.func @transform_6(%arg0: i32) -> (i32, i32) {
    %c0_i32 = arith.constant 0 : i32
    %c0_i32_0 = arith.constant 0 : i32
    %c0_i32_1 = arith.constant 0 : i32
    return %c0_i32, %c0_i32_0 : i32, i32
  }
  func.func @transform_7(%arg0: i32) -> (i32, i32) {
    %c0_i32 = arith.constant 0 : i32
    %c0_i32_0 = arith.constant 0 : i32
    %c0_i32_1 = arith.constant 0 : i32
    return %c0_i32, %c0_i32_0 : i32, i32
  }
  func.func @transform_8(%arg0: i32) -> (i32, i32) {
    %c0_i32 = arith.constant 0 : i32
    %c0_i32_0 = arith.constant 0 : i32
    %c0_i32_1 = arith.constant 0 : i32
    return %c0_i32, %c0_i32_0 : i32, i32
  }
  func.func @transform_9(%arg0: i32) -> (i32, i32) {
    %c0_i32 = arith.constant 0 : i32
    %c0_i32_0 = arith.constant 0 : i32
    %c0_i32_1 = arith.constant 0 : i32
    return %c0_i32, %c0_i32_0 : i32, i32
  }
  func.func @transform_10(%arg0: i32) -> (i32, i32) {
    %c0_i32 = arith.constant 0 : i32
    %c0_i32_0 = arith.constant 0 : i32
    %c0_i32_1 = arith.constant 0 : i32
    return %c0_i32, %c0_i32_0 : i32, i32
  }
  func.func @transform_11(%arg0: i32) -> (i32, i32) {
    %c0_i32 = arith.constant 0 : i32
    %c0_i32_0 = arith.constant 0 : i32
    %c0_i32_1 = arith.constant 0 : i32
    return %c0_i32, %c0_i32_0 : i32, i32
  }
  func.func @transform_12(%arg0: i32) -> (i32, i32) {
    %c0_i32 = arith.constant 0 : i32
    %c0_i32_0 = arith.constant 0 : i32
    %c0_i32_1 = arith.constant 0 : i32
    return %c0_i32, %c0_i32_0 : i32, i32
  }
  func.func @transform_13(%arg0: i32) -> (i32, i32) {
    %c0_i32 = arith.constant 0 : i32
    %c0_i32_0 = arith.constant 0 : i32
    %c0_i32_1 = arith.constant 0 : i32
    return %c0_i32, %c0_i32_0 : i32, i32
  }
  func.func @transform_14(%arg0: i32) -> (i32, i32, i32) {
    %c0_i32 = arith.constant 0 : i32
    %c0_i32_0 = arith.constant 0 : i32
    %c0_i32_1 = arith.constant 0 : i32
    return %arg0, %c0_i32, %c0_i32_0 : i32, i32, i32
  }
}

</mosaic_0001>

<bundles_post_ra>
// kernel: tpu_custom_call.1
= control target key start
LH: loop header
LB: loop body
LE: loop exit
PB: predicated region body
PF: predicated region fallthrough
CT: control target
= control target key end

     0   :  { %s5312_s0 = inlined_call_operand.hbm [shape: f32[4,16,256], index: 0, kind: input, shape index: {}]   ;;  %s5313_s1 = inlined_call_operand.vmem [shape: bf16[4,1,16], index: 1, kind: input, shape index: {}]   ;;  %s5314_s2 = inlined_call_operand.hbm [shape: bf16[256,768], index: 2, kind: input, shape index: {}]   ;;  %s5315_s3 = inlined_call_operand.vmem [shape: f32[1,768], index: 3, kind: input, shape index: {}]   ;;  %s5316_s4 = inlined_call_operand.hbm [shape: bf16[256,256], index: 4, kind: input, shape index: {}]   ;;  %s5317_s5 = inlined_call_operand.vmem [shape: f32[1,256], index: 5, kind: input, shape index: {}]   ;;  %s5318_s6 = inlined_call_operand.vmem [shape: f32[1,256], index: 6, kind: input, shape index: {}]   ;;  %s5319_s7 = inlined_call_operand.vmem [shape: f32[1,256], index: 7, kind: input, shape index: {}]   ;;  %s5320_s8 = inlined_call_operand.hbm [shape: bf16[256,512], index: 8, kind: input, shape index: {}]   ;;  %s5321_s9 = inlined_call_operand.vmem [shape: f32[1,512], index: 9, kind: input, shape index: {}]   ;;  %s5322_s10 = inlined_call_operand.hbm [shape: bf16[512,256], index: 10, kind: input, shape index: {}]   ;;  %s5323_s11 = inlined_call_operand.vmem [shape: f32[1,256], index: 11, kind: input, shape index: {}]   ;;  %s5324_s12 = inlined_call_operand.vmem [shape: f32[1,256], index: 12, kind: input, shape index: {}]   ;;  %s5325_s13 = inlined_call_operand.vmem [shape: f32[1,256], index: 13, kind: input, shape index: {}]   ;;  %s5326_s14 = inlined_call_operand.hbm [shape: f32[4,16,256], index: 14, kind: output, shape index: {}]  }
   0x1   :  { %5336 = sst [smem:[#allocation21_spill]] %s5314_s2 }
   0x2   :  { %5337 = sst [smem:[#allocation22_spill]] %s5316_s4 }
   0x3   :  { %5338 = sst [smem:[#allocation23_spill]] %s5320_s8 }
   0x4   :  { %5339 = sst [smem:[#allocation24_spill]] %s5322_s10 }
   0x5   :  { %19 = vsyncpa [#allocation4], 0 }
   0x6   :  { %21 = vsyncpa [#allocation4 + $0x1], 0 }
   0x7   :  { %22 = vsyncpa [#allocation7], 0 }
   0x8   :  { %23 = vsyncpa [#allocation10], 0 }
   0x9   :  { %24 = vsyncpa [#allocation5], 0 }
   0xa   :  { %26 = vsyncpa [#allocation5 + $0x1], 0  ;;  %s4678_s29 = smov 0   ;;  %s4680_s30 = smov 0  }
   0xb   :  { %s4682_s15 = smov 0   ;;  %s4684_s16 = smov 0  }
   0xc LB: > { %5340 = sst [smem:[#allocation17_spill]] %s4573_s29  ;;  %s4699_s17 = sadd.s32 4294967295, %s4585_s16   ;;  %s4585_s16 = sphi %s4684_s16, %s5372_s16   ;;  %s4581_s15 = sphi %s4682_s15, %s5369_s15   ;;  %s4577_s30 = sphi %s4680_s30, %s5371_s30   ;;  %s4573_s29 = sphi %s4678_s29, %s5370_s29  }
   0xd   : > { %5341 = sst [smem:[#allocation18_spill]] %s4581_s15  ;;  %s3491_s18 = sadd.s32 4294967294, %s4585_s16  }
   0xe   : > { %p52_p0 = scmp.ne.s32.totalorder %s4577_s30, %s4573_s29  ;;  %p5328_p1 = scmp.eq.s32.totalorder %s4699_s17, 0 }
   0xf   : > { %p360_p3 = scmp.eq.s32.totalorder %s3491_s18, 1  ;;  %p3492_p5 = scmp.ge.s32.totalorder %s4585_s16, 1 }
  0x10   : > { %p4708_p4 = por %p5328_p1, %p52_p0  ;;  %p367_p7 = scmp.lt.s32.totalorder %s4585_s16, 3 }
  0x11   : > { %p4713_p6 = por %p360_p3, %p52_p0  ;;  %s4587_s22 = smov [#allocation6]  }
  0x12   : > { %s5342_s19 = scalar_select %p4708_p4, 1, 0 }
  0x13   : > { %s5343_s20 = scalar_select %p4713_p6, 1, 0 }
  0x14   : > { %p4718_p8 = pnand %p3492_p5, %p367_p7  ;;  %s379_s23 = sshll.u32 %s4587_s22, 4  ;;  %s380_s23 = int_to_ptr.vmem [resolvable:$true] %s379_s23 }
  0x15   : > { %5344 = sst [smem:[#allocation19_spill]] %s5343_s20  ;;  %s4588_s25 = smov [#allocation9]  }
  0x16   : > { %s5345_s21 = scalar_select %p4718_p8, 1, 0 }
  0x17   : > { %p3865_p9 = pneg %p4718_p8  ;;  %s417_s26 = sshll.u32 %s4588_s25, 4  ;;  %s418_s26 = int_to_ptr.vmem [resolvable:$true] %s417_s26 }
  0x18   : > { %s4392_s27 = scalar_lea.vmem %s380_s23, 12288  ;;  %p4400_p5 = scmp.lt.s32.totalorder %s380_s23, %s380_s23 }
  0x19   : > { %p4727_p11 = pnand %p3865_p9, %p5328_p1  ;;  %p4393_p13 = scmp.ne.s32.totalorder %s380_s23, %s4392_s27 }
  0x1a   : > { %p4401_p7 = scmp.lt.s32.totalorder %s4392_s27, %s4392_s27 }
  0x1b   : > { %p4383_p12 = pneg %p4727_p11 }
  0x1c   : > { %p4402_p10 = por %p4401_p7, %p4400_p5 }
  0x1d   : > { %p4395_p0 = pnand %p4393_p13, %p4383_p12 }
  0x1f   : > { %p4396_p3 = pneg %p4395_p0 }
  0x21   : > { %p4403_p9 = pnand %p4402_p10, %p4396_p3 }
  0x23   : > { %4406 = shalt.err (!%p4403_p9)
}
  0x24   : > { %s4589_s28 = smov 384   ;;  %s4590_s18 = smov 24  }
  0x25   : > { %s5347_s2 = sld [smem:[#allocation21_spill]]  ;;  %s4418_s20 = scalar_lea.vmem %s418_s26, 8192 }
  0x26   : > { %p4419_p1 = scmp.ne.s32.totalorder %s418_s26, %s4418_s20  ;;  %p4426_p2 = scmp.lt.s32.totalorder %s418_s26, %s418_s26 }
  0x27   : > { %p4427_p6 = scmp.lt.s32.totalorder %s4418_s20, %s4418_s20 }
  0x28   : > { %p4421_p13 = pnand %p4419_p1, %p4383_p12 }
  0x29   : > { %p4428_p5 = por %p4427_p6, %p4426_p2 }
  0x2a   : > { %p4422_p0 = pneg %p4421_p13 }
  0x2b   : > { %3868 = dma.hbm_to_vmem [thread:$0]  (!%p4727_p11), %s5347_s2, 12288, %s380_s23, [#allocation7], %s4589_s28, %s4589_s28, %s4590_s18  }
  0x2c   : > { %p4429_p10 = pnand %p4428_p5, %p4422_p0 }
  0x2e   : > { %4432 = shalt.err (!%p4429_p10)
}
  0x2f   : > { %s5330_s27 = smov 256   ;;  %s5331_s29 = smov 16  }
  0x30   : > { %s5348_s8 = sld [smem:[#allocation23_spill]]  ;;  %s4593_s18 = smov [#allocation8]  }
  0x31   : > { %s395_s22 = sshll.u32 %s4593_s18, 4  ;;  %s396_s22 = int_to_ptr.vmem [resolvable:$true] %s395_s22 }
  0x32   : > { %s4444_s25 = scalar_lea.vmem %s396_s22, 4096  ;;  %p4452_p3 = scmp.lt.s32.totalorder %s396_s22, %s396_s22 }
  0x33   : > { %p4445_p1 = scmp.ne.s32.totalorder %s396_s22, %s4444_s25  ;;  %p4453_p7 = scmp.lt.s32.totalorder %s4444_s25, %s4444_s25 }
  0x35   : > { %p4447_p2 = pnand %p4445_p1, %p4383_p12  ;;  %p4454_p9 = por %p4453_p7, %p4452_p3 }
  0x36   : > { %3874 = dma.hbm_to_vmem [thread:$0]  (!%p4727_p11), %s5348_s8, 8192, %s418_s26, [#allocation10], %s5330_s27, %s5330_s27, %s5331_s29  }
  0x37   : > { %p4448_p6 = pneg %p4447_p2 }
  0x39   : > { %p4455_p13 = pnand %p4454_p9, %p4448_p6 }
  0x3b   : > { %4458 = shalt.err (!%p4455_p13)
}
  0x3c   : > { %s4594_s20 = smov 128   ;;  %s4595_s2 = smov 8  }
  0x3d   : > { %s5349_s4 = sld [smem:[#allocation22_spill]]  ;;  %s4596_s28 = smov [#allocation11]  }
  0x3e   : > { %s433_s18 = sshll.u32 %s4596_s28, 4  ;;  %s434_s18 = int_to_ptr.vmem [resolvable:$true] %s433_s18 }
  0x3f   : > { %s4470_s27 = scalar_lea.vmem %s434_s18, 8192  ;;  %p4478_p1 = scmp.lt.s32.totalorder %s434_s18, %s434_s18 }
  0x40   : > { %p4471_p0 = scmp.ne.s32.totalorder %s434_s18, %s4470_s27  ;;  %p4479_p2 = scmp.lt.s32.totalorder %s4470_s27, %s4470_s27 }
  0x42   : > { %p4473_p5 = pnand %p4471_p0, %p4383_p12  ;;  %p4480_p6 = por %p4479_p2, %p4478_p1 }
  0x43   : > { %3871 = dma.hbm_to_vmem [thread:$0]  (!%p4727_p11), %s5349_s4, 4096, %s396_s22, [#allocation7], %s4594_s20, %s4594_s20, %s4595_s2  }
  0x44   : > { %p4474_p10 = pneg %p4473_p5 }
  0x46   : > { %p4481_p3 = pnand %p4480_p6, %p4474_p10 }
  0x48   : > { %4484 = shalt.err (!%p4481_p3)
}
  0x49   : > { %s5350_s10 = sld [smem:[#allocation24_spill]]  ;;  %s4769_s27 = sadd.s32 1, %s4585_s16  }
  0x4a   : > { %s39_s22 = sadd.s32 1, %s4581_s15  ;;  %s36_s24 = ssub.s32 %s4585_s16, %s4769_s27 }
  0x4b   : > { %p46_p12 = scmp.ne.s32.totalorder %s4581_s15, %s4577_s30  ;;  %p37_p7 = scmp.eq.s32.totalorder %s36_s24, 0 }
  0x4c   : > { %p47_p9 = scmp.eq.s32.totalorder %s4585_s16, 0  ;;  %p5351_p13 = scmp.eq.s32.totalorder %s4699_s17, 1 }
  0x4d   : > { %p3890_p5 = scmp.lt.s32.totalorder %s4585_s16, 2  ;;  %s456_s23 = sand.u32 1, %s4581_s15  }
  0x4e   : > { %p4779_p0 = por %p5351_p13, %p46_p12  ;;  %p48_p10 = por %p47_p9, %p46_p12 }
  0x4f   : > { %3877 = dma.hbm_to_vmem [thread:$0]  (!%p4727_p11), %s5350_s10, 8192, %s434_s18, [#allocation10], %s4594_s20, %s4594_s20, %s4595_s2  }
  0x50   : > { %s5352_s29 = scalar_select %p4779_p0, 1, 0 }
  0x51   : > { %s4785_s26 = scalar_select %p37_p7, %s4581_s15, %s39_s22  }
  0x52   : > { %s3498_s28 = sshll.u32 %s456_s23, 6  ;;  %s3778_s2 = sshll.u32 %s4585_s16, 10 }
  0x53   : > { %5353 = sst [smem:[#allocation20_spill]] %s4785_s26  ;;  %s4792_s25 = scalar_lea.hbm %s5312_s0, %s3778_s2 }
  0x54   : > { %s460_s24 = scalar_lea.vmem [#allocation3], %s3498_s28  ;;  %p4796_p11 = pnand %p3890_p5, %p48_p10 }
  0x55   : > { %s468_s4 = sshll.u32 %s460_s24, 4  ;;  %s4800_s22 = scalar_lea.sflag [#allocation4], %s456_s23  ;;  %s4794_s4 = int_to_ptr.vmem [resolvable:$true] %s468_s4 }
  0x56   : > { %s4485_s10 = scalar_lea.hbm %s4792_s25, 1024  ;;  %p4487_p2 = pneg %p4796_p11 }
  0x57   : > { %p4486_p1 = scmp.ne.s32.totalorder %s4792_s25, %s4485_s10  ;;  %s4490_s28 = scalar_lea.hbm %s5312_s0, 2048 }
  0x58   : > { %p4491_p12 = scmp.lt.s32.totalorder %s4792_s25, %s5312_s0  ;;  %p4492_p7 = scmp.lt.s32.totalorder %s4490_s28, %s4485_s10 }
  0x59   : > { %p4488_p6 = pnand %p4487_p2, %p4486_p1 }
  0x5a   : > { %p4493_p9 = por %p4492_p7, %p4491_p12 }
  0x5b   : > { %p4489_p3 = pneg %p4488_p6 }
  0x5d   : > { %p4494_p13 = pnand %p4493_p9, %p4489_p3 }
  0x5f   : > { %4497 = shalt.err (!%p4494_p13)
}
  0x60   : > { %s4498_s23 = scalar_lea.vmem %s4794_s4, 1024  ;;  %s4597_s26 = smov [#allocation3]  }
  0x61   : > { %p4499_p5 = scmp.ne.s32.totalorder %s4794_s4, %s4498_s23  ;;  %s4503_s15 = sshll.u32 %s4597_s26, 4  ;;  %s4504_s15 = int_to_ptr.vmem [resolvable:$false] %s4503_s15 }
  0x62   : > { %s4505_s2 = scalar_lea.vmem %s4504_s15, 2048  ;;  %p4506_p6 = scmp.lt.s32.totalorder %s4794_s4, %s4504_s15 }
  0x63   : > { %p4501_p10 = pnand %p4499_p5, %p4487_p2  ;;  %p4507_p0 = scmp.lt.s32.totalorder %s4505_s2, %s4498_s23 }
  0x65   : > { %p4502_p1 = pneg %p4501_p10  ;;  %p4508_p4 = por %p4507_p0, %p4506_p6 }
  0x67   : > { %p4509_p8 = pnand %p4508_p4, %p4502_p1 }
  0x69   : > { %4512 = shalt.err (!%p4509_p8)
}
  0x6a   : > { %s5355_s10 = smov 16   ;;  %s5356_s20 = smov 256  }
  0x6b   : > { %3881 = dma.hbm_to_vmem [thread:$0]  (!%p4796_p11), %s4792_s25, 1024, %s4794_s4, %s4800_s22, %s5356_s20, %s5356_s20, %s5355_s10  }
  0x6c   : > { %p5357_p2 = scmp.ne.s32.totalorder %s5345_s21, 0 }
  0x6d   : > { %s4827_s26 = sand.u32 (!%p5357_p2), 1, %s4577_s30   ;;  %p5358_p4 = scmp.ne.s32.totalorder (!%p5357_p2), %s5342_s19, 0 }
  0x6e   : > { %488 = sbr.rel (%p5357_p2) target bundleno = 3923 (0xf53), region = 76  ;;  %s3503_s15 = sshll.u32 (!%p5357_p2), %s4827_s26, 6 }
  0x6f   : > { %s491_s28 = scalar_lea.sflag (!%p5357_p2), [#allocation4], %s4827_s26  ;;  %s4833_s8 = scalar_lea.vmem (!%p5357_p2), [#allocation3], %s3503_s15 }
  0x73   : > { %4556 = dma.done.wait (%p5358_p4), %s491_s28, 1024  }
  0x74   : > { %4558 = vsyncadd (%p5358_p4), %s491_s28, 4294966272  ;;  %p5359_p8 = scmp.eq.s32.totalorder %s4699_s17, 0 }
  0x76   : > { %4560 = dma.done.wait (%p5359_p8), [#allocation7], 16384   ;;  %p5360_p0 = pmov %p5359_p8 }
  0x78   : > { %4562 = vsyncadd (%p5360_p0), [#allocation7], 4294950912  ;;  %p5361_p11 = pmov %p5360_p0 }
  0x79   : > { %p5362_p3 = pmov %p5360_p0 }
  0x7a   : > { %4564 = dma.done.wait (%p5361_p11), [#allocation10], 16384  }
  0x7b   : > { %4566 = vsyncadd (%p5362_p3), [#allocation10], 4294950912  ;;  %v3942_v0 = vld [vmem:[#allocation6 + $0x15c] ss:$24 sps:$4 sm:$0xff]   ;;  %v3944_v1 = vld [vmem:[#allocation6 + $0x158] ss:$24 sps:$4 sm:$0xff]  }
  0x7c   : > { %1240 = vmatprep.subr.bf16.mxu1 %v3942_v0  ;;  %v3945_v2 = vld [vmem:[#allocation6 + $0x12c] ss:$24 sps:$4 sm:$0xff]   ;;  %v3947_v3 = vld [vmem:[#allocation6 + $0x128] ss:$24 sps:$4 sm:$0xff]   ;;  %v3951_v6 = vld [vmem:[#allocation6 + $0xfc] ss:$24 sps:$4 sm:$0xff]  }
  0x7d   : > { %1241 = vmatpush1.bf16.msra.mxu1 %v3944_v1  ;;  %v3948_v4 = vld [vmem:[#allocation6 + $0x154] ss:$24 sps:$4 sm:$0xff]   ;;  %v3950_v5 = vld [vmem:[#allocation6 + $0x150] ss:$24 sps:$4 sm:$0xff]   ;;  %v3954_v7 = vld [vmem:[#allocation6 + $0x124] ss:$24 sps:$4 sm:$0xff]  }
  0x7e   : > { %1242 = vmatprep.subr.bf16.mxu1 %v3945_v2  ;;  %1187 = vmatprep.subr.bf16.mxu0 %v3948_v4  ;;  %v3956_v8 = vld [vmem:[#allocation6 + $0x120] ss:$24 sps:$4 sm:$0xff]   ;;  %v3957_v10 = vld [vmem:[#allocation6 + $0xcc] ss:$24 sps:$4 sm:$0xff]   ;;  %v3962_v12 = vld [vmem:[#allocation6 + $0xf0] ss:$24 sps:$4 sm:$0xff]  }
  0x7f   : > { %1188 = vmatpush1.bf16.msra.mxu0 %v3950_v5  ;;  %v3953_v9 = vld [vmem:[#allocation6 + $0xf8] ss:$24 sps:$4 sm:$0xff]   ;;  %v3960_v11 = vld [vmem:[#allocation6 + $0xf4] ss:$24 sps:$4 sm:$0xff]   ;;  %v3959_v13 = vld [vmem:[#allocation6 + $0xc8] ss:$24 sps:$4 sm:$0xff]  }
  0x80   : > { %1189 = vmatprep.subr.bf16.mxu0 %v3954_v7  ;;  %v3966_v14 = vld [vmem:[#allocation6 + $0xc4] ss:$24 sps:$4 sm:$0xff]   ;;  %v3968_v16 = vld [vmem:[#allocation6 + $0xc0] ss:$24 sps:$4 sm:$0xff]   ;;  %v3972_v18 = vld [vmem:[#allocation6 + $0x94] ss:$24 sps:$4 sm:$0xff]  }
  0x81   : > { %1243 = vmatpush1.bf16.msra.mxu1 %v3947_v3  ;;  %v3963_v15 = vld [vmem:[#allocation6 + $0x9c] ss:$24 sps:$4 sm:$0xff]   ;;  %v3965_v17 = vld [vmem:[#allocation6 + $0x98] ss:$24 sps:$4 sm:$0xff]   ;;  %v3969_v19 = vld [vmem:[#allocation6 + $0x6c] ss:$24 sps:$4 sm:$0xff]  }
  0x82   : > { %1244 = vmatprep.subr.bf16.mxu1 %v3951_v6  ;;  %v3974_v20 = vld [vmem:[#allocation6 + $0x90] ss:$24 sps:$4 sm:$0xff]   ;;  %v3978_v22 = vld [vmem:[#allocation6 + $0x64] ss:$24 sps:$4 sm:$0xff]   ;;  %v3980_v24 = vld [vmem:[#allocation6 + $0x60] ss:$24 sps:$4 sm:$0xff]  }
  0x83   : > { %1190 = vmatpush1.bf16.msra.mxu0 %v3956_v8  ;;  %v3971_v21 = vld [vmem:[#allocation6 + $0x68] ss:$24 sps:$4 sm:$0xff]   ;;  %v3975_v23 = vld [vmem:[#allocation6 + $0x3c] ss:$24 sps:$4 sm:$0xff]   ;;  %v3977_v25 = vld [vmem:[#allocation6 + $0x38] ss:$24 sps:$4 sm:$0xff]  }
  0x84   : > { %1191 = vmatprep.subr.bf16.mxu0 %v3960_v11  ;;  %v3984_v26 = vld [vmem:[#allocation6 + $0x34] ss:$24 sps:$4 sm:$0xff]   ;;  %v3986_v28 = vld [vmem:[#allocation6 + $0x30] ss:$24 sps:$4 sm:$0xff]   ;;  %v3990_v30 = vld [vmem:[#allocation6 + $0x4] ss:$24 sps:$4 sm:$0xff]  }
  0x85   : > { %1245 = vmatpush1.bf16.msra.mxu1 %v3953_v9  ;;  %v3981_v27 = vld [vmem:[#allocation6 + $0xc] ss:$24 sps:$4 sm:$0xff]   ;;  %v3983_v29 = vld [vmem:[#allocation6 + $0x8] ss:$24 sps:$4 sm:$0xff]   ;;  %v3987_v31 = vld [vmem:[#allocation6 + $0x2dc] ss:$24 sps:$4 sm:$0xff]  }
  0x86   : > { %1246 = vmatprep.subr.bf16.mxu1 %v3957_v10  ;;  %v3992_v32 = vld [vmem:[#allocation6] ss:$24 sps:$4 sm:$0xff]   ;;  %v3996_v34 = vld [vmem:[#allocation6 + $0x2d4] ss:$24 sps:$4 sm:$0xff]   ;;  %v3998_v36 = vld [vmem:[#allocation6 + $0x2d0] ss:$24 sps:$4 sm:$0xff]  }
  0x87   : > { %1192 = vmatpush1.bf16.msra.mxu0 %v3962_v12  ;;  %v3989_v33 = vld [vmem:[#allocation6 + $0x2d8] ss:$24 sps:$4 sm:$0xff]   ;;  %v3993_v35 = vld [vmem:[#allocation6 + $0x2ac] ss:$24 sps:$4 sm:$0xff]   ;;  %v3995_v37 = vld [vmem:[#allocation6 + $0x2a8] ss:$24 sps:$4 sm:$0xff]  }
  0x88   : > { %1193 = vmatprep.subr.bf16.mxu0 %v3966_v14  ;;  %v4002_v38 = vld [vmem:[#allocation6 + $0x2a4] ss:$24 sps:$4 sm:$0xff]   ;;  %v4004_v40 = vld [vmem:[#allocation6 + $0x2a0] ss:$24 sps:$4 sm:$0xff]   ;;  %v4008_v42 = vld [vmem:[#allocation6 + $0x274] ss:$24 sps:$4 sm:$0xff]  }
  0x89   : > { %1247 = vmatpush1.bf16.msra.mxu1 %v3959_v13  ;;  %v3999_v39 = vld [vmem:[#allocation6 + $0x27c] ss:$24 sps:$4 sm:$0xff]   ;;  %v4001_v41 = vld [vmem:[#allocation6 + $0x278] ss:$24 sps:$4 sm:$0xff]   ;;  %v4005_v43 = vld [vmem:[#allocation6 + $0x24c] ss:$24 sps:$4 sm:$0xff]   ;;  %v677_v13 = vlaneseq }
  0x8a   : > { %1248 = vmatprep.subr.bf16.mxu1 %v3963_v15  ;;  %v568_v44 = vld [vmem:[%s4833_s8 + $0x8] sm:$0xff]  ;;  %v570_v45 = vld [vmem:[%s4833_s8 + $0x18] sm:$0xff]  ;;  %v567_v1 = vld [vmem:[%s4833_s8] sm:$0xff]  ;;  %v4598_v12 = vmov 0.0   ;;  %vm4599_vm0 = vmmov 0   ;;  %s3509_s21 = sshll.u32 %s4699_s17, 1 }
  0x8b   : > { %1194 = vmatpush1.bf16.msra.mxu0 %v3968_v16  ;;  %v4007_v46 = vld [vmem:[#allocation6 + $0x248] ss:$24 sps:$4 sm:$0xff]   ;;  %v576_v48 = vpack.c.bf16 %v570_v45, %v568_v44  ;;  %v4011_v49 = vld [vmem:[#allocation6 + $0x21c] ss:$24 sps:$4 sm:$0xff]   ;;  %v4013_v52 = vld [vmem:[#allocation6 + $0x218] ss:$24 sps:$4 sm:$0xff]  }
  0x8c   : > { %1195 = vmatprep.subr.bf16.mxu0 %v3972_v18  ;;  %v4010_v47 = vld [vmem:[#allocation6 + $0x270] ss:$24 sps:$4 sm:$0xff]   ;;  %v4014_v50 = vld [vmem:[#allocation6 + $0x244] ss:$24 sps:$4 sm:$0xff]   ;;  %v4016_v51 = vld [vmem:[#allocation6 + $0x240] ss:$24 sps:$4 sm:$0xff]  }
  0x8d   : > { %1249 = vmatpush1.bf16.msra.mxu1 %v3965_v17  ;;  %1272 = vmatprep.mubr.bf16.mxu1 %v576_v48  ;;  %v4020_v53 = vld [vmem:[#allocation6 + $0x214] ss:$24 sps:$4 sm:$0xff]   ;;  %v4022_v55 = vld [vmem:[#allocation6 + $0x210] ss:$24 sps:$4 sm:$0xff]   ;;  %v4026_v57 = vld [vmem:[#allocation6 + $0x1e4] ss:$24 sps:$4 sm:$0xff]  }
  0x8e   : > { %1250 = vmatprep.subr.bf16.mxu1 %v3969_v19  ;;  %1219 = vmatprep.mubr.bf16.mxu0 %v576_v48  ;;  %v4017_v54 = vld [vmem:[#allocation6 + $0x1ec] ss:$24 sps:$4 sm:$0xff]   ;;  %v4019_v56 = vld [vmem:[#allocation6 + $0x1e8] ss:$24 sps:$4 sm:$0xff]   ;;  %v4023_v58 = vld [vmem:[#allocation6 + $0x1bc] ss:$24 sps:$4 sm:$0xff]  }
  0x8f   : > { %1196 = vmatpush1.bf16.msra.mxu0 %v3974_v20  ;;  %v4028_v59 = vld [vmem:[#allocation6 + $0x1e0] ss:$24 sps:$4 sm:$0xff]   ;;  %v4032_v61 = vld [vmem:[#allocation6 + $0x1b4] ss:$24 sps:$4 sm:$0xff]   ;;  %v4034_v63 = vld [vmem:[#allocation6 + $0x1b0] ss:$24 sps:$4 sm:$0xff]  }
  0x90   : > { %1197 = vmatprep.subr.bf16.mxu0 %v3978_v22  ;;  %v4025_v60 = vld [vmem:[#allocation6 + $0x1b8] ss:$24 sps:$4 sm:$0xff]   ;;  %v4029_v62 = vld [vmem:[#allocation6 + $0x18c] ss:$24 sps:$4 sm:$0xff]   ;;  %v4031_v0 = vld [vmem:[#allocation6 + $0x188] ss:$24 sps:$4 sm:$0xff]  }
  0x91   : > { %1251 = vmatpush1.bf16.msra.mxu1 %v3971_v21  ;;  %v569_v2 = vld [vmem:[%s4833_s8 + $0x10] sm:$0xff]  ;;  %v4035_v3 = vld [vmem:[#allocation6 + $0x184] ss:$24 sps:$4 sm:$0xff]   ;;  %v4037_v4 = vld [vmem:[#allocation6 + $0x180] ss:$24 sps:$4 sm:$0xff]   ;;  %v4873_v14 = vshrl.u32 %v677_v13, 7 }
  0x92   : > { %1252 = vmatprep.subr.bf16.mxu1 %v3975_v23  ;;  %v4851_v5 = vpack.c.bf16 %v569_v2, %v567_v1  ;;  %v572_v6 = vld [vmem:[%s4833_s8 + $0x28] sm:$0xff]  ;;  %v574_v7 = vld [vmem:[%s4833_s8 + $0x38] sm:$0xff]  ;;  %v4860_v9 = vld [vmem:[%s4833_s8 + $0x20] sm:$0xff]  ;;  %p561_p12 = scmp.lt.s32.totalorder %s3509_s21, 3  ;;  %vm1405_vm1 = vcmask 130048   ;;  %s5252_s23 = scalar_lea.vmem [#allocation12], %s3503_s15 }
  0x93   : > { %1198 = vmatpush1.bf16.msra.mxu0 %v3980_v24  ;;  %v4857_v8 = vpack.c.bf16 %v574_v7, %v572_v6  ;;  %v573_v10 = vld [vmem:[%s4833_s8 + $0x30] sm:$0xff]  ;;  %v687_v15 = vsub.s32 2, %v4873_v14  ;;  %v4879_v16 = vld [vmem:[%s5315_s3] sm:$0x3f]  ;;  %v691_v17 = vsub.s32 3, %v4873_v14  ;;  %v4886_v20 = vsub.s32 0, %v4873_v14 }
  0x94   : > { %1199 = vmatprep.subr.bf16.mxu0 %v3984_v26  ;;  %v4864_v11 = vpack.c.bf16 %v573_v10, %v4860_v9  ;;  %v4038_v44 = vld [vmem:[#allocation6 + $0x160] ss:$24 sps:$4 sm:$0xff]   ;;  %v4040_v45 = vld [vmem:[#allocation6 + $0x164] ss:$24 sps:$4 sm:$0xff]   ;;  %v4073_v2 = vld [vmem:[#allocation6 + $0x254] ss:$24 sps:$4 sm:$0xff]  }
  0x95   : > { %1253 = vmatpush1.bf16.msra.mxu1 %v3977_v25  ;;  %v688_v19 = vrot.slane %v4879_v16, %v687_v15  ;;  %v4891_v22 = vrot.slane %v4879_v16, %v691_v17  ;;  %v4068_v1 = vld [vmem:[#allocation6 + $0x280] ss:$24 sps:$4 sm:$0xff]   ;;  %v4079_v7 = vld [vmem:[#allocation6 + $0x1f4] ss:$24 sps:$4 sm:$0xff]   ;;  %v4077_v10 = vld [vmem:[#allocation6 + $0x1f0] ss:$24 sps:$4 sm:$0xff]  }
  0x96   : > { %1254 = vmatprep.subr.bf16.mxu1 %v3981_v27  ;;  %v4074_v6 = vld [vmem:[#allocation6 + $0x220] ss:$24 sps:$4 sm:$0xff]   ;;  %v4082_v13 = vld [vmem:[#allocation6 + $0x1c4] ss:$24 sps:$4 sm:$0xff]   ;;  %s5374_s21 = smov (!%p561_p12, %s3509_s21), 3  ;;  %s3780_s15 = sshll.u32 %s4699_s17, 10 }
  0x97   : > { %1200 = vmatpush1.bf16.msra.mxu0 %v3986_v28  ;;  %s4927_s18 = scalar_lea.vmem %s5313_s1, %s5374_s21  ;;  %s3371_s2 = sshll.u32 %s5252_s23, 4  ;;  %s5267_s2 = int_to_ptr.vmem [resolvable:$true] %s3371_s2 }
  0x98   : > { %1201 = vmatprep.subr.bf16.mxu0 %v3990_v30  ;;  %s5265_s28 = scalar_lea.hbm %s5326_s14, %s3780_s15  ;;  %s3357_s17 = scalar_lea.sflag [#allocation5], %s4827_s26 }
  0x99   : > { %1255 = vmatpush1.bf16.msra.mxu1 %v3983_v29  ;;  %v4897_v29 = vrot.slane %v4879_v16, %v4886_v20  ;;  %p5363_p9 = scmp.ne.s32.totalorder %s5352_s29, 0  ;;  %s4600_s4 = smov [#allocation12]  }
  0x9a   : > { %1256 = vmatprep.subr.bf16.mxu1 %v3987_v31  ;;  %s4517_s19 = sshll.u32 %s4600_s4, 4  ;;  %s4518_s19 = int_to_ptr.vmem [resolvable:$false] %s4517_s19 }
  0x9b   : > { %1202 = vmatpush1.bf16.msra.mxu0 %v3992_v32  ;;  %s4519_s21 = scalar_lea.vmem %s4518_s19, 2048  ;;  %p4520_p10 = scmp.lt.s32.totalorder %s5267_s2, %s4518_s19 }
  0x9c   : > { %1203 = vmatprep.subr.bf16.mxu0 %v3996_v34 }
  0x9d   : > { %1257 = vmatpush2.bf16.msra.mxu1 %v3989_v33 }
  0x9e   : > { %1258 = vmatprep.subr.bf16.mxu1 %v3993_v35 }
  0x9f   : > { %1204 = vmatpush2.bf16.msra.mxu0 %v3998_v36 }
  0xa0   : > { %1205 = vmatprep.subr.bf16.mxu0 %v4002_v38 }
  0xa1   : > { %1259 = vmatpush2.bf16.msra.mxu1 %v3995_v37 }
  0xa2   : > { %1260 = vmatprep.subr.bf16.mxu1 %v3999_v39 }
  0xa3   : > { %1206 = vmatpush2.bf16.msra.mxu0 %v4004_v40 }
  0xa4   : > { %1207 = vmatprep.subr.bf16.mxu0 %v4008_v42 }
  0xa5   : > { %1261 = vmatpush2.bf16.msra.mxu1 %v4001_v41 }
  0xa6   : > { %1262 = vmatprep.subr.bf16.mxu1 %v4005_v43 }
  0xa7   : > { %1208 = vmatpush2.bf16.msra.mxu0 %v4010_v47  ;;  %v4041_v47 = vld [vmem:[#allocation6 + $0x130] ss:$24 sps:$4 sm:$0xff]  }
  0xa8   : > { %1209 = vmatprep.subr.bf16.mxu0 %v4014_v50  ;;  %v4049_v50 = vld [vmem:[#allocation6 + $0xd4] ss:$24 sps:$4 sm:$0xff]  }
  0xa9   : > { %1263 = vmatpush2.bf16.msra.mxu1 %v4007_v46  ;;  %v4043_v46 = vld [vmem:[#allocation6 + $0x134] ss:$24 sps:$4 sm:$0xff]  }
  0xaa   : > { %1264 = vmatprep.subr.bf16.mxu1 %v4011_v49  ;;  %v4044_v49 = vld [vmem:[#allocation6 + $0x100] ss:$24 sps:$4 sm:$0xff]  }
  0xab   : > { %1210 = vmatpush2.bf16.msra.mxu0 %v4016_v51  ;;  %v4047_v51 = vld [vmem:[#allocation6 + $0xd0] ss:$24 sps:$4 sm:$0xff]  }
  0xac   : > { %1211 = vmatprep.subr.bf16.mxu0 %v4020_v53  ;;  %v4050_v53 = vld [vmem:[#allocation6 + $0xa0] ss:$24 sps:$4 sm:$0xff]  }
  0xad   : > { %1265 = vmatpush2.bf16.msra.mxu1 %v4013_v52  ;;  %v4052_v52 = vld [vmem:[#allocation6 + $0xa4] ss:$24 sps:$4 sm:$0xff]  }
  0xae   : > { %1266 = vmatprep.subr.bf16.mxu1 %v4017_v54  ;;  %v4055_v54 = vld [vmem:[#allocation6 + $0x74] ss:$24 sps:$4 sm:$0xff]  }
  0xaf   : > { %1212 = vmatpush2.bf16.msra.mxu0 %v4022_v55  ;;  %v4053_v55 = vld [vmem:[#allocation6 + $0x70] ss:$24 sps:$4 sm:$0xff]  }
  0xb0   : > { %1213 = vmatprep.subr.bf16.mxu0 %v4026_v57  ;;  %v4056_v57 = vld [vmem:[#allocation6 + $0x40] ss:$24 sps:$4 sm:$0xff]  }
  0xb1   : > { %1267 = vmatpush2.bf16.msra.mxu1 %v4019_v56  ;;  %v4058_v56 = vld [vmem:[#allocation6 + $0x44] ss:$24 sps:$4 sm:$0xff]  }
  0xb2   : > { %1268 = vmatprep.subr.bf16.mxu1 %v4023_v58  ;;  %v4061_v58 = vld [vmem:[#allocation6 + $0x14] ss:$24 sps:$4 sm:$0xff]  }
  0xb3   : > { %1214 = vmatpush2.bf16.msra.mxu0 %v4028_v59  ;;  %v4059_v59 = vld [vmem:[#allocation6 + $0x10] ss:$24 sps:$4 sm:$0xff]  }
  0xb4   : > { %1215 = vmatprep.subr.bf16.mxu0 %v4032_v61  ;;  %v4062_v61 = vld [vmem:[#allocation6 + $0x2e0] ss:$24 sps:$4 sm:$0xff]  }
  0xb5   : > { %1269 = vmatpush2.bf16.msra.mxu1 %v4025_v60  ;;  %v4064_v60 = vld [vmem:[#allocation6 + $0x2e4] ss:$24 sps:$4 sm:$0xff]  }
  0xb6   : > { %1270 = vmatprep.subr.bf16.mxu1 %v4029_v62  ;;  %v4067_v62 = vld [vmem:[#allocation6 + $0x2b4] ss:$24 sps:$4 sm:$0xff]  }
  0xb7   : > { %1216 = vmatpush2.bf16.msra.mxu0 %v4034_v63  ;;  %v4065_v63 = vld [vmem:[#allocation6 + $0x2b0] ss:$24 sps:$4 sm:$0xff]  }
  0xb8   : > { %1217 = vmatprep.subr.bf16.mxu0 %v4035_v3  ;;  %v4071_v3 = vld [vmem:[#allocation6 + $0x250] ss:$24 sps:$4 sm:$0xff]  }
  0xb9   : > { %1271 = vmatpush2.bf16.msra.mxu1 %v4031_v0  ;;  %v4070_v0 = vld [vmem:[#allocation6 + $0x284] ss:$24 sps:$4 sm:$0xff]  }
  0xba   : > { %3797 = vmatprep.subr.bf16.mxu1 %v4598_v12 }
  0xbb   : > { %1218 = vmatpush2.bf16.msra.mxu0 %v4037_v4  ;;  %v4076_v4 = vld [vmem:[#allocation6 + $0x224] ss:$24 sps:$4 sm:$0xff]  }
  0xbc   : > { %1273 = vmatmul.mubr.bf16.vlgmr.msra.gmra.mxu1 %v4851_v5  ;;  %1293 = vmatprep.subr.bf16.mxu0 %v4040_v45 }
  0xbd   : > { %1282 = vmatprep.mubr.bf16.mxu1 %v4857_v8 }
  0xbe   : > { %1220 = vmatmul.mubr.bf16.vlgmr.msra.gmra.mxu0 %v4851_v5 }
  0xbf   : > { %1229 = vmatprep.mubr.bf16.mxu0 %v4857_v8  ;;  %1294 = vmatpush1.bf16.msra.mxu0 %v4038_v44 }
  0xc0   : > { %1295 = vmatprep.subr.bf16.mxu0 %v4043_v46 }
  0xc3   : > { %1296 = vmatpush1.bf16.msra.mxu0 %v4041_v47 }
  0xc4   : > { %1283 = vmatmul.mubr.bf16.gmra.mxu1 %v4864_v11 }
  0xc5   : > { %3799 = vmatprep.mubr.msk.bf16.mxu1 %vm4599_vm0, %v4598_v12 }
  0xc6   : > { %1230 = vmatmul.mubr.bf16.gmra.mxu0 %v4864_v11 }
  0xc7   : > { %1325 = vmatprep.mubr.bf16.mxu0 %v576_v48  ;;  %v4046_v48 = vld [vmem:[#allocation6 + $0x104] ss:$24 sps:$4 sm:$0xff]  }
  0xc8   : > { %1297 = vmatprep.subr.bf16.mxu0 %v4046_v48 }
  0xc9   : > { %1298 = vmatpush1.bf16.msra.mxu0 %v4044_v49 }
  0xca   : > { %1299 = vmatprep.subr.bf16.mxu0 %v4049_v50 }
  0xcd   : > { %1300 = vmatpush1.bf16.msra.mxu0 %v4047_v51 }
  0xce   : > { %1301 = vmatprep.subr.bf16.mxu0 %v4052_v52  ;;  %v4942_v52 = vsub.s32 1, %v4873_v14 }
  0xd1   : > { %1302 = vmatpush1.bf16.msra.mxu0 %v4050_v53 }
  0xd2   : > { %1303 = vmatprep.subr.bf16.mxu0 %v4055_v54 }
  0xd5   : > { %1304 = vmatpush1.bf16.msra.mxu0 %v4053_v55  ;;  %v684_v55 = vrot.slane %v4879_v16, %v4942_v52 }
  0xd6   : > { %1305 = vmatprep.subr.bf16.mxu0 %v4058_v56 }
  0xd9   : > { %1306 = vmatpush1.bf16.msra.mxu0 %v4056_v57 }
  0xda   : > { %1307 = vmatprep.subr.bf16.mxu0 %v4061_v58 }
  0xdd   : > { %1308 = vmatpush1.bf16.msra.mxu0 %v4059_v59 }
  0xde   : > { %1309 = vmatprep.subr.bf16.mxu0 %v4064_v60 }
  0xe1   : > { %1310 = vmatpush2.bf16.msra.mxu0 %v4062_v61  ;;  %v695_v61 = vsub.s32 4, %v4873_v14 }
  0xe2   : > { %1311 = vmatprep.subr.bf16.mxu0 %v4067_v62 }
  0xe5   : > { %1312 = vmatpush2.bf16.msra.mxu0 %v4065_v63 }
  0xe6   : > { %1313 = vmatprep.subr.bf16.mxu0 %v4070_v0  ;;  %v4960_v0 = vrot.slane %v4879_v16, %v695_v61 }
  0xe9   : > { %1314 = vmatpush2.bf16.msra.mxu0 %v4068_v1 }
  0xea   : > { %1315 = vmatprep.subr.bf16.mxu0 %v4073_v2 }
  0xed   : > { %1316 = vmatpush2.bf16.msra.mxu0 %v4071_v3 }
  0xee   : > { %1317 = vmatprep.subr.bf16.mxu0 %v4076_v4 }
  0xf1   : > { %1318 = vmatpush2.bf16.msra.mxu0 %v4074_v6 }
  0xf2   : > { %1319 = vmatprep.subr.bf16.mxu0 %v4079_v7 }
  0xf5   : > { %1320 = vmatpush2.bf16.msra.mxu0 %v4077_v10 }
  0xf6   : > { %1321 = vmatprep.subr.bf16.mxu0 %v4082_v13 }
 0x17c   : > { %v1274_v18 = vpop.f32.mrf.mxu1 }
 0x17d   : > { %v1275_v25 = vadd.f32 %v1274_v18, %v688_v19  ;;  %v4080_v18 = vld [vmem:[#allocation6 + $0x1c0] ss:$24 sps:$4 sm:$0xff]  }
 0x17e   : > { %v1276_v21 = vpop.f32.mrf.mxu1  ;;  %v1221_v23 = vpop.f32.mrf.mxu0  ;;  %1322 = vmatpush2.bf16.msra.mxu0 %v4080_v18 }
 0x17f   : > { %v4900_v30 = vadd.f32 %v1276_v21, %v4891_v22  ;;  %v1222_v35 = vadd.f32 %v1221_v23, %v4897_v29  ;;  %v4083_v21 = vld [vmem:[#allocation6 + $0x190] ss:$24 sps:$4 sm:$0xff]   ;;  %v1358_v23 = vld [vmem:[%s4927_s18] sm:$0x1] }
 0x180   : > { %v1278_v24 = vpop.f32.mrf.mxu1  ;;  %v4893_v27 = vpop.f32.mrf.mxu0 }
 0x181   : > { %v1279_v26 = vadd.f32 %v1278_v24, %v688_v19  ;;  %v1359_v24 = vunpack.c.l.bf16 %v1358_v23 }
 0x182   : > { %v1280_v28 = vpop.f32.mrf.mxu1  ;;  %v1225_v34 = vpop.f32.mrf.mxu0 }
 0x183   : > { %v1350_v31 = vpack.c.bf16 %v1279_v26, %v1275_v25  ;;  %v4903_v32 = vadd.f32 %v1280_v28, %v4891_v22  ;;  %v1226_v36 = vadd.f32 %v1225_v34, %v4897_v29  ;;  %v4931_v25 = vrot.slane %v1359_v24, %v4886_v20 }
 0x184   : > { %v1284_v38 = vpop.f32.mrf.mxu1  ;;  %v1227_v51 = vpop.f32.mrf.mxu0 }
 0x185   : > { %v1351_v33 = vpack.c.bf16 %v4903_v32, %v4900_v30  ;;  %3798 = vmatpush3.bf16.xpose.msra.mxu1 %v1350_v31  ;;  %v1346_v37 = vpack.c.bf16 %v1226_v36, %v1222_v35  ;;  %v4914_v40 = vadd.f32 %v1284_v38, %v688_v19 }
 0x186   : > { %3803 = vmatprep.subr.bf16.mxu1 %v4598_v12  ;;  %v4912_v39 = vpop.f32.mrf.mxu1  ;;  %v1231_v53 = vpop.f32.mrf.mxu0 }
 0x187   : > { %v4947_v56 = vadd.f32 %v1231_v53, %v4897_v29 }
 0x188   : > { %v1288_v41 = vpop.f32.mrf.mxu1  ;;  %v1233_v54 = vpop.f32.mrf.mxu0 }
 0x189   : > { %v4916_v42 = vadd.f32 %v1288_v41, %v688_v19  ;;  %v4085_v19 = vld [vmem:[#allocation6 + $0x194] ss:$24 sps:$4 sm:$0xff]   ;;  %v4949_v58 = vadd.f32 %v1233_v54, %v684_v55 }
 0x18a   : > { %1323 = vmatprep.subr.bf16.mxu0 %v4085_v19  ;;  %v4933_v26 = vpop.f32.mrf.mxu1  ;;  %v1235_v57 = vpop.f32.mrf.mxu0 }
 0x18b   : > { %v1352_v43 = vpack.c.bf16 %v4916_v42, %v4914_v40  ;;  %1324 = vmatpush2.bf16.msra.mxu0 %v4083_v21  ;;  %v4952_v59 = vadd.f32 %v1235_v57, %v4897_v29  ;;  %v699_v21 = vsub.s32 5, %v4873_v14  ;;  %v3608_v40 = vld [vmem:[%s4927_s18 + $0x1] sm:$0x1] }
 0x18c   : > { %3800 = vmatmul.mubr.bf16.vlgmr.msra.gmra.mxu1 %v1346_v37  ;;  %v1237_v60 = vpop.f32.mrf.mxu0 }
 0x18d   : > { %3805 = vmatprep.mubr.msk.bf16.mxu1 %vm4599_vm0, %v4598_v12  ;;  %v4955_v62 = vadd.f32 %v1237_v60, %v684_v55  ;;  %v1348_v63 = vpack.c.bf16 %v4952_v59, %v4947_v56 }
 0x18e   : > { %1326 = vmatmul.mubr.bf16.vlgmr.msra.gmra.mxu0 %v4851_v5 }
 0x18f   : > { %1335 = vmatprep.mubr.bf16.mxu0 %v4857_v8  ;;  %v1349_v2 = vpack.c.bf16 %v4955_v62, %v4949_v58 }
 0x196   : > { %1336 = vmatmul.mubr.bf16.gmra.mxu0 %v4864_v11 }
 0x24c   : > { %v1398_v5 = vpop.f32.mrf.mxu1 }
 0x24d   : > { %v1399_v8 = vadd.f32 %v1398_v5, %v4931_v25 }
 0x24e   : > { %v3801_v11 = vpop.f32.mrf.mxu1  ;;  %v1327_v1 = vpop.f32.mrf.mxu0 }
 0x24f   : > { %v1406_v28 = vsel %vm1405_vm1, %v1399_v8, -inf  ;;  %v1328_v4 = vadd.f32 %v1327_v1, %v4960_v0 }
 0x250   : > { %1407 = vmax.xlane.f32.xlu0 %v1406_v28  ;;  %v1401_v31 = vpop.f32.mrf.mxu1  ;;  %v1329_v3 = vpop.f32.mrf.mxu0  ;;  %v1224_v28 = vadd.f32 %v4893_v27, %v684_v55 }
 0x251   : > { %v1402_v34 = vadd.f32 %v1401_v31, %v4931_v25  ;;  %v1228_v31 = vadd.f32 %v1227_v51, %v684_v55 }
 0x252   : > { %v3802_v35 = vpop.f32.mrf.mxu1  ;;  %v1331_v29 = vpop.f32.mrf.mxu0 }
 0x253   : > { %v1409_v36 = vsel %vm1405_vm1, %v1402_v34, -inf  ;;  %v1332_v6 = vadd.f32 %v1331_v29, %v4960_v0  ;;  %v1347_v35 = vpack.c.bf16 %v1228_v31, %v1224_v28  ;;  %v4091_v29 = vld [vmem:[#allocation8 + $0x64] ss:$8 sps:$4 sm:$0xff]   ;;  %v4107_v31 = vld [vmem:[#allocation8] ss:$8 sps:$4 sm:$0xff]  }
 0x254   : > { %1410 = vmax.xlane.f32.xlu0 %v1409_v36  ;;  %v1333_v11 = vpop.f32.mrf.mxu0  ;;  %v4109_v28 = vld [vmem:[#allocation8 + $0x4] ss:$8 sps:$4 sm:$0xff]  }
 0x255   : > { %v1354_v7 = vpack.c.bf16 %v1332_v6, %v1328_v4  ;;  %v4088_v4 = vld [vmem:[#allocation8 + $0x74] ss:$8 sps:$4 sm:$0xff]   ;;  %v4089_v6 = vld [vmem:[#allocation8 + $0x60] ss:$8 sps:$4 sm:$0xff]  }
 0x256   : > { %2028 = vmatprep.subr.bf16.mxu0 %v4088_v4 }
 0x257   : > { %3804 = vmatpush3.bf16.msra.mxu1 %v1354_v7  ;;  %v4094_v7 = vld [vmem:[#allocation8 + $0x54] ss:$8 sps:$4 sm:$0xff]  }
 0x258   : > { %3809 = vmatprep.subr.bf16.mxu1 %v4598_v12 }
 0x2d9   : > { %v1408_v37 = vpop.xlane.xlu0 %1407 }
 0x2da   : > { %v1412_v38 = vsub.f32 %v1399_v8, %v1408_v37  ;;  %v4969_v8 = vrot.slane %v4879_v16, %v699_v21  ;;  %v4098_v21 = vld [vmem:[#allocation8 + $0x30] ss:$8 sps:$4 sm:$0xff]  }
 0x2dc   : > { %v1414_v41 = vmul.f32 1.442695, %v1412_v38  ;;  %v1334_v16 = vadd.f32 %v1333_v11, %v4969_v8  ;;  %v4104_v11 = vld [vmem:[#allocation8 + $0x10] ss:$8 sps:$4 sm:$0xff]  }
 0x2dd   : > { %v1411_v44 = vpop.xlane.xlu0 %1410 }
 0x2de   : > { %4326 = vpow2.f32 %v1414_v41  ;;  %v1413_v45 = vsub.f32 %v1402_v34, %v1411_v44  ;;  %v1330_v34 = vadd.f32 %v1329_v3, %v4969_v8  ;;  %v4086_v3 = vld [vmem:[#allocation8 + $0x70] ss:$8 sps:$4 sm:$0xff]  }
 0x2df   : > { %2029 = vmatpush1.bf16.msra.mxu0 %v4086_v3 }
 0x2e0   : > { %v1416_v46 = vmul.f32 1.442695, %v1413_v45  ;;  %v1355_v36 = vpack.c.bf16 %v1334_v16, %v1330_v34  ;;  %2030 = vmatprep.subr.bf16.mxu0 %v4091_v29  ;;  %v4112_v34 = vld [vmem:[#allocation8 + $0xf4] ss:$8 sps:$4 sm:$0xff]   ;;  %v4110_v16 = vld [vmem:[#allocation8 + $0xf0] ss:$8 sps:$4 sm:$0xff]  }
 0x2e2   : > { %4328 = vpow2.f32 %v1416_v46 }
 0x2e3   : > { %2031 = vmatpush1.bf16.msra.mxu0 %v4089_v6 }
 0x2e4   : > { %2032 = vmatprep.subr.bf16.mxu0 %v4094_v7 }
 0x2eb   : > { %v4327_v47 = vpop.eup %4326 }
 0x2ec   : > { %v1418_v48 = vsel %vm1405_vm1, %v4327_v47, 0.0 }
 0x2ed   : > { %1419 = vadd.xlane.f32.xlu1 %v1418_v48 }
 0x2ef   : > { %v4329_v49 = vpop.eup %4328 }
 0x2f0   : > { %v1421_v50 = vsel %vm1405_vm1, %v4329_v49, 0.0 }
 0x2f1   : > { %1422 = vadd.xlane.f32.xlu1 %v1421_v50 }
 0x376   : > { %v1420_v10 = vpop.xlane.xlu1 %1419 }
 0x377   : > { %4330 = vrcp.f32 %v1420_v10  ;;  %v4092_v10 = vld [vmem:[#allocation8 + $0x50] ss:$8 sps:$4 sm:$0xff]  }
 0x378   : > { %2033 = vmatpush1.bf16.msra.mxu0 %v4092_v10 }
 0x37a   : > { %v1423_v13 = vpop.xlane.xlu1 %1422 }
 0x37b   : > { %4332 = vrcp.f32 %v1423_v13  ;;  %v4097_v13 = vld [vmem:[#allocation8 + $0x44] ss:$8 sps:$4 sm:$0xff]  }
 0x37c   : > { %2034 = vmatprep.subr.bf16.mxu0 %v4097_v13 }
 0x384   : > { %v4331_v18 = vpop.eup %4330 }
 0x385   : > { %v1426_v23 = vmul.f32 %v4331_v18, %v4327_v47  ;;  %v4095_v18 = vld [vmem:[#allocation8 + $0x40] ss:$8 sps:$4 sm:$0xff]  }
 0x386   : > { %2035 = vmatpush1.bf16.msra.mxu0 %v4095_v18 }
 0x388   : > { %v4333_v19 = vpop.eup %4332 }
 0x389   : > { %v1427_v24 = vmul.f32 %v4333_v19, %v4329_v49  ;;  %v4100_v19 = vld [vmem:[#allocation8 + $0x34] ss:$8 sps:$4 sm:$0xff]  }
 0x38a   : > { %2036 = vmatprep.subr.bf16.mxu0 %v4100_v19 }
 0x38b   : > { %v1428_v5 = vpack.c.bf16 %v1427_v24, %v1426_v23  ;;  %v4103_v23 = vld [vmem:[#allocation8 + $0x24] ss:$8 sps:$4 sm:$0xff]   ;;  %2037 = vmatpush1.bf16.msra.mxu0 %v4098_v21  ;;  %v4101_v24 = vld [vmem:[#allocation8 + $0x20] ss:$8 sps:$4 sm:$0xff]   ;;  %v1337_v21 = vpop.f32.mrf.mxu0 }
 0x38c   : > { %2038 = vmatprep.subr.bf16.mxu0 %v4103_v23 }
 0x38d   : > { %3806 = vmatmul.mubr.msk.bf16.vlgmr.msra.gmra.mxu1 %vm1405_vm1, %v1428_v5  ;;  %v4106_v5 = vld [vmem:[#allocation8 + $0x14] ss:$8 sps:$4 sm:$0xff]   ;;  %v1339_v23 = vpop.f32.mrf.mxu0 }
 0x38e   : > { %3810 = vmatpush3.bf16.xpose.msra.mxu1 %v1351_v33  ;;  %3811 = vmatprep.mubr.msk.bf16.mxu1 %vm4599_vm0, %v4598_v12 }
 0x38f   : > { %3815 = vmatprep.subr.bf16.mxu1 %v4598_v12  ;;  %2039 = vmatpush1.bf16.msra.mxu0 %v4101_v24  ;;  %v1338_v24 = vadd.f32 %v1337_v21, %v4960_v0 }
 0x390   : > { %2040 = vmatprep.subr.bf16.mxu0 %v4106_v5  ;;  %v1341_v5 = vpop.f32.mrf.mxu0 }
 0x393   : > { %2041 = vmatpush1.bf16.msra.mxu0 %v4104_v11 }
 0x394   : > { %2042 = vmatprep.subr.bf16.mxu0 %v4109_v28 }
 0x395   : > { %3812 = vmatmul.mubr.bf16.vlgmr.msra.gmra.mxu1 %v1347_v35  ;;  %v4115_v35 = vld [vmem:[#allocation8 + $0xe4] ss:$8 sps:$4 sm:$0xff]  }
 0x396   : > { %3816 = vmatpush3.bf16.msra.mxu1 %v1355_v36  ;;  %3817 = vmatprep.mubr.msk.bf16.mxu1 %vm4599_vm0, %v4598_v12  ;;  %v4113_v36 = vld [vmem:[#allocation8 + $0xe0] ss:$8 sps:$4 sm:$0xff]  }
 0x397   : > { %3821 = vmatprep.subr.bf16.mxu1 %v4598_v12  ;;  %2043 = vmatpush1.bf16.msra.mxu0 %v4107_v31 }
 0x398   : > { %2044 = vmatprep.subr.bf16.mxu0 %v4112_v34 }
 0x39b   : > { %2045 = vmatpush2.bf16.msra.mxu0 %v4110_v16 }
 0x39c   : > { %2046 = vmatprep.subr.bf16.mxu0 %v4115_v35 }
 0x39f   : > { %2047 = vmatpush2.bf16.msra.mxu0 %v4113_v36 }
 0x44d   : > { %v4984_v30 = vpop.f32.mrf.mxu1 }
 0x44f   : > { %v3807_v32 = vpop.f32.mrf.mxu1 }
 0x450   : > { %v4118_v32 = vld [vmem:[#allocation8 + $0xd4] ss:$8 sps:$4 sm:$0xff]  }
 0x451   : > { %v4986_v27 = vpop.f32.mrf.mxu1  ;;  %2048 = vmatprep.subr.bf16.mxu0 %v4118_v32 }
 0x452   : > { %v1820_v33 = vpack.c.bf16 %v4986_v27, %v4984_v30  ;;  %v1342_v30 = vadd.f32 %v1341_v5, %v4960_v0 }
 0x453   : > { %v3808_v37 = vpop.f32.mrf.mxu1 }
 0x454   : > { %v4116_v37 = vld [vmem:[#allocation8 + $0xd0] ss:$8 sps:$4 sm:$0xff]   ;;  %v1356_v27 = vpack.c.bf16 %v1342_v30, %v1338_v24 }
 0x455   : > { %v1509_v38 = vpop.f32.mrf.mxu1  ;;  %2049 = vmatpush2.bf16.msra.mxu0 %v4116_v37 }
 0x456   : > { %v1510_v41 = vadd.f32 %v1509_v38, %v4931_v25  ;;  %v4121_v38 = vld [vmem:[#allocation8 + $0xc4] ss:$8 sps:$4 sm:$0xff]  }
 0x457   : > { %v3813_v44 = vpop.f32.mrf.mxu1  ;;  %2050 = vmatprep.subr.bf16.mxu0 %v4121_v38 }
 0x458   : > { %v1516_v45 = vsel %vm1405_vm1, %v1510_v41, -inf  ;;  %v4124_v44 = vld [vmem:[#allocation8 + $0xb4] ss:$8 sps:$4 sm:$0xff]  }
 0x459   : > { %1517 = vmax.xlane.f32.xlu0 %v1516_v45  ;;  %v1512_v46 = vpop.f32.mrf.mxu1  ;;  %v4122_v45 = vld [vmem:[#allocation8 + $0xb0] ss:$8 sps:$4 sm:$0xff]  }
 0x45a   : > { %v1513_v47 = vadd.f32 %v1512_v46, %v4931_v25  ;;  %v4127_v46 = vld [vmem:[#allocation8 + $0xa4] ss:$8 sps:$4 sm:$0xff]  }
 0x45b   : > { %v3814_v48 = vpop.f32.mrf.mxu1 }
 0x45c   : > { %v1519_v49 = vsel %vm1405_vm1, %v1513_v47, -inf }
 0x45d   : > { %1520 = vmax.xlane.f32.xlu1 %v1519_v49 }
 0x4e2   : > { %v1518_v50 = vpop.xlane.xlu0 %1517 }
 0x4e3   : > { %v1522_v51 = vsub.f32 %v1510_v41, %v1518_v50  ;;  %v4119_v41 = vld [vmem:[#allocation8 + $0xc0] ss:$8 sps:$4 sm:$0xff]  }
 0x4e4   : > { %2051 = vmatpush2.bf16.msra.mxu0 %v4119_v41 }
 0x4e5   : > { %v1524_v53 = vmul.f32 1.442695, %v1522_v51  ;;  %2052 = vmatprep.subr.bf16.mxu0 %v4124_v44 }
 0x4e6   : > { %v1521_v54 = vpop.xlane.xlu1 %1520 }
 0x4e7   : > { %4334 = vpow2.f32 %v1524_v53  ;;  %v1523_v55 = vsub.f32 %v1513_v47, %v1521_v54  ;;  %v4125_v47 = vld [vmem:[#allocation8 + $0xa0] ss:$8 sps:$4 sm:$0xff]  }
 0x4e8   : > { %2053 = vmatpush2.bf16.msra.mxu0 %v4122_v45  ;;  %v1287_v45 = vadd.f32 %v4912_v39, %v4891_v22 }
 0x4e9   : > { %v1526_v57 = vmul.f32 1.442695, %v1523_v55  ;;  %2054 = vmatprep.subr.bf16.mxu0 %v4127_v46  ;;  %v1291_v46 = vadd.f32 %v4933_v26, %v4891_v22 }
 0x4eb   : > { %4336 = vpow2.f32 %v1526_v57  ;;  %v4128_v57 = vld [vmem:[#allocation8 + $0x90] ss:$8 sps:$4 sm:$0xff]  }
 0x4ec   : > { %2055 = vmatpush2.bf16.msra.mxu0 %v4125_v47 }
 0x4f4   : > { %v4994_v60 = vpop.eup %4334 }
 0x4f5   : > { %v1528_v61 = vsel %vm1405_vm1, %v4994_v60, 0.0 }
 0x4f6   : > { %1529 = vadd.xlane.f32.xlu0 %v1528_v61  ;;  %v4133_v61 = vld [vmem:[#allocation8 + $0x84] ss:$8 sps:$4 sm:$0xff]  }
 0x4f8   : > { %v4998_v1 = vpop.eup %4336 }
 0x4f9   : > { %v1531_v25 = vsel %vm1405_vm1, %v4998_v1, 0.0 }
 0x4fa   : > { %1532 = vadd.xlane.f32.xlu1 %v1531_v25 }
 0x57f   : > { %v1530_v48 = vpop.xlane.xlu0 %1529 }
 0x580   : > { %4338 = vrcp.f32 %v1530_v48 }
 0x583   : > { %v1533_v49 = vpop.xlane.xlu1 %1532 }
 0x584   : > { %4340 = vrcp.f32 %v1533_v49 }
 0x58d   : > { %v4339_v50 = vpop.eup %4338 }
 0x58e   : > { %v1536_v53 = vmul.f32 %v4339_v50, %v4994_v60  ;;  %v4130_v60 = vld [vmem:[#allocation8 + $0x94] ss:$8 sps:$4 sm:$0xff]   ;;  %v1353_v50 = vpack.c.bf16 %v1291_v46, %v1287_v45 }
 0x58f   : > { %2056 = vmatprep.subr.bf16.mxu0 %v4130_v60 }
 0x590   : > { %2057 = vmatpush2.bf16.msra.mxu0 %v4128_v57 }
 0x591   : > { %v4341_v51 = vpop.eup %4340  ;;  %2058 = vmatprep.subr.bf16.mxu0 %v4133_v61 }
 0x592   : > { %v1537_v54 = vmul.f32 %v4341_v51, %v4998_v1  ;;  %v4131_v1 = vld [vmem:[#allocation8 + $0x80] ss:$8 sps:$4 sm:$0xff]   ;;  %v1343_v51 = vpop.f32.mrf.mxu0 }
 0x593   : > { %v1344_v39 = vadd.f32 %v1343_v51, %v4969_v8 }
 0x594   : > { %v1538_v55 = vpack.c.bf16 %v1537_v54, %v1536_v53  ;;  %2059 = vmatpush2.bf16.msra.mxu0 %v4131_v1  ;;  %v1340_v53 = vadd.f32 %v1339_v23, %v4969_v8  ;;  %v4374_v23 = vld [vmem:[%s4833_s8 + $0x8] sm:$0xff] }
 0x596   : > { %3818 = vmatmul.mubr.msk.bf16.vlgmr.msra.gmra.mxu1 %vm1405_vm1, %v1538_v55  ;;  %v1357_v54 = vpack.c.bf16 %v1344_v39, %v1340_v53  ;;  %v4134_v39 = vld [vmem:[#allocation9 + $0xe0] ss:$16 sps:$4 sm:$0xff]  }
 0x597   : > { %3822 = vmatpush3.bf16.xpose.msra.mxu1 %v1352_v43  ;;  %3823 = vmatprep.mubr.msk.bf16.mxu1 %vm4599_vm0, %v4598_v12  ;;  %v1587_v43 = vunpack.c.l.bf16 %v3608_v40 }
 0x598   : > { %3827 = vmatprep.subr.bf16.mxu1 %v4598_v12 }
 0x599   : > { %v5018_v56 = vrot.slane %v1587_v43, %v4886_v20 }
 0x59e   : > { %3824 = vmatmul.mubr.bf16.vlgmr.msra.gmra.mxu1 %v1348_v63 }
 0x59f   : > { %3829 = vmatprep.mubr.msk.bf16.mxu1 %vm4599_vm0, %v4598_v12  ;;  %3828 = vmatpush3.bf16.msra.mxu1 %v1356_v27  ;;  %v4375_v27 = vld [vmem:[%s4833_s8] sm:$0xff] }
 0x5a0   : > { %3833 = vmatprep.subr.bf16.mxu1 %v4598_v12 }
 0x656   : > { %v1576_v42 = vpop.f32.mrf.mxu1 }
 0x658   : > { %v3819_v25 = vpop.f32.mrf.mxu1 }
 0x65a   : > { %v1579_v3 = vpop.f32.mrf.mxu1 }
 0x65b   : > { %v1821_v4 = vpack.c.bf16 %v1579_v3, %v1576_v42 }
 0x65c   : > { %v3820_v59 = vpop.f32.mrf.mxu1 }
 0x65d   : > { %2060 = vmatprep.mubr.bf16.mxu0 %v1821_v4 }
 0x65e   : > { %v1626_v63 = vpop.f32.mrf.mxu1  ;;  %2061 = vmatmul.mubr.bf16.vlgmr.msra.gmra.mxu0 %v1820_v33 }
 0x65f   : > { %v1627_v29 = vadd.f32 %v1626_v63, %v5018_v56 }
 0x660   : > { %v3825_v6 = vpop.f32.mrf.mxu1 }
 0x661   : > { %v1633_v7 = vsel %vm1405_vm1, %v1627_v29, -inf  ;;  %v1856_v6 = vld [vmem:[%s5317_s5] sm:$0x3] }
 0x662   : > { %1634 = vmax.xlane.f32.xlu0 %v1633_v7  ;;  %v1629_v10 = vpop.f32.mrf.mxu1 }
 0x663   : > { %v1630_v13 = vadd.f32 %v1629_v10, %v5018_v56  ;;  %v5064_v10 = vrot.slane %v1856_v6, %v4886_v20 }
 0x664   : > { %v3826_v18 = vpop.f32.mrf.mxu1 }
 0x665   : > { %v1636_v19 = vsel %vm1405_vm1, %v1630_v13, -inf }
 0x666   : > { %1637 = vmax.xlane.f32.xlu1 %v1636_v19 }
 0x6eb   : > { %v1635_v33 = vpop.xlane.xlu0 %1634 }
 0x6ec   : > { %v1639_v11 = vsub.f32 %v1627_v29, %v1635_v33 }
 0x6ee   : > { %v1641_v28 = vmul.f32 1.442695, %v1639_v11 }
 0x6ef   : > { %v1638_v31 = vpop.xlane.xlu1 %1637 }
 0x6f0   : > { %4342 = vpow2.f32 %v1641_v28  ;;  %v1640_v34 = vsub.f32 %v1630_v13, %v1638_v31  ;;  %v4376_v31 = vld [vmem:[%s4833_s8 + $0x18] sm:$0xff] }
 0x6f2   : > { %v1643_v16 = vmul.f32 1.442695, %v1640_v34 }
 0x6f4   : > { %4344 = vpow2.f32 %v1643_v16 }
 0x6fd   : > { %v4343_v35 = vpop.eup %4342 }
 0x6fe   : > { %v1645_v36 = vsel %vm1405_vm1, %v4343_v35, 0.0 }
 0x6ff   : > { %1646 = vadd.xlane.f32.xlu0 %v1645_v36  ;;  %v4377_v36 = vld [vmem:[%s4833_s8 + $0x10] sm:$0xff] }
 0x701   : > { %v4345_v32 = vpop.eup %4344 }
 0x702   : > { %v1648_v37 = vsel %vm1405_vm1, %v4345_v32, 0.0 }
 0x703   : > { %1649 = vadd.xlane.f32.xlu1 %v1648_v37 }
 0x71e   : > { %v2062_v25 = vpop.f32.mrf.mxu0 }
 0x71f   : > { %v2063_v19 = vadd.f32 %v2062_v25, %v5064_v10  ;;  %v4163_v25 = vld [vmem:[#allocation9 + $0x6c] ss:$16 sps:$4 sm:$0xff]  }
 0x720   : > { %v2064_v63 = vpop.f32.mrf.mxu0 }
 0x721   : > { %v5074_v33 = vadd.f32 %v4375_v27, %v2063_v19  ;;  %v4173_v19 = vld [vmem:[#allocation9 + $0x28] ss:$16 sps:$4 sm:$0xff]  }
 0x722   : > { %v2066_v7 = vpop.f32.mrf.mxu0 }
 0x723   : > { %v2067_v11 = vadd.f32 %v2066_v7, %v5064_v10  ;;  %v4172_v7 = vld [vmem:[#allocation9 + $0x24] ss:$16 sps:$4 sm:$0xff]  }
 0x724   : > { %v2068_v18 = vpop.f32.mrf.mxu0 }
 0x788   : > { %v1647_v0 = vpop.xlane.xlu0 %1646 }
 0x789   : > { %4346 = vrcp.f32 %v1647_v0 }
 0x78c   : > { %v1650_v38 = vpop.xlane.xlu1 %1649 }
 0x78d   : > { %4348 = vrcp.f32 %v1650_v38 }
 0x796   : > { %v4347_v41 = vpop.eup %4346 }
 0x797   : > { %v1653_v47 = vmul.f32 %v4347_v41, %v4343_v35 }
 0x79a   : > { %v4349_v44 = vpop.eup %4348 }
 0x79b   : > { %v1654_v48 = vmul.f32 %v4349_v44, %v4345_v32  ;;  %v5084_v32 = vadd.f32 %v4377_v36, %v2067_v11 }
 0x79d   : > { %v1655_v49 = vpack.c.bf16 %v1654_v48, %v1653_v47 }
 0x79f   : > { %3830 = vmatmul.mubr.msk.bf16.vlgmr.msra.gmra.mxu1 %vm1405_vm1, %v1655_v49 }
 0x7a0   : > { %3834 = vmatpush3.bf16.xpose.msra.mxu1 %v1353_v50  ;;  %3835 = vmatprep.mubr.msk.bf16.mxu1 %vm4599_vm0, %v4598_v12 }
 0x7a1   : > { %3839 = vmatprep.subr.bf16.mxu1 %v4598_v12 }
 0x7a7   : > { %3836 = vmatmul.mubr.bf16.vlgmr.msra.gmra.mxu1 %v1349_v2 }
 0x7a8   : > { %3840 = vmatpush3.bf16.msra.mxu1 %v1357_v54  ;;  %3841 = vmatprep.mubr.msk.bf16.mxu1 %vm4599_vm0, %v4598_v12  ;;  %v4136_v54 = vld [vmem:[#allocation9 + $0xe4] ss:$16 sps:$4 sm:$0xff]  }
 0x7a9   : > { %2604 = vmatprep.subr.bf16.mxu1 %v4136_v54 }
 0x85f   : > { %v5047_v22 = vpop.f32.mrf.mxu1 }
 0x861   : > { %v3831_v26 = vpop.f32.mrf.mxu1 }
 0x862   : > { %v4137_v26 = vld [vmem:[#allocation9 + $0xe8] ss:$16 sps:$4 sm:$0xff]  }
 0x863   : > { %v5049_v55 = vpop.f32.mrf.mxu1 }
 0x864   : > { %v1822_v57 = vpack.c.bf16 %v5049_v55, %v5047_v22  ;;  %v4149_v22 = vld [vmem:[#allocation9 + $0xa8] ss:$16 sps:$4 sm:$0xff]   ;;  %v4154_v55 = vld [vmem:[#allocation9 + $0x84] ss:$16 sps:$4 sm:$0xff]  }
 0x865   : > { %v3832_v60 = vpop.f32.mrf.mxu1 }
 0x866   : > { %v4139_v60 = vld [vmem:[#allocation9 + $0xec] ss:$16 sps:$4 sm:$0xff]  }
 0x867   : > { %v1736_v61 = vpop.f32.mrf.mxu1  ;;  %2657 = vmatprep.subr.bf16.mxu0 %v4139_v60 }
 0x868   : > { %v1737_v8 = vadd.f32 %v1736_v61, %v5018_v56  ;;  %v4142_v61 = vld [vmem:[#allocation9 + $0xc4] ss:$16 sps:$4 sm:$0xff]   ;;  %2658 = vmatpush1.bf16.msra.mxu0 %v4137_v26 }
 0x869   : > { %v3837_v1 = vpop.f32.mrf.mxu1 }
 0x86a   : > { %v1743_v58 = vsel %vm1405_vm1, %v1737_v8, -inf  ;;  %v4140_v1 = vld [vmem:[#allocation9 + $0xc0] ss:$16 sps:$4 sm:$0xff]  }
 0x86b   : > { %1744 = vmax.xlane.f32.xlu0 %v1743_v58  ;;  %v1739_v62 = vpop.f32.mrf.mxu1  ;;  %v4143_v58 = vld [vmem:[#allocation9 + $0xc8] ss:$16 sps:$4 sm:$0xff]  }
 0x86c   : > { %v1740_v2 = vadd.f32 %v1739_v62, %v5018_v56  ;;  %v5061_v56 = vrot.slane %v1856_v6, %v4942_v52  ;;  %v4148_v62 = vld [vmem:[#allocation9 + $0xa4] ss:$16 sps:$4 sm:$0xff]   ;;  %v4167_v6 = vld [vmem:[#allocation9 + $0x48] ss:$16 sps:$4 sm:$0xff]  }
 0x86d   : > { %v3838_v12 = vpop.f32.mrf.mxu1 }
 0x86e   : > { %v1746_v40 = vsel %vm1405_vm1, %v1740_v2, -inf  ;;  %v2065_v13 = vadd.f32 %v2064_v63, %v5061_v56  ;;  %v2069_v5 = vadd.f32 %v2068_v18, %v5061_v56  ;;  %v4146_v12 = vld [vmem:[#allocation9 + $0xa0] ss:$16 sps:$4 sm:$0xff]   ;;  %v4169_v63 = vld [vmem:[#allocation9 + $0x4c] ss:$16 sps:$4 sm:$0xff]  }
 0x86f   : > { %1747 = vmax.xlane.f32.xlu1 %v1746_v40  ;;  %v4152_v40 = vld [vmem:[#allocation9 + $0x80] ss:$16 sps:$4 sm:$0xff]  }
 0x870   : > { %v5069_v24 = vadd.f32 %v4374_v23, %v2065_v13  ;;  %v5078_v34 = vadd.f32 %v4376_v31, %v2069_v5  ;;  %v4175_v13 = vld [vmem:[#allocation9 + $0x2c] ss:$16 sps:$4 sm:$0xff]   ;;  %v4170_v18 = vld [vmem:[#allocation9 + $0x20] ss:$16 sps:$4 sm:$0xff]  }
 0x871   : > { %v4181_v23 = vld [vmem:[#allocation9 + $0xc] ss:$16 sps:$4 sm:$0xff]   ;;  %v4176_v5 = vld [vmem:[#allocation9] ss:$16 sps:$4 sm:$0xff]  }
 0x872   : > { %v2091_v16 = vadd.f32 %v5069_v24, %v5074_v33  ;;  %v2094_v37 = vadd.f32 %v5078_v34, %v5084_v32 }
 0x8f4   : > { %v1745_v42 = vpop.xlane.xlu0 %1744 }
 0x8f5   : > { %v1749_v43 = vsub.f32 %v1737_v8, %v1745_v42  ;;  %v4145_v8 = vld [vmem:[#allocation9 + $0xcc] ss:$16 sps:$4 sm:$0xff]   ;;  %v4155_v42 = vld [vmem:[#allocation9 + $0x88] ss:$16 sps:$4 sm:$0xff]  }
 0x8f6   : > { %2659 = vmatprep.subr.bf16.mxu0 %v4145_v8  ;;  %v4184_v8 = vld [vmem:[#allocation9 + $0x1e4] ss:$16 sps:$4 sm:$0xff]  }
 0x8f7   : > { %v1751_v3 = vmul.f32 1.442695, %v1749_v43  ;;  %2660 = vmatpush1.bf16.msra.mxu0 %v4143_v58  ;;  %v4160_v43 = vld [vmem:[#allocation9 + $0x64] ss:$16 sps:$4 sm:$0xff]   ;;  %v4187_v58 = vld [vmem:[#allocation9 + $0x1ec] ss:$16 sps:$4 sm:$0xff]  }
 0x8f8   : > { %v1748_v4 = vpop.xlane.xlu1 %1747 }
 0x8f9   : > { %4350 = vpow2.f32 %v1751_v3  ;;  %v1750_v59 = vsub.f32 %v1740_v2, %v1748_v4  ;;  %v4151_v2 = vld [vmem:[#allocation9 + $0xac] ss:$16 sps:$4 sm:$0xff]   ;;  %v4158_v3 = vld [vmem:[#allocation9 + $0x60] ss:$16 sps:$4 sm:$0xff]   ;;  %v4161_v4 = vld [vmem:[#allocation9 + $0x68] ss:$16 sps:$4 sm:$0xff]  }
 0x8fa   : > { %2661 = vmatprep.subr.bf16.mxu0 %v4151_v2  ;;  %v4193_v2 = vld [vmem:[#allocation9 + $0x1cc] ss:$16 sps:$4 sm:$0xff]  }
 0x8fb   : > { %v1753_v29 = vmul.f32 1.442695, %v1750_v59  ;;  %2662 = vmatpush1.bf16.msra.mxu0 %v4149_v22  ;;  %v4166_v59 = vld [vmem:[#allocation9 + $0x44] ss:$16 sps:$4 sm:$0xff]   ;;  %v4191_v22 = vld [vmem:[#allocation9 + $0x1c8] ss:$16 sps:$4 sm:$0xff]  }
 0x8fd   : > { %4352 = vpow2.f32 %v1753_v29  ;;  %v4164_v29 = vld [vmem:[#allocation9 + $0x40] ss:$16 sps:$4 sm:$0xff]  }
 0x906   : > { %v4351_v21 = vpop.eup %4350 }
 0x907   : > { %v1755_v30 = vsel %vm1405_vm1, %v4351_v21, 0.0 }
 0x908   : > { %1756 = vadd.xlane.f32.xlu0 %v1755_v30  ;;  %v4179_v30 = vld [vmem:[#allocation9 + $0x8] ss:$16 sps:$4 sm:$0xff]  }
 0x90a   : > { %v4353_v28 = vpop.eup %4352 }
 0x90b   : > { %v1758_v35 = vsel %vm1405_vm1, %v4353_v28, 0.0 }
 0x90c   : > { %2092 = vadd.xlane.f32.xlu0 %v2091_v16  ;;  %1759 = vadd.xlane.f32.xlu1 %v1758_v35 }
 0x910   : > { %2095 = vadd.xlane.f32.xlu1 %v2094_v37 }
 0x991   : > { %v1757_v0 = vpop.xlane.xlu0 %1756 }
 0x992   : > { %4354 = vrcp.f32 %v1757_v0 }
 0x995   : > { %v1760_v38 = vpop.xlane.xlu1 %1759  ;;  %v2093_v27 = vpop.xlane.xlu0 %2092 }
 0x996   : > { %4356 = vrcp.f32 %v1760_v38  ;;  %v2104_v11 = vmul.f32 0.00390625, %v2093_v27  ;;  %v4226_v27 = vld [vmem:[#allocation9 + $0x104] ss:$16 sps:$4 sm:$0xff]  }
 0x998   : > { %v5094_v35 = vsub.f32 %v5074_v33, %v2104_v11  ;;  %v5097_v36 = vsub.f32 %v5069_v24, %v2104_v11  ;;  %v4229_v11 = vld [vmem:[#allocation9 + $0x10c] ss:$16 sps:$4 sm:$0xff]  }
 0x99a   : > { %v2116_v24 = vmul.f32 %v5094_v35, %v5094_v35 }
 0x99f   : > { %v4355_v41 = vpop.eup %4354 }
 0x9a0   : > { %v1763_v45 = vmul.f32 %v4355_v41, %v4351_v21  ;;  %v4178_v21 = vld [vmem:[#allocation9 + $0x4] ss:$16 sps:$4 sm:$0xff]  }
 0x9a3   : > { %v4357_v44 = vpop.eup %4356 }
 0x9a4   : > { %v1764_v46 = vmul.f32 %v4357_v44, %v4353_v28  ;;  %v2096_v28 = vpop.xlane.xlu1 %2095 }
 0x9a5   : > { %v2105_v0 = vmul.f32 0.00390625, %v2096_v28  ;;  %v4224_v28 = vld [vmem:[#allocation9 + $0x100] ss:$16 sps:$4 sm:$0xff]  }
 0x9a6   : > { %v1765_v47 = vpack.c.bf16 %v1764_v46, %v1763_v45  ;;  %v4378_v45 = vld [vmem:[%s4833_s8 + $0x28] sm:$0xff] }
 0x9a8   : > { %3842 = vmatmul.mubr.msk.bf16.vlgmr.msra.gmra.mxu1 %vm1405_vm1, %v1765_v47 }
 0x9a9   : > { %2605 = vmatpush1.bf16.msra.mxu1 %v4134_v39  ;;  %v4380_v39 = vld [vmem:[%s4833_s8 + $0x38] sm:$0xff] }
 0x9aa   : > { %2606 = vmatprep.subr.bf16.mxu1 %v4142_v61  ;;  %v4182_v61 = vld [vmem:[#allocation9 + $0x1e0] ss:$16 sps:$4 sm:$0xff]  }
 0x9ad   : > { %2607 = vmatpush1.bf16.msra.mxu1 %v4140_v1  ;;  %v4185_v1 = vld [vmem:[#allocation9 + $0x1e8] ss:$16 sps:$4 sm:$0xff]  }
 0x9ae   : > { %2608 = vmatprep.subr.bf16.mxu1 %v4148_v62  ;;  %v4190_v62 = vld [vmem:[#allocation9 + $0x1c4] ss:$16 sps:$4 sm:$0xff]  }
 0x9b1   : > { %2609 = vmatpush1.bf16.msra.mxu1 %v4146_v12  ;;  %v4188_v12 = vld [vmem:[#allocation9 + $0x1c0] ss:$16 sps:$4 sm:$0xff]  }
 0x9b2   : > { %2610 = vmatprep.subr.bf16.mxu1 %v4154_v55  ;;  %v4196_v55 = vld [vmem:[#allocation9 + $0x1a4] ss:$16 sps:$4 sm:$0xff]  }
 0x9b5   : > { %2611 = vmatpush1.bf16.msra.mxu1 %v4152_v40  ;;  %v4194_v40 = vld [vmem:[#allocation9 + $0x1a0] ss:$16 sps:$4 sm:$0xff]  }
 0x9b6   : > { %2612 = vmatprep.subr.bf16.mxu1 %v4160_v43  ;;  %v4202_v43 = vld [vmem:[#allocation9 + $0x184] ss:$16 sps:$4 sm:$0xff]  }
 0x9b9   : > { %2613 = vmatpush1.bf16.msra.mxu1 %v4158_v3  ;;  %v4200_v3 = vld [vmem:[#allocation9 + $0x180] ss:$16 sps:$4 sm:$0xff]  }
 0x9ba   : > { %2614 = vmatprep.subr.bf16.mxu1 %v4166_v59  ;;  %v4208_v59 = vld [vmem:[#allocation9 + $0x164] ss:$16 sps:$4 sm:$0xff]  }
 0x9bd   : > { %2615 = vmatpush1.bf16.msra.mxu1 %v4164_v29  ;;  %v4206_v29 = vld [vmem:[#allocation9 + $0x160] ss:$16 sps:$4 sm:$0xff]  }
 0x9be   : > { %2616 = vmatprep.subr.bf16.mxu1 %v4172_v7  ;;  %v4214_v7 = vld [vmem:[#allocation9 + $0x144] ss:$16 sps:$4 sm:$0xff]  }
 0x9c1   : > { %2617 = vmatpush1.bf16.msra.mxu1 %v4170_v18  ;;  %v4212_v18 = vld [vmem:[#allocation9 + $0x140] ss:$16 sps:$4 sm:$0xff]  }
 0x9c2   : > { %2618 = vmatprep.subr.bf16.mxu1 %v4178_v21  ;;  %v4220_v21 = vld [vmem:[#allocation9 + $0x124] ss:$16 sps:$4 sm:$0xff]  }
 0x9c5   : > { %2619 = vmatpush1.bf16.msra.mxu1 %v4176_v5  ;;  %v4218_v5 = vld [vmem:[#allocation9 + $0x120] ss:$16 sps:$4 sm:$0xff]  }
 0x9c6   : > { %2620 = vmatprep.subr.bf16.mxu1 %v4184_v8 }
 0x9c9   : > { %2621 = vmatpush2.bf16.msra.mxu1 %v4182_v61 }
 0x9ca   : > { %2622 = vmatprep.subr.bf16.mxu1 %v4190_v62 }
 0x9cd   : > { %2623 = vmatpush2.bf16.msra.mxu1 %v4188_v12 }
 0x9ce   : > { %2624 = vmatprep.subr.bf16.mxu1 %v4196_v55 }
 0x9d1   : > { %2625 = vmatpush2.bf16.msra.mxu1 %v4194_v40 }
 0x9d2   : > { %2626 = vmatprep.subr.bf16.mxu1 %v4202_v43 }
 0x9d5   : > { %2627 = vmatpush2.bf16.msra.mxu1 %v4200_v3 }
 0x9d6   : > { %2628 = vmatprep.subr.bf16.mxu1 %v4208_v59  ;;  %v4232_v59 = vld [vmem:[#allocation11 + $0x74] ss:$8 sps:$4 sm:$0xff]  }
 0x9d9   : > { %2629 = vmatpush2.bf16.msra.mxu1 %v4206_v29  ;;  %v4235_v29 = vld [vmem:[#allocation11 + $0x174] ss:$8 sps:$4 sm:$0xff]  }
 0x9da   : > { %2630 = vmatprep.subr.bf16.mxu1 %v4214_v7  ;;  %v4241_v7 = vld [vmem:[#allocation11 + $0x164] ss:$8 sps:$4 sm:$0xff]  }
 0x9dd   : > { %2631 = vmatpush2.bf16.msra.mxu1 %v4212_v18  ;;  %v4239_v18 = vld [vmem:[#allocation11 + $0x160] ss:$8 sps:$4 sm:$0xff]  }
 0x9de   : > { %2632 = vmatprep.subr.bf16.mxu1 %v4220_v21  ;;  %v4247_v21 = vld [vmem:[#allocation11 + $0x154] ss:$8 sps:$4 sm:$0xff]  }
 0x9e1   : > { %2633 = vmatpush2.bf16.msra.mxu1 %v4218_v5  ;;  %v4245_v5 = vld [vmem:[#allocation11 + $0x150] ss:$8 sps:$4 sm:$0xff]  }
 0x9e2   : > { %2634 = vmatprep.subr.bf16.mxu1 %v4226_v27  ;;  %v4253_v27 = vld [vmem:[#allocation11 + $0x144] ss:$8 sps:$4 sm:$0xff]  }
 0x9e5   : > { %2635 = vmatpush2.bf16.msra.mxu1 %v4224_v28  ;;  %v4251_v28 = vld [vmem:[#allocation11 + $0x140] ss:$8 sps:$4 sm:$0xff]  }
 0x9e6   : > { %3130 = vmatprep.subr.bf16.mxu1 %v4232_v59  ;;  %v4304_v59 = vld [vmem:[#allocation11 + $0xb4] ss:$8 sps:$4 sm:$0xff]  }
 0xa68   : > { %v1803_v48 = vpop.f32.mrf.mxu1 }
 0xa6a   : > { %v3843_v49 = vpop.f32.mrf.mxu1 }
 0xa6b   : > { %v5112_v49 = vsub.f32 %v5084_v32, %v2105_v0 }
 0xa6c   : > { %v1806_v50 = vpop.f32.mrf.mxu1 }
 0xa6d   : > { %v1823_v51 = vpack.c.bf16 %v1806_v50, %v1803_v48  ;;  %v2117_v48 = vmul.f32 %v5097_v36, %v5097_v36  ;;  %v5115_v50 = vsub.f32 %v5078_v34, %v2105_v0  ;;  %v2118_v34 = vmul.f32 %v5112_v49, %v5112_v49 }
 0xa6e   : > { %v3844_v53 = vpop.f32.mrf.mxu1 }
 0xa6f   : > { %2070 = vmatprep.mubr.bf16.mxu0 %v1823_v51  ;;  %v4379_v53 = vld [vmem:[%s4833_s8 + $0x30] sm:$0xff]  ;;  %v2124_v32 = vadd.f32 %v2117_v48, %v2116_v24  ;;  %s4513_s8 = scalar_lea.vmem %s5267_s2, 1024 }
 0xa70   : > { %2071 = vmatmul.mubr.bf16.gmra.mxu0 %v1822_v57  ;;  %v4157_v57 = vld [vmem:[#allocation9 + $0x8c] ss:$16 sps:$4 sm:$0xff]   ;;  %p4514_p7 = scmp.ne.s32.totalorder %s5267_s2, %s4513_s8  ;;  %p4521_p1 = scmp.lt.s32.totalorder %s4519_s21, %s4513_s8 }
 0xa71   : > { %2663 = vmatprep.subr.bf16.mxu0 %v4157_v57  ;;  %v4199_v57 = vld [vmem:[#allocation9 + $0x1ac] ss:$16 sps:$4 sm:$0xff]  }
 0xa72   : > { %2664 = vmatpush1.bf16.msra.mxu0 %v4155_v42  ;;  %v4197_v42 = vld [vmem:[#allocation9 + $0x1a8] ss:$16 sps:$4 sm:$0xff]   ;;  %p4515_p13 = pnand %p4514_p7, %p5363_p9  ;;  %p4522_p6 = por %p4521_p1, %p4520_p10 }
 0xa73   : > { %2665 = vmatprep.subr.bf16.mxu0 %v4163_v25  ;;  %v4205_v25 = vld [vmem:[#allocation9 + $0x18c] ss:$16 sps:$4 sm:$0xff]  }
 0xa74   : > { %p4516_p5 = pneg %p4515_p13 }
 0xa76   : > { %2666 = vmatpush1.bf16.msra.mxu0 %v4161_v4  ;;  %v4203_v4 = vld [vmem:[#allocation9 + $0x188] ss:$16 sps:$4 sm:$0xff]   ;;  %p4523_p2 = pnand %p4522_p6, %p4516_p5 }
 0xa77   : > { %2667 = vmatprep.subr.bf16.mxu0 %v4169_v63  ;;  %v4211_v63 = vld [vmem:[#allocation9 + $0x16c] ss:$16 sps:$4 sm:$0xff]  }
 0xa7a   : > { %2668 = vmatpush1.bf16.msra.mxu0 %v4167_v6  ;;  %v4209_v6 = vld [vmem:[#allocation9 + $0x168] ss:$16 sps:$4 sm:$0xff]  }
 0xa7b   : > { %2669 = vmatprep.subr.bf16.mxu0 %v4175_v13  ;;  %v4217_v13 = vld [vmem:[#allocation9 + $0x14c] ss:$16 sps:$4 sm:$0xff]  }
 0xa7e   : > { %2670 = vmatpush1.bf16.msra.mxu0 %v4173_v19  ;;  %v4215_v19 = vld [vmem:[#allocation9 + $0x148] ss:$16 sps:$4 sm:$0xff]  }
 0xa7f   : > { %2671 = vmatprep.subr.bf16.mxu0 %v4181_v23  ;;  %v4223_v23 = vld [vmem:[#allocation9 + $0x12c] ss:$16 sps:$4 sm:$0xff]  }
 0xa82   : > { %2672 = vmatpush1.bf16.msra.mxu0 %v4179_v30  ;;  %v4221_v30 = vld [vmem:[#allocation9 + $0x128] ss:$16 sps:$4 sm:$0xff]  }
 0xa83   : > { %2673 = vmatprep.subr.bf16.mxu0 %v4187_v58 }
 0xa86   : > { %2674 = vmatpush2.bf16.msra.mxu0 %v4185_v1 }
 0xa87   : > { %2675 = vmatprep.subr.bf16.mxu0 %v4193_v2 }
 0xa8a   : > { %2676 = vmatpush2.bf16.msra.mxu0 %v4191_v22 }
 0xa8b   : > { %2677 = vmatprep.subr.bf16.mxu0 %v4199_v57 }
 0xa8e   : > { %2678 = vmatpush2.bf16.msra.mxu0 %v4197_v42 }
 0xa8f   : > { %2679 = vmatprep.subr.bf16.mxu0 %v4205_v25 }
 0xa92   : > { %2680 = vmatpush2.bf16.msra.mxu0 %v4203_v4  ;;  %v4230_v4 = vld [vmem:[#allocation11 + $0x70] ss:$8 sps:$4 sm:$0xff]  }
 0xa93   : > { %2681 = vmatprep.subr.bf16.mxu0 %v4211_v63  ;;  %v4233_v63 = vld [vmem:[#allocation11 + $0x170] ss:$8 sps:$4 sm:$0xff]  }
 0xa96   : > { %2682 = vmatpush2.bf16.msra.mxu0 %v4209_v6  ;;  %v4238_v6 = vld [vmem:[#allocation11 + $0x64] ss:$8 sps:$4 sm:$0xff]  }
 0xa97   : > { %2683 = vmatprep.subr.bf16.mxu0 %v4217_v13  ;;  %v4236_v13 = vld [vmem:[#allocation11 + $0x60] ss:$8 sps:$4 sm:$0xff]  }
 0xa9a   : > { %2684 = vmatpush2.bf16.msra.mxu0 %v4215_v19  ;;  %v4244_v19 = vld [vmem:[#allocation11 + $0x54] ss:$8 sps:$4 sm:$0xff]  }
 0xa9b   : > { %2685 = vmatprep.subr.bf16.mxu0 %v4223_v23  ;;  %v4242_v23 = vld [vmem:[#allocation11 + $0x50] ss:$8 sps:$4 sm:$0xff]  }
 0xa9e   : > { %2686 = vmatpush2.bf16.msra.mxu0 %v4221_v30  ;;  %v4250_v30 = vld [vmem:[#allocation11 + $0x44] ss:$8 sps:$4 sm:$0xff]  }
 0xa9f   : > { %2687 = vmatprep.subr.bf16.mxu0 %v4229_v11  ;;  %v4248_v11 = vld [vmem:[#allocation11 + $0x40] ss:$8 sps:$4 sm:$0xff]  }
 0xb30   : > { %v2072_v31 = vpop.f32.mrf.mxu0 }
 0xb31   : > { %v2073_v16 = vadd.f32 %v2072_v31, %v5064_v10  ;;  %v4227_v31 = vld [vmem:[#allocation9 + $0x108] ss:$16 sps:$4 sm:$0xff]  }
 0xb32   : > { %v2074_v37 = vpop.f32.mrf.mxu0  ;;  %2688 = vmatpush2.bf16.msra.mxu0 %v4227_v31  ;;  %v4256_v31 = vld [vmem:[#allocation11 + $0x34] ss:$8 sps:$4 sm:$0xff]  }
 0xb33   : > { %v2075_v38 = vadd.f32 %v2074_v37, %v5061_v56  ;;  %v5101_v44 = vadd.f32 %v2073_v16, %v4860_v9  ;;  %3183 = vmatprep.subr.bf16.mxu0 %v4235_v29  ;;  %v4302_v29 = vld [vmem:[#allocation11 + $0xb0] ss:$8 sps:$4 sm:$0xff]  }
 0xb34   : > { %v2076_v41 = vpop.f32.mrf.mxu0 }
 0xb35   : > { %v5104_v46 = vadd.f32 %v4378_v45, %v2075_v38  ;;  %v2077_v47 = vadd.f32 %v2076_v41, %v5064_v10 }
 0xb36   : > { %v2078_v33 = vpop.f32.mrf.mxu0 }
 0xb37   : > { %v2079_v9 = vadd.f32 %v2078_v33, %v5061_v56  ;;  %v2097_v51 = vadd.f32 %v5104_v46, %v5101_v44  ;;  %v5121_v10 = vadd.f32 %v4379_v53, %v2077_v47  ;;  %v2119_v56 = vmul.f32 %v5115_v50, %v5115_v50 }
 0xb39   : > { %v5124_v54 = vadd.f32 %v4380_v39, %v2079_v9  ;;  %2098 = vadd.xlane.f32.xlu0 %v2097_v51  ;;  %v2127_v60 = vadd.f32 %v2119_v56, %v2118_v34 }
 0xb3b   : > { %v2100_v26 = vadd.f32 %v5124_v54, %v5121_v10 }
 0xb3d   : > { %2101 = vadd.xlane.f32.xlu1 %v2100_v26  ;;  %2125 = vadd.xlane.f32.xlu0 %v2124_v32 }
 0xb41   : > { %2128 = vadd.xlane.f32.xlu1 %v2127_v60  ;;  %v2090_v60 = vld [vmem:[%s5319_s7] sm:$0x3] }
 0xb42   : > { %v5167_v2 = vrot.slane %v2090_v60, %v4886_v20  ;;  %v5170_v12 = vrot.slane %v2090_v60, %v4942_v52  ;;  %v4281_v60 = vld [vmem:[#allocation11 + $0x1f0] ss:$8 sps:$4 sm:$0xff]  }
 0xbc2   : > { %v2099_v16 = vpop.xlane.xlu0 %2098 }
 0xbc3   : > { %v2106_v37 = vmul.f32 0.00390625, %v2099_v16  ;;  %v4259_v16 = vld [vmem:[#allocation11 + $0x134] ss:$8 sps:$4 sm:$0xff]  }
 0xbc5   : > { %v5133_v0 = vsub.f32 %v5101_v44, %v2106_v37  ;;  %v5136_v38 = vsub.f32 %v5104_v46, %v2106_v37  ;;  %v4254_v37 = vld [vmem:[#allocation11 + $0x30] ss:$8 sps:$4 sm:$0xff]  }
 0xbc6   : > { %v2102_v41 = vpop.xlane.xlu1 %2101  ;;  %v2126_v45 = vpop.xlane.xlu0 %2125 }
 0xbc7   : > { %v2107_v47 = vmul.f32 0.00390625, %v2102_v41  ;;  %v2136_v33 = vmul.f32 0.00390625, %v2126_v45  ;;  %v2120_v24 = vmul.f32 %v5133_v0, %v5133_v0  ;;  %v2121_v48 = vmul.f32 %v5136_v38, %v5136_v38  ;;  %v4257_v41 = vld [vmem:[#allocation11 + $0x130] ss:$8 sps:$4 sm:$0xff]   ;;  %v4262_v45 = vld [vmem:[#allocation11 + $0x24] ss:$8 sps:$4 sm:$0xff]  }
 0xbc9   : > { %v5143_v9 = vsub.f32 %v5121_v10, %v2107_v47  ;;  %v5146_v51 = vsub.f32 %v5124_v54, %v2107_v47  ;;  %v2140_v44 = vadd.f32 1e-05, %v2136_v33  ;;  %v2130_v53 = vadd.f32 %v2121_v48, %v2120_v24  ;;  %v2089_v10 = vld [vmem:[%s5318_s6] sm:$0x3]  ;;  %v4265_v47 = vld [vmem:[#allocation11 + $0x124] ss:$8 sps:$4 sm:$0xff]  }
 0xbca   : > { %v2129_v46 = vpop.xlane.xlu1 %2128  ;;  %v5160_v8 = vrot.slane %v2089_v10, %v4886_v20  ;;  %v5163_v1 = vrot.slane %v2089_v10, %v4942_v52  ;;  %v4260_v33 = vld [vmem:[#allocation11 + $0x20] ss:$8 sps:$4 sm:$0xff]   ;;  %v4268_v48 = vld [vmem:[#allocation11 + $0x14] ss:$8 sps:$4 sm:$0xff]  }
 0xbcb   : > { %4358 = vrsqrt.f32 %v2140_v44  ;;  %v2137_v39 = vmul.f32 0.00390625, %v2129_v46  ;;  %2131 = vadd.xlane.f32.xlu0 %v2130_v53  ;;  %v2122_v26 = vmul.f32 %v5143_v9, %v5143_v9  ;;  %v2123_v32 = vmul.f32 %v5146_v51, %v5146_v51  ;;  %v4263_v24 = vld [vmem:[#allocation11 + $0x120] ss:$8 sps:$4 sm:$0xff]   ;;  %v4271_v44 = vld [vmem:[#allocation11 + $0x114] ss:$8 sps:$4 sm:$0xff]  }
 0xbcc   : > { %v4266_v53 = vld [vmem:[#allocation11 + $0x10] ss:$8 sps:$4 sm:$0xff]   ;;  %v4283_v10 = vld [vmem:[#allocation11 + $0x1f4] ss:$8 sps:$4 sm:$0xff]  }
 0xbcd   : > { %v2141_v34 = vadd.f32 1e-05, %v2137_v39  ;;  %v2133_v56 = vadd.f32 %v2123_v32, %v2122_v26  ;;  %v4269_v46 = vld [vmem:[#allocation11 + $0x110] ss:$8 sps:$4 sm:$0xff]   ;;  %v4274_v39 = vld [vmem:[#allocation11 + $0x4] ss:$8 sps:$4 sm:$0xff]  }
 0xbce   : > { %v4277_v26 = vld [vmem:[#allocation11 + $0x104] ss:$8 sps:$4 sm:$0xff]   ;;  %v4272_v32 = vld [vmem:[#allocation11] ss:$8 sps:$4 sm:$0xff]  }
 0xbcf   : > { %4360 = vrsqrt.f32 %v2141_v34  ;;  %2134 = vadd.xlane.f32.xlu1 %v2133_v56  ;;  %v4275_v34 = vld [vmem:[#allocation11 + $0x100] ss:$8 sps:$4 sm:$0xff]   ;;  %v4280_v56 = vld [vmem:[#allocation11 + $0xf4] ss:$8 sps:$4 sm:$0xff]  }
 0xbd8   : > { %v4359_v54 = vpop.eup %4358 }
 0xbd9   : > { %v2149_v61 = vmul.f32 %v4359_v54, %v5097_v36  ;;  %v2148_v58 = vmul.f32 %v4359_v54, %v5094_v35  ;;  %v4278_v54 = vld [vmem:[#allocation11 + $0xf0] ss:$8 sps:$4 sm:$0xff]  }
 0xbdb   : > { %v2168_v55 = vmul.f32 %v5163_v1, %v2149_v61  ;;  %v2167_v57 = vmul.f32 %v5160_v8, %v2148_v58  ;;  %v4286_v61 = vld [vmem:[#allocation11 + $0xe4] ss:$8 sps:$4 sm:$0xff]  }
 0xbdc   : > { %v4361_v62 = vpop.eup %4360  ;;  %v4289_v58 = vld [vmem:[#allocation11 + $0x1e4] ss:$8 sps:$4 sm:$0xff]  }
 0xbdd   : > { %v2151_v22 = vmul.f32 %v4361_v62, %v5115_v50  ;;  %v2150_v36 = vmul.f32 %v4361_v62, %v5112_v49  ;;  %v5179_v35 = vadd.f32 %v5170_v12, %v2168_v55  ;;  %v5185_v25 = vadd.f32 %v5167_v2, %v2167_v57  ;;  %v4284_v62 = vld [vmem:[#allocation11 + $0xe0] ss:$8 sps:$4 sm:$0xff]   ;;  %v4292_v55 = vld [vmem:[#allocation11 + $0xd4] ss:$8 sps:$4 sm:$0xff]   ;;  %v4290_v57 = vld [vmem:[#allocation11 + $0xd0] ss:$8 sps:$4 sm:$0xff]  }
 0xbdf   : > { %v2170_v40 = vmul.f32 %v5163_v1, %v2151_v22  ;;  %v2169_v42 = vmul.f32 %v5160_v8, %v2150_v36  ;;  %v4287_v22 = vld [vmem:[#allocation11 + $0x1e0] ss:$8 sps:$4 sm:$0xff]   ;;  %v4295_v36 = vld [vmem:[#allocation11 + $0x1d4] ss:$8 sps:$4 sm:$0xff]  }
 0xbe1   : > { %v5182_v43 = vadd.f32 %v5170_v12, %v2170_v40  ;;  %v5188_v50 = vadd.f32 %v5167_v2, %v2169_v42  ;;  %v4293_v40 = vld [vmem:[#allocation11 + $0x1d0] ss:$8 sps:$4 sm:$0xff]   ;;  %v4298_v42 = vld [vmem:[#allocation11 + $0xc4] ss:$8 sps:$4 sm:$0xff]  }
 0xbe3   : > { %v2195_v49 = vpack.c.bf16 %v5182_v43, %v5179_v35  ;;  %v2194_v3 = vpack.c.bf16 %v5188_v50, %v5185_v25 }
 0xbe5   : > { %2636 = vmatprep.mubr.bf16.mxu1 %v2195_v49  ;;  %2689 = vmatprep.mubr.bf16.mxu0 %v2195_v49  ;;  %v4301_v49 = vld [vmem:[#allocation11 + $0x1c4] ss:$8 sps:$4 sm:$0xff]  }
 0xbe6   : > { %2637 = vmatmul.mubr.bf16.vlgmr.msra.gmra.mxu1 %v2194_v3  ;;  %2690 = vmatmul.mubr.bf16.vlgmr.msra.gmra.mxu0 %v2194_v3  ;;  %v4296_v3 = vld [vmem:[#allocation11 + $0xc0] ss:$8 sps:$4 sm:$0xff]  }
 0xbe7   : > { %3131 = vmatpush1.bf16.msra.mxu1 %v4230_v4  ;;  %3184 = vmatpush1.bf16.msra.mxu0 %v4233_v63  ;;  %v4299_v4 = vld [vmem:[#allocation11 + $0x1c0] ss:$8 sps:$4 sm:$0xff]   ;;  %v4307_v63 = vld [vmem:[#allocation11 + $0x1b4] ss:$8 sps:$4 sm:$0xff]  }
 0xbe8   : > { %3132 = vmatprep.subr.bf16.mxu1 %v4238_v6  ;;  %3185 = vmatprep.subr.bf16.mxu0 %v4241_v7  ;;  %v4305_v6 = vld [vmem:[#allocation11 + $0x1b0] ss:$8 sps:$4 sm:$0xff]   ;;  %v4310_v7 = vld [vmem:[#allocation11 + $0xa4] ss:$8 sps:$4 sm:$0xff]  }
 0xbeb   : > { %3133 = vmatpush1.bf16.msra.mxu1 %v4236_v13  ;;  %3186 = vmatpush1.bf16.msra.mxu0 %v4239_v18  ;;  %v4313_v13 = vld [vmem:[#allocation11 + $0x1a4] ss:$8 sps:$4 sm:$0xff]   ;;  %v4308_v18 = vld [vmem:[#allocation11 + $0xa0] ss:$8 sps:$4 sm:$0xff]  }
 0xbec   : > { %3134 = vmatprep.subr.bf16.mxu1 %v4244_v19  ;;  %3187 = vmatprep.subr.bf16.mxu0 %v4247_v21  ;;  %v4311_v19 = vld [vmem:[#allocation11 + $0x1a0] ss:$8 sps:$4 sm:$0xff]   ;;  %v4316_v21 = vld [vmem:[#allocation11 + $0x94] ss:$8 sps:$4 sm:$0xff]  }
 0xbef   : > { %3135 = vmatpush1.bf16.msra.mxu1 %v4242_v23  ;;  %3188 = vmatpush1.bf16.msra.mxu0 %v4245_v5  ;;  %v4319_v23 = vld [vmem:[#allocation11 + $0x194] ss:$8 sps:$4 sm:$0xff]   ;;  %v4314_v5 = vld [vmem:[#allocation11 + $0x90] ss:$8 sps:$4 sm:$0xff]  }
 0xbf0   : > { %3136 = vmatprep.subr.bf16.mxu1 %v4250_v30  ;;  %3189 = vmatprep.subr.bf16.mxu0 %v4253_v27  ;;  %v4317_v30 = vld [vmem:[#allocation11 + $0x190] ss:$8 sps:$4 sm:$0xff]   ;;  %v4322_v27 = vld [vmem:[#allocation11 + $0x84] ss:$8 sps:$4 sm:$0xff]  }
 0xbf3   : > { %3137 = vmatpush1.bf16.msra.mxu1 %v4248_v11  ;;  %3190 = vmatpush1.bf16.msra.mxu0 %v4251_v28  ;;  %v4325_v11 = vld [vmem:[#allocation11 + $0x184] ss:$8 sps:$4 sm:$0xff]   ;;  %v4320_v28 = vld [vmem:[#allocation11 + $0x80] ss:$8 sps:$4 sm:$0xff]  }
 0xbf4   : > { %3138 = vmatprep.subr.bf16.mxu1 %v4256_v31  ;;  %3191 = vmatprep.subr.bf16.mxu0 %v4259_v16  ;;  %v4323_v31 = vld [vmem:[#allocation11 + $0x180] ss:$8 sps:$4 sm:$0xff]  }
 0xbf7   : > { %3139 = vmatpush1.bf16.msra.mxu1 %v4254_v37  ;;  %3192 = vmatpush1.bf16.msra.mxu0 %v4257_v41 }
 0xbf8   : > { %3140 = vmatprep.subr.bf16.mxu1 %v4262_v45  ;;  %3193 = vmatprep.subr.bf16.mxu0 %v4265_v47 }
 0xbfb   : > { %3141 = vmatpush1.bf16.msra.mxu1 %v4260_v33  ;;  %3194 = vmatpush1.bf16.msra.mxu0 %v4263_v24 }
 0xbfc   : > { %3142 = vmatprep.subr.bf16.mxu1 %v4268_v48  ;;  %3195 = vmatprep.subr.bf16.mxu0 %v4271_v44 }
 0xbff   : > { %3143 = vmatpush1.bf16.msra.mxu1 %v4266_v53  ;;  %3196 = vmatpush1.bf16.msra.mxu0 %v4269_v46 }
 0xc00   : > { %3144 = vmatprep.subr.bf16.mxu1 %v4274_v39  ;;  %3197 = vmatprep.subr.bf16.mxu0 %v4277_v26 }
 0xc03   : > { %3145 = vmatpush1.bf16.msra.mxu1 %v4272_v32  ;;  %3198 = vmatpush1.bf16.msra.mxu0 %v4275_v34 }
 0xc04   : > { %3146 = vmatprep.subr.bf16.mxu1 %v4280_v56  ;;  %3199 = vmatprep.subr.bf16.mxu0 %v4283_v10 }
 0xc07   : > { %3147 = vmatpush2.bf16.msra.mxu1 %v4278_v54  ;;  %3200 = vmatpush2.bf16.msra.mxu0 %v4281_v60 }
 0xc08   : > { %3148 = vmatprep.subr.bf16.mxu1 %v4286_v61  ;;  %3201 = vmatprep.subr.bf16.mxu0 %v4289_v58 }
 0xc0b   : > { %3149 = vmatpush2.bf16.msra.mxu1 %v4284_v62  ;;  %3202 = vmatpush2.bf16.msra.mxu0 %v4287_v22 }
 0xc0c   : > { %3150 = vmatprep.subr.bf16.mxu1 %v4292_v55  ;;  %3203 = vmatprep.subr.bf16.mxu0 %v4295_v36 }
 0xc0f   : > { %3151 = vmatpush2.bf16.msra.mxu1 %v4290_v57  ;;  %3204 = vmatpush2.bf16.msra.mxu0 %v4293_v40 }
 0xc10   : > { %3152 = vmatprep.subr.bf16.mxu1 %v4298_v42  ;;  %3205 = vmatprep.subr.bf16.mxu0 %v4301_v49 }
 0xc13   : > { %3153 = vmatpush2.bf16.msra.mxu1 %v4296_v3  ;;  %3206 = vmatpush2.bf16.msra.mxu0 %v4299_v4 }
 0xc14   : > { %3154 = vmatprep.subr.bf16.mxu1 %v4304_v59  ;;  %3207 = vmatprep.subr.bf16.mxu0 %v4307_v63 }
 0xc17   : > { %3155 = vmatpush2.bf16.msra.mxu1 %v4302_v29  ;;  %3208 = vmatpush2.bf16.msra.mxu0 %v4305_v6 }
 0xc18   : > { %3156 = vmatprep.subr.bf16.mxu1 %v4310_v7  ;;  %3209 = vmatprep.subr.bf16.mxu0 %v4313_v13 }
 0xc1b   : > { %3157 = vmatpush2.bf16.msra.mxu1 %v4308_v18  ;;  %3210 = vmatpush2.bf16.msra.mxu0 %v4311_v19 }
 0xc1c   : > { %3158 = vmatprep.subr.bf16.mxu1 %v4316_v21  ;;  %3211 = vmatprep.subr.bf16.mxu0 %v4319_v23 }
 0xc1f   : > { %3159 = vmatpush2.bf16.msra.mxu1 %v4314_v5  ;;  %3212 = vmatpush2.bf16.msra.mxu0 %v4317_v30 }
 0xc20   : > { %3160 = vmatprep.subr.bf16.mxu1 %v4322_v27  ;;  %3213 = vmatprep.subr.bf16.mxu0 %v4325_v11 }
 0xc23   : > { %3161 = vmatpush2.bf16.msra.mxu1 %v4320_v28  ;;  %3214 = vmatpush2.bf16.msra.mxu0 %v4323_v31 }
 0xc54   : > { %v2132_v16 = vpop.xlane.xlu0 %2131 }
 0xc55   : > { %v2138_v37 = vmul.f32 0.00390625, %v2132_v16 }
 0xc57   : > { %v2142_v41 = vadd.f32 1e-05, %v2138_v37 }
 0xc58   : > { %v2135_v45 = vpop.xlane.xlu1 %2134 }
 0xc59   : > { %4362 = vrsqrt.f32 %v2142_v41  ;;  %v2139_v47 = vmul.f32 0.00390625, %v2135_v45 }
 0xc5b   : > { %v2143_v33 = vadd.f32 1e-05, %v2139_v47 }
 0xc5d   : > { %4364 = vrsqrt.f32 %v2143_v33 }
 0xc66   : > { %v4363_v24 = vpop.eup %4362 }
 0xc67   : > { %v2153_v48 = vmul.f32 %v4363_v24, %v5136_v38  ;;  %v2152_v44 = vmul.f32 %v4363_v24, %v5133_v0 }
 0xc69   : > { %v2172_v39 = vmul.f32 %v5163_v1, %v2153_v48  ;;  %v2171_v32 = vmul.f32 %v5160_v8, %v2152_v44 }
 0xc6a   : > { %v4365_v53 = vpop.eup %4364 }
 0xc6b   : > { %v2155_v46 = vmul.f32 %v4365_v53, %v5146_v51  ;;  %v2154_v26 = vmul.f32 %v4365_v53, %v5143_v9  ;;  %v5203_v10 = vadd.f32 %v5170_v12, %v2172_v39  ;;  %v5209_v0 = vadd.f32 %v5167_v2, %v2171_v32 }
 0xc6d   : > { %v2174_v34 = vmul.f32 %v5163_v1, %v2155_v46  ;;  %v2173_v56 = vmul.f32 %v5160_v8, %v2154_v26  ;;  %v2262_v8 = vld [vmem:[%s5321_s9] sm:$0xf] }
 0xc6e   : > { %v2271_v60 = vrot.slane %v2262_v8, %v4942_v52  ;;  %v2267_v61 = vrot.slane %v2262_v8, %v4886_v20  ;;  %v2275_v58 = vrot.slane %v2262_v8, %v687_v15 }
 0xc6f   : > { %v5206_v38 = vadd.f32 %v5170_v12, %v2174_v34  ;;  %v5212_v51 = vadd.f32 %v5167_v2, %v2173_v56  ;;  %v2279_v2 = vrot.slane %v2262_v8, %v691_v17 }
 0xc71   : > { %v2197_v9 = vpack.c.bf16 %v5206_v38, %v5203_v10  ;;  %v2196_v1 = vpack.c.bf16 %v5212_v51, %v5209_v0 }
 0xc73   : > { %2646 = vmatprep.mubr.bf16.mxu1 %v2197_v9  ;;  %2699 = vmatprep.mubr.bf16.mxu0 %v2197_v9 }
 0xc74   : > { %2647 = vmatmul.mubr.bf16.gmra.mxu1 %v2196_v1  ;;  %2700 = vmatmul.mubr.bf16.gmra.mxu0 %v2196_v1 }
 0xca6   : > { %v2638_v12 = vpop.f32.mrf.mxu1  ;;  %v2691_v54 = vpop.f32.mrf.mxu0 }
 0xca7   : > { %v2639_v3 = vadd.f32 %v2638_v12, %v2267_v61  ;;  %v2692_v4 = vadd.f32 %v2691_v54, %v2275_v58 }
 0xca8   : > { %v2640_v62 = vpop.f32.mrf.mxu1  ;;  %v2693_v22 = vpop.f32.mrf.mxu0 }
 0xca9   : > { %v2641_v57 = vadd.f32 %v2640_v62, %v2271_v60  ;;  %v2694_v40 = vadd.f32 %v2693_v22, %v2279_v2  ;;  %v2710_v19 = vmax.f32 %v2639_v3, 0.0  ;;  %v2712_v21 = vmax.f32 %v2692_v4, 0.0 }
 0xcaa   : > { %v2642_v55 = vpop.f32.mrf.mxu1  ;;  %v2695_v36 = vpop.f32.mrf.mxu0 }
 0xcab   : > { %v2643_v42 = vadd.f32 %v2642_v55, %v2267_v61  ;;  %v2696_v49 = vadd.f32 %v2695_v36, %v2275_v58  ;;  %v2711_v13 = vmax.f32 %v2641_v57, 0.0  ;;  %v2713_v18 = vmax.f32 %v2694_v40, 0.0 }
 0xcac   : > { %v2644_v59 = vpop.f32.mrf.mxu1  ;;  %v2697_v63 = vpop.f32.mrf.mxu0 }
 0xcad   : > { %v2645_v29 = vadd.f32 %v2644_v59, %v2271_v60  ;;  %v2698_v6 = vadd.f32 %v2697_v63, %v2279_v2  ;;  %v2714_v17 = vmax.f32 %v2643_v42, 0.0  ;;  %v2716_v7 = vmax.f32 %v2696_v49, 0.0 }
 0xcaf   : > { %v2715_v14 = vmax.f32 %v2645_v29, 0.0  ;;  %v2717_v15 = vmax.f32 %v2698_v6, 0.0  ;;  %v2726_v30 = vpack.c.bf16 %v2714_v17, %v2710_v19  ;;  %v2728_v27 = vpack.c.bf16 %v2716_v7, %v2712_v21 }
 0xcb1   : > { %v2727_v23 = vpack.c.bf16 %v2715_v14, %v2711_v13  ;;  %v2729_v5 = vpack.c.bf16 %v2717_v15, %v2713_v18 }
 0xcb3   : > { %3162 = vmatprep.mubr.bf16.mxu1 %v2727_v23  ;;  %3215 = vmatprep.mubr.bf16.mxu0 %v2729_v5 }
 0xcb4   : > { %3163 = vmatmul.mubr.bf16.vlgmr.msra.gmra.mxu1 %v2726_v30  ;;  %3216 = vmatmul.mubr.bf16.vlgmr.msra.gmra.mxu0 %v2728_v27 }
 0xd34   : > { %v2648_v11 = vpop.f32.mrf.mxu1  ;;  %v2701_v28 = vpop.f32.mrf.mxu0 }
 0xd35   : > { %v2649_v48 = vadd.f32 %v2648_v11, %v2267_v61  ;;  %v2702_v44 = vadd.f32 %v2701_v28, %v2275_v58 }
 0xd36   : > { %v2650_v31 = vpop.f32.mrf.mxu1  ;;  %v2703_v16 = vpop.f32.mrf.mxu0 }
 0xd37   : > { %v2651_v45 = vadd.f32 %v2650_v31, %v2271_v60  ;;  %v2704_v47 = vadd.f32 %v2703_v16, %v2279_v2  ;;  %v2718_v12 = vmax.f32 %v2649_v48, 0.0  ;;  %v2720_v54 = vmax.f32 %v2702_v44, 0.0 }
 0xd38   : > { %v2652_v37 = vpop.f32.mrf.mxu1  ;;  %v2705_v41 = vpop.f32.mrf.mxu0 }
 0xd39   : > { %v2653_v33 = vadd.f32 %v2652_v37, %v2267_v61  ;;  %v2706_v24 = vadd.f32 %v2705_v41, %v2275_v58  ;;  %v2719_v56 = vmax.f32 %v2651_v45, 0.0  ;;  %v2721_v9 = vmax.f32 %v2704_v47, 0.0 }
 0xd3a   : > { %v2654_v53 = vpop.f32.mrf.mxu1  ;;  %v2707_v46 = vpop.f32.mrf.mxu0 }
 0xd3b   : > { %v2655_v39 = vadd.f32 %v2654_v53, %v2271_v60  ;;  %v2708_v26 = vadd.f32 %v2707_v46, %v2279_v2  ;;  %v2722_v32 = vmax.f32 %v2653_v33, 0.0  ;;  %v2724_v34 = vmax.f32 %v2706_v24, 0.0  ;;  %v2798_v60 = vld [vmem:[%s5323_s11] sm:$0x3] }
 0xd3c   : > { %v2803_v2 = vrot.slane %v2798_v60, %v4886_v20  ;;  %v2807_v61 = vrot.slane %v2798_v60, %v4942_v52 }
 0xd3d   : > { %v2723_v1 = vmax.f32 %v2655_v39, 0.0  ;;  %v2725_v8 = vmax.f32 %v2708_v26, 0.0  ;;  %v2730_v55 = vpack.c.bf16 %v2722_v32, %v2718_v12  ;;  %v2732_v36 = vpack.c.bf16 %v2724_v34, %v2720_v54 }
 0xd3f   : > { %v2731_v62 = vpack.c.bf16 %v2723_v1, %v2719_v56  ;;  %v2733_v22 = vpack.c.bf16 %v2725_v8, %v2721_v9 }
 0xd41   : > { %3172 = vmatprep.mubr.bf16.mxu1 %v2731_v62  ;;  %3225 = vmatprep.mubr.bf16.mxu0 %v2733_v22 }
 0xd42   : > { %3173 = vmatmul.mubr.bf16.gmra.mxu1 %v2730_v55  ;;  %3226 = vmatmul.mubr.bf16.gmra.mxu0 %v2732_v36 }
 0xd74   : > { %v3164_v58 = vpop.f32.mrf.mxu1  ;;  %v3217_v57 = vpop.f32.mrf.mxu0 }
 0xd75   : > { %v3165_v40 = vadd.f32 %v3164_v58, %v2803_v2 }
 0xd76   : > { %v3166_v42 = vpop.f32.mrf.mxu1  ;;  %v3219_v49 = vpop.f32.mrf.mxu0 }
 0xd77   : > { %v3218_v3 = vadd.f32 %v3217_v57, %v3165_v40  ;;  %v3167_v4 = vadd.f32 %v3166_v42, %v2807_v61 }
 0xd78   : > { %v3168_v59 = vpop.f32.mrf.mxu1  ;;  %v3221_v63 = vpop.f32.mrf.mxu0 }
 0xd79   : > { %v3220_v29 = vadd.f32 %v3219_v49, %v3167_v4  ;;  %v3169_v6 = vadd.f32 %v3168_v59, %v2803_v2  ;;  %v3236_v7 = vadd.f32 %v3218_v3, %v5185_v25 }
 0xd7a   : > { %v3170_v17 = vpop.f32.mrf.mxu1  ;;  %v3223_v15 = vpop.f32.mrf.mxu0 }
 0xd7b   : > { %v3237_v13 = vadd.f32 %v3220_v29, %v5179_v35  ;;  %v3222_v18 = vadd.f32 %v3221_v63, %v3169_v6  ;;  %v3171_v14 = vadd.f32 %v3170_v17, %v2807_v61 }
 0xd7d   : > { %v3224_v19 = vadd.f32 %v3223_v15, %v3171_v14  ;;  %v3246_v21 = vadd.f32 %v3237_v13, %v3236_v7  ;;  %v3238_v23 = vadd.f32 %v3222_v18, %v5188_v50  ;;  %v3244_v15 = vld [vmem:[%s5324_s12] sm:$0x3] }
 0xd7f   : > { %v3239_v5 = vadd.f32 %v3224_v19, %v5182_v43  ;;  %3247 = vadd.xlane.f32.xlu0 %v3246_v21  ;;  %v3245_v19 = vld [vmem:[%s5325_s13] sm:$0x3]  ;;  %v3314_v21 = vrot.slane %v3244_v15, %v4886_v20 }
 0xd81   : > { %v3249_v30 = vadd.f32 %v3239_v5, %v3238_v23 }
 0xd83   : > { %3250 = vadd.xlane.f32.xlu1 %v3249_v30  ;;  %v3333_v30 = vrot.slane %v3245_v19, %v4886_v20 }
 0xe02   : > { %v3174_v27 = vpop.f32.mrf.mxu1  ;;  %v3227_v11 = vpop.f32.mrf.mxu0 }
 0xe03   : > { %v3175_v28 = vadd.f32 %v3174_v27, %v2803_v2  ;;  %v3337_v27 = vrot.slane %v3245_v19, %v4942_v52 }
 0xe04   : > { %v3176_v31 = vpop.f32.mrf.mxu1  ;;  %v3229_v16 = vpop.f32.mrf.mxu0 }
 0xe05   : > { %v3228_v25 = vadd.f32 %v3227_v11, %v3175_v28  ;;  %v3177_v37 = vadd.f32 %v3176_v31, %v2807_v61 }
 0xe06   : > { %v3178_v35 = vpop.f32.mrf.mxu1  ;;  %v3231_v41 = vpop.f32.mrf.mxu0 }
 0xe07   : > { %v3230_v45 = vadd.f32 %v3229_v16, %v3177_v37  ;;  %v3179_v47 = vadd.f32 %v3178_v35, %v2803_v2  ;;  %v3240_v24 = vadd.f32 %v3228_v25, %v5209_v0 }
 0xe08   : > { %v3180_v33 = vpop.f32.mrf.mxu1  ;;  %v3248_v44 = vpop.xlane.xlu0 %3247 }
 0xe09   : > { %v3241_v50 = vadd.f32 %v3230_v45, %v5203_v10  ;;  %v3232_v43 = vadd.f32 %v3231_v41, %v3179_v47  ;;  %v3181_v48 = vadd.f32 %v3180_v33, %v2807_v61  ;;  %v3233_v53 = vpop.f32.mrf.mxu0  ;;  %v3258_v46 = vmul.f32 0.00390625, %v3248_v44 }
 0xe0b   : > { %v3234_v39 = vadd.f32 %v3233_v53, %v3181_v48  ;;  %v3252_v26 = vadd.f32 %v3241_v50, %v3240_v24  ;;  %v3262_v32 = vsub.f32 %v3236_v7, %v3258_v46  ;;  %v3263_v34 = vsub.f32 %v3237_v13, %v3258_v46 }
 0xe0c   : > { %v3251_v56 = vpop.xlane.xlu1 %3250  ;;  %v3242_v9 = vadd.f32 %v3232_v43, %v5212_v51 }
 0xe0d   : > { %v3243_v1 = vadd.f32 %v3234_v39, %v5206_v38  ;;  %v3259_v8 = vmul.f32 0.00390625, %v3251_v56  ;;  %3253 = vadd.xlane.f32.xlu0 %v3252_v26  ;;  %v3270_v12 = vmul.f32 %v3262_v32, %v3262_v32  ;;  %v3271_v0 = vmul.f32 %v3263_v34, %v3263_v34 }
 0xe0f   : > { %v3264_v54 = vsub.f32 %v3238_v23, %v3259_v8  ;;  %v3265_v10 = vsub.f32 %v3239_v5, %v3259_v8  ;;  %v3255_v62 = vadd.f32 %v3243_v1, %v3242_v9  ;;  %v3278_v22 = vadd.f32 %v3271_v0, %v3270_v12 }
 0xe10   : > { %v3318_v23 = vrot.slane %v3244_v15, %v4942_v52 }
 0xe11   : > { %3256 = vadd.xlane.f32.xlu1 %v3255_v62  ;;  %v3272_v55 = vmul.f32 %v3264_v54, %v3264_v54  ;;  %v3273_v36 = vmul.f32 %v3265_v10, %v3265_v10  ;;  %3279 = vadd.xlane.f32.xlu0 %v3278_v22 }
 0xe13   : > { %v3281_v60 = vadd.f32 %v3273_v36, %v3272_v55 }
 0xe15   : > { %3282 = vadd.xlane.f32.xlu1 %v3281_v60 }
 0xe96   : > { %v3254_v2 = vpop.xlane.xlu0 %3253 }
 0xe97   : > { %v3260_v61 = vmul.f32 0.00390625, %v3254_v2 }
 0xe99   : > { %v3266_v58 = vsub.f32 %v3240_v24, %v3260_v61  ;;  %v3267_v51 = vsub.f32 %v3241_v50, %v3260_v61 }
 0xe9a   : > { %v3257_v57 = vpop.xlane.xlu1 %3256  ;;  %v3280_v40 = vpop.xlane.xlu0 %3279 }
 0xe9b   : > { %v3261_v38 = vmul.f32 0.00390625, %v3257_v57  ;;  %v3274_v42 = vmul.f32 %v3266_v58, %v3266_v58  ;;  %v3275_v49 = vmul.f32 %v3267_v51, %v3267_v51  ;;  %v3290_v3 = vmul.f32 0.00390625, %v3280_v40 }
 0xe9d   : > { %v3268_v4 = vsub.f32 %v3242_v9, %v3261_v38  ;;  %v3269_v59 = vsub.f32 %v3243_v1, %v3261_v38  ;;  %v3284_v63 = vadd.f32 %v3275_v49, %v3274_v42  ;;  %v3294_v29 = vadd.f32 1e-05, %v3290_v3 }
 0xe9e   : > { %v3283_v6 = vpop.xlane.xlu1 %3282 }
 0xe9f   : > { %v3291_v17 = vmul.f32 0.00390625, %v3283_v6  ;;  %3285 = vadd.xlane.f32.xlu0 %v3284_v63  ;;  %v3276_v7 = vmul.f32 %v3268_v4, %v3268_v4  ;;  %v3277_v13 = vmul.f32 %v3269_v59, %v3269_v59  ;;  %4366 = vrsqrt.f32 %v3294_v29 }
 0xea1   : > { %v3295_v18 = vadd.f32 1e-05, %v3291_v17  ;;  %v3287_v14 = vadd.f32 %v3277_v13, %v3276_v7 }
 0xea3   : > { %4368 = vrsqrt.f32 %v3295_v18  ;;  %3288 = vadd.xlane.f32.xlu1 %v3287_v14 }
 0xeac   : > { %v4367_v5 = vpop.eup %4366 }
 0xead   : > { %v3302_v11 = vmul.f32 %v4367_v5, %v3262_v32  ;;  %v3303_v28 = vmul.f32 %v4367_v5, %v3263_v34 }
 0xeaf   : > { %v3321_v16 = vmul.f32 %v3314_v21, %v3302_v11  ;;  %v3322_v25 = vmul.f32 %v3318_v23, %v3303_v28 }
 0xeb0   : > { %v4369_v31 = vpop.eup %4368 }
 0xeb1   : > { %v3304_v37 = vmul.f32 %v4369_v31, %v3264_v54  ;;  %v3305_v35 = vmul.f32 %v4369_v31, %v3265_v10  ;;  %v3340_v41 = vadd.f32 %v3333_v30, %v3321_v16  ;;  %v3341_v45 = vadd.f32 %v3337_v27, %v3322_v25 }
 0xeb3   : > { %v3323_v47 = vmul.f32 %v3314_v21, %v3304_v37  ;;  %v3324_v33 = vmul.f32 %v3318_v23, %v3305_v35  ;;  %3348 = vst [vmem:[%s5252_s23] sm:$0xff] %v3340_v41  ;;  %3349 = vst [vmem:[%s5252_s23 + $0x8] sm:$0xff] %v3341_v45 }
 0xeb5   : > { %v3342_v20 = vadd.f32 %v3333_v30, %v3323_v47  ;;  %v3343_v52 = vadd.f32 %v3337_v27, %v3324_v33 }
 0xeb7   : > { %3350 = vst [vmem:[%s5252_s23 + $0x10] sm:$0xff] %v3342_v20  ;;  %3351 = vst [vmem:[%s5252_s23 + $0x18] sm:$0xff] %v3343_v52 }
 0xf28   : > { %v3286_v24 = vpop.xlane.xlu0 %3285 }
 0xf29   : > { %v3292_v50 = vmul.f32 0.00390625, %v3286_v24 }
 0xf2b   : > { %v3296_v43 = vadd.f32 1e-05, %v3292_v50 }
 0xf2c   : > { %v3289_v48 = vpop.xlane.xlu1 %3288 }
 0xf2d   : > { %4370 = vrsqrt.f32 %v3296_v43  ;;  %v3293_v44 = vmul.f32 0.00390625, %v3289_v48 }
 0xf2f   : > { %v3297_v53 = vadd.f32 1e-05, %v3293_v44 }
 0xf31   : > { %4372 = vrsqrt.f32 %v3297_v53 }
 0xf3a   : > { %v4371_v46 = vpop.eup %4370 }
 0xf3b   : > { %v3306_v39 = vmul.f32 %v4371_v46, %v3266_v58  ;;  %v3307_v26 = vmul.f32 %v4371_v46, %v3267_v51 }
 0xf3d   : > { %v3325_v32 = vmul.f32 %v3314_v21, %v3306_v39  ;;  %v3326_v34 = vmul.f32 %v3318_v23, %v3307_v26 }
 0xf3e   : > { %v4373_v56 = vpop.eup %4372 }
 0xf3f   : > { %v3344_v9 = vadd.f32 %v3333_v30, %v3325_v32  ;;  %v3345_v1 = vadd.f32 %v3337_v27, %v3326_v34  ;;  %v3308_v8 = vmul.f32 %v4373_v56, %v3268_v4  ;;  %v3309_v12 = vmul.f32 %v4373_v56, %v3269_v59 }
 0xf41   : > { %3352 = vst [vmem:[%s5252_s23 + $0x20] sm:$0xff] %v3344_v9  ;;  %3353 = vst [vmem:[%s5252_s23 + $0x28] sm:$0xff] %v3345_v1  ;;  %v3327_v0 = vmul.f32 %v3314_v21, %v3308_v8  ;;  %v3328_v54 = vmul.f32 %v3318_v23, %v3309_v12 }
 0xf43   : > { %v3346_v10 = vadd.f32 %v3333_v30, %v3327_v0  ;;  %v3347_v62 = vadd.f32 %v3337_v27, %v3328_v54 }
 0xf45   : > { %3354 = vst [vmem:[%s5252_s23 + $0x30] sm:$0xff] %v3346_v10  ;;  %3355 = vst [vmem:[%s5252_s23 + $0x38] sm:$0xff] %v3347_v62 }
 0xf46   : > { %4526 = shalt.err (!%p4523_p2)
}
 0xf47   : > { %s4527_s25 = scalar_lea.hbm %s5265_s28, 1024  ;;  %s4531_s24 = scalar_lea.hbm %s5326_s14, 2048 }
 0xf48   : > { %p4528_p4 = scmp.ne.s32.totalorder %s5265_s28, %s4527_s25  ;;  %p4532_p11 = scmp.lt.s32.totalorder %s5265_s28, %s5326_s14 }
 0xf49   : > { %p4533_p3 = scmp.lt.s32.totalorder %s4531_s24, %s4527_s25 }
 0xf4a   : > { %p4529_p8 = pnand %p4528_p4, %p5363_p9 }
 0xf4b   : > { %p4534_p12 = por %p4533_p3, %p4532_p11 }
 0xf4c   : > { %p4530_p0 = pneg %p4529_p8 }
 0xf4e   : > { %p4535_p7 = pnand %p4534_p12, %p4530_p0 }
 0xf50   : > { %4538 = shalt.err (!%p4535_p7)
}
 0xf51   : > { %s4601_s10 = smov 256   ;;  %s4602_s20 = smov 16  }
 0xf52   : > { %3863 = dma.vmem_to_hbm [thread:$0]  (%p5363_p9), %s5267_s2, 1024, %s5265_s28, %s3357_s17, %s4601_s10, %s4601_s10, %s4602_s20  }
 0xf53 PF: > { %s5364_s8 = sld [smem:[#allocation17_spill]]  ;;  %p5367_p5 = scmp.ge.s32.totalorder %s4585_s16, 2 }
 0xf54   : > { %s5365_s4 = sld [smem:[#allocation19_spill]] }
 0xf59   : > { %s3386_s19 = sand.u32 1, %s5364_s8  }
 0xf5a   : > { %p5366_p13 = scmp.ne.s32.totalorder %s5365_s4, 0  ;;  %s3387_s21 = scalar_lea.sflag [#allocation5], %s3386_s19 }
 0xf5c   : > { %p3883_p10 = pnand %p5367_p5, %p5366_p13 }
 0xf5e   : > { %p3884_p1 = pneg %p3883_p10 }
 0xf60   : > { %4568 = dma.done.wait (%p3884_p1), %s3387_s21, 1024  }
 0xf61   : > { %4570 = vsyncadd (%p3884_p1), %s3387_s21, 4294966272  ;;  %s5368_s25 = sld [smem:[#allocation18_spill]]  ;;  %p29_p6 = scmp.ge.s32.totalorder %s4769_s27, 4  }
 0xf62   : > { %s5369_s15 = sld [smem:[#allocation20_spill]]  ;;  %s5370_s29 = smov %s4577_s30 }
 0xf63   : > { %s5372_s16 = smov %s4769_s27  ;;  %31 = sbr.rel (!%p29_p6) target bundleno = 12 (0xc), region = 141 }
 0xf67   : > { %s5371_s30 = smov %s5368_s25 }
 0xf68   :  { %3392 = vsyncpa [#allocation4], 1 }
 0xf69   :  { %3394 = vsyncpa [#allocation4 + $0x1], 1 }
 0xf6a   :  { %3395 = vsyncpa [#allocation7], 1 }
 0xf6b   :  { %3396 = vsyncpa [#allocation10], 1 }
 0xf6c   :  { %3397 = vsyncpa [#allocation5], 1 }
 0xf6d   :  { %3399 = vsyncpa [#allocation5 + $0x1], 1 }

// kernel: tpu_custom_call.1
= control target key start
LH: loop header
LB: loop body
LE: loop exit
PB: predicated region body
PF: predicated region fallthrough
CT: control target
= control target key end

     0   :  { %s5312_s0 = inlined_call_operand.hbm [shape: f32[4,16,256], index: 0, kind: input, shape index: {}]   ;;  %s5313_s1 = inlined_call_operand.vmem [shape: bf16[4,1,16], index: 1, kind: input, shape index: {}]   ;;  %s5314_s2 = inlined_call_operand.hbm [shape: bf16[256,768], index: 2, kind: input, shape index: {}]   ;;  %s5315_s3 = inlined_call_operand.vmem [shape: f32[1,768], index: 3, kind: input, shape index: {}]   ;;  %s5316_s4 = inlined_call_operand.hbm [shape: bf16[256,256], index: 4, kind: input, shape index: {}]   ;;  %s5317_s5 = inlined_call_operand.vmem [shape: f32[1,256], index: 5, kind: input, shape index: {}]   ;;  %s5318_s6 = inlined_call_operand.vmem [shape: f32[1,256], index: 6, kind: input, shape index: {}]   ;;  %s5319_s7 = inlined_call_operand.vmem [shape: f32[1,256], index: 7, kind: input, shape index: {}]   ;;  %s5320_s8 = inlined_call_operand.hbm [shape: bf16[256,512], index: 8, kind: input, shape index: {}]   ;;  %s5321_s9 = inlined_call_operand.vmem [shape: f32[1,512], index: 9, kind: input, shape index: {}]   ;;  %s5322_s10 = inlined_call_operand.hbm [shape: bf16[512,256], index: 10, kind: input, shape index: {}]   ;;  %s5323_s11 = inlined_call_operand.vmem [shape: f32[1,256], index: 11, kind: input, shape index: {}]   ;;  %s5324_s12 = inlined_call_operand.vmem [shape: f32[1,256], index: 12, kind: input, shape index: {}]   ;;  %s5325_s13 = inlined_call_operand.vmem [shape: f32[1,256], index: 13, kind: input, shape index: {}]   ;;  %s5326_s14 = inlined_call_operand.hbm [shape: f32[4,16,256], index: 14, kind: output, shape index: {}]  }
   0x1   :  { %5336 = sst [smem:[#allocation21_spill]] %s5314_s2 }
   0x2   :  { %5337 = sst [smem:[#allocation22_spill]] %s5316_s4 }
   0x3   :  { %5338 = sst [smem:[#allocation23_spill]] %s5320_s8 }
   0x4   :  { %5339 = sst [smem:[#allocation24_spill]] %s5322_s10 }
   0x5   :  { %19 = vsyncpa [#allocation4], 0 }
   0x6   :  { %21 = vsyncpa [#allocation4 + $0x1], 0 }
   0x7   :  { %22 = vsyncpa [#allocation7], 0 }
   0x8   :  { %23 = vsyncpa [#allocation10], 0 }
   0x9   :  { %24 = vsyncpa [#allocation5], 0 }
   0xa   :  { %26 = vsyncpa [#allocation5 + $0x1], 0  ;;  %s4678_s29 = smov 0   ;;  %s4680_s30 = smov 0  }
   0xb   :  { %s4682_s15 = smov 0   ;;  %s4684_s16 = smov 0  }
   0xc LB: > { %5340 = sst [smem:[#allocation17_spill]] %s4573_s29  ;;  %s4699_s17 = sadd.s32 4294967295, %s4585_s16   ;;  %s4585_s16 = sphi %s4684_s16, %s5372_s16   ;;  %s4581_s15 = sphi %s4682_s15, %s5369_s15   ;;  %s4577_s30 = sphi %s4680_s30, %s5371_s30   ;;  %s4573_s29 = sphi %s4678_s29, %s5370_s29  }
   0xd   : > { %5341 = sst [smem:[#allocation18_spill]] %s4581_s15  ;;  %s3491_s18 = sadd.s32 4294967294, %s4585_s16  }
   0xe   : > { %p52_p0 = scmp.ne.s32.totalorder %s4577_s30, %s4573_s29  ;;  %p5328_p1 = scmp.eq.s32.totalorder %s4699_s17, 0 }
   0xf   : > { %p360_p3 = scmp.eq.s32.totalorder %s3491_s18, 1  ;;  %p3492_p5 = scmp.ge.s32.totalorder %s4585_s16, 1 }
  0x10   : > { %p4708_p4 = por %p5328_p1, %p52_p0  ;;  %p367_p7 = scmp.lt.s32.totalorder %s4585_s16, 3 }
  0x11   : > { %p4713_p6 = por %p360_p3, %p52_p0  ;;  %s4587_s22 = smov [#allocation6]  }
  0x12   : > { %s5342_s19 = scalar_select %p4708_p4, 1, 0 }
  0x13   : > { %s5343_s20 = scalar_select %p4713_p6, 1, 0 }
  0x14   : > { %p4718_p8 = pnand %p3492_p5, %p367_p7  ;;  %s379_s23 = sshll.u32 %s4587_s22, 4  ;;  %s380_s23 = int_to_ptr.vmem [resolvable:$true] %s379_s23 }
  0x15   : > { %5344 = sst [smem:[#allocation19_spill]] %s5343_s20  ;;  %s4588_s25 = smov [#allocation9]  }
  0x16   : > { %s5345_s21 = scalar_select %p4718_p8, 1, 0 }
  0x17   : > { %p3865_p9 = pneg %p4718_p8  ;;  %s417_s26 = sshll.u32 %s4588_s25, 4  ;;  %s418_s26 = int_to_ptr.vmem [resolvable:$true] %s417_s26 }
  0x18   : > { %s4392_s27 = scalar_lea.vmem %s380_s23, 12288  ;;  %p4400_p5 = scmp.lt.s32.totalorder %s380_s23, %s380_s23 }
  0x19   : > { %p4727_p11 = pnand %p3865_p9, %p5328_p1  ;;  %p4393_p13 = scmp.ne.s32.totalorder %s380_s23, %s4392_s27 }
  0x1a   : > { %p4401_p7 = scmp.lt.s32.totalorder %s4392_s27, %s4392_s27 }
  0x1b   : > { %p4383_p12 = pneg %p4727_p11 }
  0x1c   : > { %p4402_p10 = por %p4401_p7, %p4400_p5 }
  0x1d   : > { %p4395_p0 = pnand %p4393_p13, %p4383_p12 }
  0x1f   : > { %p4396_p3 = pneg %p4395_p0 }
  0x21   : > { %p4403_p9 = pnand %p4402_p10, %p4396_p3 }
  0x23   : > { %4406 = shalt.err (!%p4403_p9)
}
  0x24   : > { %s4589_s28 = smov 384   ;;  %s4590_s18 = smov 24  }
  0x25   : > { %s5347_s2 = sld [smem:[#allocation21_spill]]  ;;  %s4418_s20 = scalar_lea.vmem %s418_s26, 8192 }
  0x26   : > { %p4419_p1 = scmp.ne.s32.totalorder %s418_s26, %s4418_s20  ;;  %p4426_p2 = scmp.lt.s32.totalorder %s418_s26, %s418_s26 }
  0x27   : > { %p4427_p6 = scmp.lt.s32.totalorder %s4418_s20, %s4418_s20 }
  0x28   : > { %p4421_p13 = pnand %p4419_p1, %p4383_p12 }
  0x29   : > { %p4428_p5 = por %p4427_p6, %p4426_p2 }
  0x2a   : > { %p4422_p0 = pneg %p4421_p13 }
  0x2b   : > { %3868 = dma.hbm_to_vmem [thread:$0]  (!%p4727_p11), %s5347_s2, 12288, %s380_s23, [#allocation7], %s4589_s28, %s4589_s28, %s4590_s18  }
  0x2c   : > { %p4429_p10 = pnand %p4428_p5, %p4422_p0 }
  0x2e   : > { %4432 = shalt.err (!%p4429_p10)
}
  0x2f   : > { %s5330_s27 = smov 256   ;;  %s5331_s29 = smov 16  }
  0x30   : > { %s5348_s8 = sld [smem:[#allocation23_spill]]  ;;  %s4593_s18 = smov [#allocation8]  }
  0x31   : > { %s395_s22 = sshll.u32 %s4593_s18, 4  ;;  %s396_s22 = int_to_ptr.vmem [resolvable:$true] %s395_s22 }
  0x32   : > { %s4444_s25 = scalar_lea.vmem %s396_s22, 4096  ;;  %p4452_p3 = scmp.lt.s32.totalorder %s396_s22, %s396_s22 }
  0x33   : > { %p4445_p1 = scmp.ne.s32.totalorder %s396_s22, %s4444_s25  ;;  %p4453_p7 = scmp.lt.s32.totalorder %s4444_s25, %s4444_s25 }
  0x35   : > { %p4447_p2 = pnand %p4445_p1, %p4383_p12  ;;  %p4454_p9 = por %p4453_p7, %p4452_p3 }
  0x36   : > { %3874 = dma.hbm_to_vmem [thread:$0]  (!%p4727_p11), %s5348_s8, 8192, %s418_s26, [#allocation10], %s5330_s27, %s5330_s27, %s5331_s29  }
  0x37   : > { %p4448_p6 = pneg %p4447_p2 }
  0x39   : > { %p4455_p13 = pnand %p4454_p9, %p4448_p6 }
  0x3b   : > { %4458 = shalt.err (!%p4455_p13)
}
  0x3c   : > { %s4594_s20 = smov 128   ;;  %s4595_s2 = smov 8  }
  0x3d   : > { %s5349_s4 = sld [smem:[#allocation22_spill]]  ;;  %s4596_s28 = smov [#allocation11]  }
  0x3e   : > { %s433_s18 = sshll.u32 %s4596_s28, 4  ;;  %s434_s18 = int_to_ptr.vmem [resolvable:$true] %s433_s18 }
  0x3f   : > { %s4470_s27 = scalar_lea.vmem %s434_s18, 8192  ;;  %p4478_p1 = scmp.lt.s32.totalorder %s434_s18, %s434_s18 }
  0x40   : > { %p4471_p0 = scmp.ne.s32.totalorder %s434_s18, %s4470_s27  ;;  %p4479_p2 = scmp.lt.s32.totalorder %s4470_s27, %s4470_s27 }
  0x42   : > { %p4473_p5 = pnand %p4471_p0, %p4383_p12  ;;  %p4480_p6 = por %p4479_p2, %p4478_p1 }
  0x43   : > { %3871 = dma.hbm_to_vmem [thread:$0]  (!%p4727_p11), %s5349_s4, 4096, %s396_s22, [#allocation7], %s4594_s20, %s4594_s20, %s4595_s2  }
  0x44   : > { %p4474_p10 = pneg %p4473_p5 }
  0x46   : > { %p4481_p3 = pnand %p4480_p6, %p4474_p10 }
  0x48   : > { %4484 = shalt.err (!%p4481_p3)
}
  0x49   : > { %s5350_s10 = sld [smem:[#allocation24_spill]]  ;;  %s4769_s27 = sadd.s32 1, %s4585_s16  }
  0x4a   : > { %s39_s22 = sadd.s32 1, %s4581_s15  ;;  %s36_s24 = ssub.s32 %s4585_s16, %s4769_s27 }
  0x4b   : > { %p46_p12 = scmp.ne.s32.totalorder %s4581_s15, %s4577_s30  ;;  %p37_p7 = scmp.eq.s32.totalorder %s36_s24, 0 }
  0x4c   : > { %p47_p9 = scmp.eq.s32.totalorder %s4585_s16, 0  ;;  %p5351_p13 = scmp.eq.s32.totalorder %s4699_s17, 1 }
  0x4d   : > { %p3890_p5 = scmp.lt.s32.totalorder %s4585_s16, 2  ;;  %s456_s23 = sand.u32 1, %s4581_s15  }
  0x4e   : > { %p4779_p0 = por %p5351_p13, %p46_p12  ;;  %p48_p10 = por %p47_p9, %p46_p12 }
  0x4f   : > { %3877 = dma.hbm_to_vmem [thread:$0]  (!%p4727_p11), %s5350_s10, 8192, %s434_s18, [#allocation10], %s4594_s20, %s4594_s20, %s4595_s2  }
  0x50   : > { %s5352_s29 = scalar_select %p4779_p0, 1, 0 }
  0x51   : > { %s4785_s26 = scalar_select %p37_p7, %s4581_s15, %s39_s22  }
  0x52   : > { %s3498_s28 = sshll.u32 %s456_s23, 6  ;;  %s3778_s2 = sshll.u32 %s4585_s16, 10 }
  0x53   : > { %5353 = sst [smem:[#allocation20_spill]] %s4785_s26  ;;  %s4792_s25 = scalar_lea.hbm %s5312_s0, %s3778_s2 }
  0x54   : > { %s460_s24 = scalar_lea.vmem [#allocation3], %s3498_s28  ;;  %p4796_p11 = pnand %p3890_p5, %p48_p10 }
  0x55   : > { %s468_s4 = sshll.u32 %s460_s24, 4  ;;  %s4800_s22 = scalar_lea.sflag [#allocation4], %s456_s23  ;;  %s4794_s4 = int_to_ptr.vmem [resolvable:$true] %s468_s4 }
  0x56   : > { %s4485_s10 = scalar_lea.hbm %s4792_s25, 1024  ;;  %p4487_p2 = pneg %p4796_p11 }
  0x57   : > { %p4486_p1 = scmp.ne.s32.totalorder %s4792_s25, %s4485_s10  ;;  %s4490_s28 = scalar_lea.hbm %s5312_s0, 2048 }
  0x58   : > { %p4491_p12 = scmp.lt.s32.totalorder %s4792_s25, %s5312_s0  ;;  %p4492_p7 = scmp.lt.s32.totalorder %s4490_s28, %s4485_s10 }
  0x59   : > { %p4488_p6 = pnand %p4487_p2, %p4486_p1 }
  0x5a   : > { %p4493_p9 = por %p4492_p7, %p4491_p12 }
  0x5b   : > { %p4489_p3 = pneg %p4488_p6 }
  0x5d   : > { %p4494_p13 = pnand %p4493_p9, %p4489_p3 }
  0x5f   : > { %4497 = shalt.err (!%p4494_p13)
}
  0x60   : > { %s4498_s23 = scalar_lea.vmem %s4794_s4, 1024  ;;  %s4597_s26 = smov [#allocation3]  }
  0x61   : > { %p4499_p5 = scmp.ne.s32.totalorder %s4794_s4, %s4498_s23  ;;  %s4503_s15 = sshll.u32 %s4597_s26, 4  ;;  %s4504_s15 = int_to_ptr.vmem [resolvable:$false] %s4503_s15 }
  0x62   : > { %s4505_s2 = scalar_lea.vmem %s4504_s15, 2048  ;;  %p4506_p6 = scmp.lt.s32.totalorder %s4794_s4, %s4504_s15 }
  0x63   : > { %p4501_p10 = pnand %p4499_p5, %p4487_p2  ;;  %p4507_p0 = scmp.lt.s32.totalorder %s4505_s2, %s4498_s23 }
  0x65   : > { %p4502_p1 = pneg %p4501_p10  ;;  %p4508_p4 = por %p4507_p0, %p4506_p6 }
  0x67   : > { %p4509_p8 = pnand %p4508_p4, %p4502_p1 }
  0x69   : > { %4512 = shalt.err (!%p4509_p8)
}
  0x6a   : > { %s5355_s10 = smov 16   ;;  %s5356_s20 = smov 256  }
  0x6b   : > { %3881 = dma.hbm_to_vmem [thread:$0]  (!%p4796_p11), %s4792_s25, 1024, %s4794_s4, %s4800_s22, %s5356_s20, %s5356_s20, %s5355_s10  }
  0x6c   : > { %p5357_p2 = scmp.ne.s32.totalorder %s5345_s21, 0 }
  0x6d   : > { %s4827_s26 = sand.u32 (!%p5357_p2), 1, %s4577_s30   ;;  %p5358_p4 = scmp.ne.s32.totalorder (!%p5357_p2), %s5342_s19, 0 }
  0x6e   : > { %488 = sbr.rel (%p5357_p2) target bundleno = 3923 (0xf53), region = 76  ;;  %s3503_s15 = sshll.u32 (!%p5357_p2), %s4827_s26, 6 }
  0x6f   : > { %s491_s28 = scalar_lea.sflag (!%p5357_p2), [#allocation4], %s4827_s26  ;;  %s4833_s8 = scalar_lea.vmem (!%p5357_p2), [#allocation3], %s3503_s15 }
  0x73   : > { %4556 = dma.done.wait (%p5358_p4), %s491_s28, 1024  }
  0x74   : > { %4558 = vsyncadd (%p5358_p4), %s491_s28, 4294966272  ;;  %p5359_p8 = scmp.eq.s32.totalorder %s4699_s17, 0 }
  0x76   : > { %4560 = dma.done.wait (%p5359_p8), [#allocation7], 16384   ;;  %p5360_p0 = pmov %p5359_p8 }
  0x78   : > { %4562 = vsyncadd (%p5360_p0), [#allocation7], 4294950912  ;;  %p5361_p11 = pmov %p5360_p0 }
  0x79   : > { %p5362_p3 = pmov %p5360_p0 }
  0x7a   : > { %4564 = dma.done.wait (%p5361_p11), [#allocation10], 16384  }
  0x7b   : > { %4566 = vsyncadd (%p5362_p3), [#allocation10], 4294950912  ;;  %v3942_v0 = vld [vmem:[#allocation6 + $0x15c] ss:$24 sps:$4 sm:$0xff]   ;;  %v3944_v1 = vld [vmem:[#allocation6 + $0x158] ss:$24 sps:$4 sm:$0xff]  }
  0x7c   : > { %1240 = vmatprep.subr.bf16.mxu1 %v3942_v0  ;;  %v3945_v2 = vld [vmem:[#allocation6 + $0x12c] ss:$24 sps:$4 sm:$0xff]   ;;  %v3947_v3 = vld [vmem:[#allocation6 + $0x128] ss:$24 sps:$4 sm:$0xff]   ;;  %v3951_v6 = vld [vmem:[#allocation6 + $0xfc] ss:$24 sps:$4 sm:$0xff]  }
  0x7d   : > { %1241 = vmatpush1.bf16.msra.mxu1 %v3944_v1  ;;  %v3948_v4 = vld [vmem:[#allocation6 + $0x154] ss:$24 sps:$4 sm:$0xff]   ;;  %v3950_v5 = vld [vmem:[#allocation6 + $0x150] ss:$24 sps:$4 sm:$0xff]   ;;  %v3954_v7 = vld [vmem:[#allocation6 + $0x124] ss:$24 sps:$4 sm:$0xff]  }
  0x7e   : > { %1242 = vmatprep.subr.bf16.mxu1 %v3945_v2  ;;  %1187 = vmatprep.subr.bf16.mxu0 %v3948_v4  ;;  %v3956_v8 = vld [vmem:[#allocation6 + $0x120] ss:$24 sps:$4 sm:$0xff]   ;;  %v3957_v10 = vld [vmem:[#allocation6 + $0xcc] ss:$24 sps:$4 sm:$0xff]   ;;  %v3962_v12 = vld [vmem:[#allocation6 + $0xf0] ss:$24 sps:$4 sm:$0xff]  }
  0x7f   : > { %1188 = vmatpush1.bf16.msra.mxu0 %v3950_v5  ;;  %v3953_v9 = vld [vmem:[#allocation6 + $0xf8] ss:$24 sps:$4 sm:$0xff]   ;;  %v3960_v11 = vld [vmem:[#allocation6 + $0xf4] ss:$24 sps:$4 sm:$0xff]   ;;  %v3959_v13 = vld [vmem:[#allocation6 + $0xc8] ss:$24 sps:$4 sm:$0xff]  }
  0x80   : > { %1189 = vmatprep.subr.bf16.mxu0 %v3954_v7  ;;  %v3966_v14 = vld [vmem:[#allocation6 + $0xc4] ss:$24 sps:$4 sm:$0xff]   ;;  %v3968_v16 = vld [vmem:[#allocation6 + $0xc0] ss:$24 sps:$4 sm:$0xff]   ;;  %v3972_v18 = vld [vmem:[#allocation6 + $0x94] ss:$24 sps:$4 sm:$0xff]  }
  0x81   : > { %1243 = vmatpush1.bf16.msra.mxu1 %v3947_v3  ;;  %v3963_v15 = vld [vmem:[#allocation6 + $0x9c] ss:$24 sps:$4 sm:$0xff]   ;;  %v3965_v17 = vld [vmem:[#allocation6 + $0x98] ss:$24 sps:$4 sm:$0xff]   ;;  %v3969_v19 = vld [vmem:[#allocation6 + $0x6c] ss:$24 sps:$4 sm:$0xff]  }
  0x82   : > { %1244 = vmatprep.subr.bf16.mxu1 %v3951_v6  ;;  %v3974_v20 = vld [vmem:[#allocation6 + $0x90] ss:$24 sps:$4 sm:$0xff]   ;;  %v3978_v22 = vld [vmem:[#allocation6 + $0x64] ss:$24 sps:$4 sm:$0xff]   ;;  %v3980_v24 = vld [vmem:[#allocation6 + $0x60] ss:$24 sps:$4 sm:$0xff]  }
  0x83   : > { %1190 = vmatpush1.bf16.msra.mxu0 %v3956_v8  ;;  %v3971_v21 = vld [vmem:[#allocation6 + $0x68] ss:$24 sps:$4 sm:$0xff]   ;;  %v3975_v23 = vld [vmem:[#allocation6 + $0x3c] ss:$24 sps:$4 sm:$0xff]   ;;  %v3977_v25 = vld [vmem:[#allocation6 + $0x38] ss:$24 sps:$4 sm:$0xff]  }
  0x84   : > { %1191 = vmatprep.subr.bf16.mxu0 %v3960_v11  ;;  %v3984_v26 = vld [vmem:[#allocation6 + $0x34] ss:$24 sps:$4 sm:$0xff]   ;;  %v3986_v28 = vld [vmem:[#allocation6 + $0x30] ss:$24 sps:$4 sm:$0xff]   ;;  %v3990_v30 = vld [vmem:[#allocation6 + $0x4] ss:$24 sps:$4 sm:$0xff]  }
  0x85   : > { %1245 = vmatpush1.bf16.msra.mxu1 %v3953_v9  ;;  %v3981_v27 = vld [vmem:[#allocation6 + $0xc] ss:$24 sps:$4 sm:$0xff]   ;;  %v3983_v29 = vld [vmem:[#allocation6 + $0x8] ss:$24 sps:$4 sm:$0xff]   ;;  %v3987_v31 = vld [vmem:[#allocation6 + $0x2dc] ss:$24 sps:$4 sm:$0xff]  }
  0x86   : > { %1246 = vmatprep.subr.bf16.mxu1 %v3957_v10  ;;  %v3992_v32 = vld [vmem:[#allocation6] ss:$24 sps:$4 sm:$0xff]   ;;  %v3996_v34 = vld [vmem:[#allocation6 + $0x2d4] ss:$24 sps:$4 sm:$0xff]   ;;  %v3998_v36 = vld [vmem:[#allocation6 + $0x2d0] ss:$24 sps:$4 sm:$0xff]  }
  0x87   : > { %1192 = vmatpush1.bf16.msra.mxu0 %v3962_v12  ;;  %v3989_v33 = vld [vmem:[#allocation6 + $0x2d8] ss:$24 sps:$4 sm:$0xff]   ;;  %v3993_v35 = vld [vmem:[#allocation6 + $0x2ac] ss:$24 sps:$4 sm:$0xff]   ;;  %v3995_v37 = vld [vmem:[#allocation6 + $0x2a8] ss:$24 sps:$4 sm:$0xff]  }
  0x88   : > { %1193 = vmatprep.subr.bf16.mxu0 %v3966_v14  ;;  %v4002_v38 = vld [vmem:[#allocation6 + $0x2a4] ss:$24 sps:$4 sm:$0xff]   ;;  %v4004_v40 = vld [vmem:[#allocation6 + $0x2a0] ss:$24 sps:$4 sm:$0xff]   ;;  %v4008_v42 = vld [vmem:[#allocation6 + $0x274] ss:$24 sps:$4 sm:$0xff]  }
  0x89   : > { %1247 = vmatpush1.bf16.msra.mxu1 %v3959_v13  ;;  %v3999_v39 = vld [vmem:[#allocation6 + $0x27c] ss:$24 sps:$4 sm:$0xff]   ;;  %v4001_v41 = vld [vmem:[#allocation6 + $0x278] ss:$24 sps:$4 sm:$0xff]   ;;  %v4005_v43 = vld [vmem:[#allocation6 + $0x24c] ss:$24 sps:$4 sm:$0xff]   ;;  %v677_v13 = vlaneseq }
  0x8a   : > { %1248 = vmatprep.subr.bf16.mxu1 %v3963_v15  ;;  %v568_v44 = vld [vmem:[%s4833_s8 + $0x8] sm:$0xff]  ;;  %v570_v45 = vld [vmem:[%s4833_s8 + $0x18] sm:$0xff]  ;;  %v567_v1 = vld [vmem:[%s4833_s8] sm:$0xff]  ;;  %v4598_v12 = vmov 0.0   ;;  %vm4599_vm0 = vmmov 0   ;;  %s3509_s21 = sshll.u32 %s4699_s17, 1 }
  0x8b   : > { %1194 = vmatpush1.bf16.msra.mxu0 %v3968_v16  ;;  %v4007_v46 = vld [vmem:[#allocation6 + $0x248] ss:$24 sps:$4 sm:$0xff]   ;;  %v576_v48 = vpack.c.bf16 %v570_v45, %v568_v44  ;;  %v4011_v49 = vld [vmem:[#allocation6 + $0x21c] ss:$24 sps:$4 sm:$0xff]   ;;  %v4013_v52 = vld [vmem:[#allocation6 + $0x218] ss:$24 sps:$4 sm:$0xff]  }
  0x8c   : > { %1195 = vmatprep.subr.bf16.mxu0 %v3972_v18  ;;  %v4010_v47 = vld [vmem:[#allocation6 + $0x270] ss:$24 sps:$4 sm:$0xff]   ;;  %v4014_v50 = vld [vmem:[#allocation6 + $0x244] ss:$24 sps:$4 sm:$0xff]   ;;  %v4016_v51 = vld [vmem:[#allocation6 + $0x240] ss:$24 sps:$4 sm:$0xff]  }
  0x8d   : > { %1249 = vmatpush1.bf16.msra.mxu1 %v3965_v17  ;;  %1272 = vmatprep.mubr.bf16.mxu1 %v576_v48  ;;  %v4020_v53 = vld [vmem:[#allocation6 + $0x214] ss:$24 sps:$4 sm:$0xff]   ;;  %v4022_v55 = vld [vmem:[#allocation6 + $0x210] ss:$24 sps:$4 sm:$0xff]   ;;  %v4026_v57 = vld [vmem:[#allocation6 + $0x1e4] ss:$24 sps:$4 sm:$0xff]  }
  0x8e   : > { %1250 = vmatprep.subr.bf16.mxu1 %v3969_v19  ;;  %1219 = vmatprep.mubr.bf16.mxu0 %v576_v48  ;;  %v4017_v54 = vld [vmem:[#allocation6 + $0x1ec] ss:$24 sps:$4 sm:$0xff]   ;;  %v4019_v56 = vld [vmem:[#allocation6 + $0x1e8] ss:$24 sps:$4 sm:$0xff]   ;;  %v4023_v58 = vld [vmem:[#allocation6 + $0x1bc] ss:$24 sps:$4 sm:$0xff]  }
  0x8f   : > { %1196 = vmatpush1.bf16.msra.mxu0 %v3974_v20  ;;  %v4028_v59 = vld [vmem:[#allocation6 + $0x1e0] ss:$24 sps:$4 sm:$0xff]   ;;  %v4032_v61 = vld [vmem:[#allocation6 + $0x1b4] ss:$24 sps:$4 sm:$0xff]   ;;  %v4034_v63 = vld [vmem:[#allocation6 + $0x1b0] ss:$24 sps:$4 sm:$0xff]  }
  0x90   : > { %1197 = vmatprep.subr.bf16.mxu0 %v3978_v22  ;;  %v4025_v60 = vld [vmem:[#allocation6 + $0x1b8] ss:$24 sps:$4 sm:$0xff]   ;;  %v4029_v62 = vld [vmem:[#allocation6 + $0x18c] ss:$24 sps:$4 sm:$0xff]   ;;  %v4031_v0 = vld [vmem:[#allocation6 + $0x188] ss:$24 sps:$4 sm:$0xff]  }
  0x91   : > { %1251 = vmatpush1.bf16.msra.mxu1 %v3971_v21  ;;  %v569_v2 = vld [vmem:[%s4833_s8 + $0x10] sm:$0xff]  ;;  %v4035_v3 = vld [vmem:[#allocation6 + $0x184] ss:$24 sps:$4 sm:$0xff]   ;;  %v4037_v4 = vld [vmem:[#allocation6 + $0x180] ss:$24 sps:$4 sm:$0xff]   ;;  %v4873_v14 = vshrl.u32 %v677_v13, 7 }
  0x92   : > { %1252 = vmatprep.subr.bf16.mxu1 %v3975_v23  ;;  %v4851_v5 = vpack.c.bf16 %v569_v2, %v567_v1  ;;  %v572_v6 = vld [vmem:[%s4833_s8 + $0x28] sm:$0xff]  ;;  %v574_v7 = vld [vmem:[%s4833_s8 + $0x38] sm:$0xff]  ;;  %v4860_v9 = vld [vmem:[%s4833_s8 + $0x20] sm:$0xff]  ;;  %p561_p12 = scmp.lt.s32.totalorder %s3509_s21, 3  ;;  %vm1405_vm1 = vcmask 130048   ;;  %s5252_s23 = scalar_lea.vmem [#allocation12], %s3503_s15 }
  0x93   : > { %1198 = vmatpush1.bf16.msra.mxu0 %v3980_v24  ;;  %v4857_v8 = vpack.c.bf16 %v574_v7, %v572_v6  ;;  %v573_v10 = vld [vmem:[%s4833_s8 + $0x30] sm:$0xff]  ;;  %v687_v15 = vsub.s32 2, %v4873_v14  ;;  %v4879_v16 = vld [vmem:[%s5315_s3] sm:$0x3f]  ;;  %v691_v17 = vsub.s32 3, %v4873_v14  ;;  %v4886_v20 = vsub.s32 0, %v4873_v14 }
  0x94   : > { %1199 = vmatprep.subr.bf16.mxu0 %v3984_v26  ;;  %v4864_v11 = vpack.c.bf16 %v573_v10, %v4860_v9  ;;  %v4038_v44 = vld [vmem:[#allocation6 + $0x160] ss:$24 sps:$4 sm:$0xff]   ;;  %v4040_v45 = vld [vmem:[#allocation6 + $0x164] ss:$24 sps:$4 sm:$0xff]   ;;  %v4073_v2 = vld [vmem:[#allocation6 + $0x254] ss:$24 sps:$4 sm:$0xff]  }
  0x95   : > { %1253 = vmatpush1.bf16.msra.mxu1 %v3977_v25  ;;  %v688_v19 = vrot.slane %v4879_v16, %v687_v15  ;;  %v4891_v22 = vrot.slane %v4879_v16, %v691_v17  ;;  %v4068_v1 = vld [vmem:[#allocation6 + $0x280] ss:$24 sps:$4 sm:$0xff]   ;;  %v4079_v7 = vld [vmem:[#allocation6 + $0x1f4] ss:$24 sps:$4 sm:$0xff]   ;;  %v4077_v10 = vld [vmem:[#allocation6 + $0x1f0] ss:$24 sps:$4 sm:$0xff]  }
  0x96   : > { %1254 = vmatprep.subr.bf16.mxu1 %v3981_v27  ;;  %v4074_v6 = vld [vmem:[#allocation6 + $0x220] ss:$24 sps:$4 sm:$0xff]   ;;  %v4082_v13 = vld [vmem:[#allocation6 + $0x1c4] ss:$24 sps:$4 sm:$0xff]   ;;  %s5374_s21 = smov (!%p561_p12, %s3509_s21), 3  ;;  %s3780_s15 = sshll.u32 %s4699_s17, 10 }
  0x97   : > { %1200 = vmatpush1.bf16.msra.mxu0 %v3986_v28  ;;  %s4927_s18 = scalar_lea.vmem %s5313_s1, %s5374_s21  ;;  %s3371_s2 = sshll.u32 %s5252_s23, 4  ;;  %s5267_s2 = int_to_ptr.vmem [resolvable:$true] %s3371_s2 }
  0x98   : > { %1201 = vmatprep.subr.bf16.mxu0 %v3990_v30  ;;  %s5265_s28 = scalar_lea.hbm %s5326_s14, %s3780_s15  ;;  %s3357_s17 = scalar_lea.sflag [#allocation5], %s4827_s26 }
  0x99   : > { %1255 = vmatpush1.bf16.msra.mxu1 %v3983_v29  ;;  %v4897_v29 = vrot.slane %v4879_v16, %v4886_v20  ;;  %p5363_p9 = scmp.ne.s32.totalorder %s5352_s29, 0  ;;  %s4600_s4 = smov [#allocation12]  }
  0x9a   : > { %1256 = vmatprep.subr.bf16.mxu1 %v3987_v31  ;;  %s4517_s19 = sshll.u32 %s4600_s4, 4  ;;  %s4518_s19 = int_to_ptr.vmem [resolvable:$false] %s4517_s19 }
  0x9b   : > { %1202 = vmatpush1.bf16.msra.mxu0 %v3992_v32  ;;  %s4519_s21 = scalar_lea.vmem %s4518_s19, 2048  ;;  %p4520_p10 = scmp.lt.s32.totalorder %s5267_s2, %s4518_s19 }
  0x9c   : > { %1203 = vmatprep.subr.bf16.mxu0 %v3996_v34 }
  0x9d   : > { %1257 = vmatpush2.bf16.msra.mxu1 %v3989_v33 }
  0x9e   : > { %1258 = vmatprep.subr.bf16.mxu1 %v3993_v35 }
  0x9f   : > { %1204 = vmatpush2.bf16.msra.mxu0 %v3998_v36 }
  0xa0   : > { %1205 = vmatprep.subr.bf16.mxu0 %v4002_v38 }
  0xa1   : > { %1259 = vmatpush2.bf16.msra.mxu1 %v3995_v37 }
  0xa2   : > { %1260 = vmatprep.subr.bf16.mxu1 %v3999_v39 }
  0xa3   : > { %1206 = vmatpush2.bf16.msra.mxu0 %v4004_v40 }
  0xa4   : > { %1207 = vmatprep.subr.bf16.mxu0 %v4008_v42 }
  0xa5   : > { %1261 = vmatpush2.bf16.msra.mxu1 %v4001_v41 }
  0xa6   : > { %1262 = vmatprep.subr.bf16.mxu1 %v4005_v43 }
  0xa7   : > { %1208 = vmatpush2.bf16.msra.mxu0 %v4010_v47  ;;  %v4041_v47 = vld [vmem:[#allocation6 + $0x130] ss:$24 sps:$4 sm:$0xff]  }
  0xa8   : > { %1209 = vmatprep.subr.bf16.mxu0 %v4014_v50  ;;  %v4049_v50 = vld [vmem:[#allocation6 + $0xd4] ss:$24 sps:$4 sm:$0xff]  }
  0xa9   : > { %1263 = vmatpush2.bf16.msra.mxu1 %v4007_v46  ;;  %v4043_v46 = vld [vmem:[#allocation6 + $0x134] ss:$24 sps:$4 sm:$0xff]  }
  0xaa   : > { %1264 = vmatprep.subr.bf16.mxu1 %v4011_v49  ;;  %v4044_v49 = vld [vmem:[#allocation6 + $0x100] ss:$24 sps:$4 sm:$0xff]  }
  0xab   : > { %1210 = vmatpush2.bf16.msra.mxu0 %v4016_v51  ;;  %v4047_v51 = vld [vmem:[#allocation6 + $0xd0] ss:$24 sps:$4 sm:$0xff]  }
  0xac   : > { %1211 = vmatprep.subr.bf16.mxu0 %v4020_v53  ;;  %v4050_v53 = vld [vmem:[#allocation6 + $0xa0] ss:$24 sps:$4 sm:$0xff]  }
  0xad   : > { %1265 = vmatpush2.bf16.msra.mxu1 %v4013_v52  ;;  %v4052_v52 = vld [vmem:[#allocation6 + $0xa4] ss:$24 sps:$4 sm:$0xff]  }
  0xae   : > { %1266 = vmatprep.subr.bf16.mxu1 %v4017_v54  ;;  %v4055_v54 = vld [vmem:[#allocation6 + $0x74] ss:$24 sps:$4 sm:$0xff]  }
  0xaf   : > { %1212 = vmatpush2.bf16.msra.mxu0 %v4022_v55  ;;  %v4053_v55 = vld [vmem:[#allocation6 + $0x70] ss:$24 sps:$4 sm:$0xff]  }
  0xb0   : > { %1213 = vmatprep.subr.bf16.mxu0 %v4026_v57  ;;  %v4056_v57 = vld [vmem:[#allocation6 + $0x40] ss:$24 sps:$4 sm:$0xff]  }
  0xb1   : > { %1267 = vmatpush2.bf16.msra.mxu1 %v4019_v56  ;;  %v4058_v56 = vld [vmem:[#allocation6 + $0x44] ss:$24 sps:$4 sm:$0xff]  }
  0xb2   : > { %1268 = vmatprep.subr.bf16.mxu1 %v4023_v58  ;;  %v4061_v58 = vld [vmem:[#allocation6 + $0x14] ss:$24 sps:$4 sm:$0xff]  }
  0xb3   : > { %1214 = vmatpush2.bf16.msra.mxu0 %v4028_v59  ;;  %v4059_v59 = vld [vmem:[#allocation6 + $0x10] ss:$24 sps:$4 sm:$0xff]  }
  0xb4   : > { %1215 = vmatprep.subr.bf16.mxu0 %v4032_v61  ;;  %v4062_v61 = vld [vmem:[#allocation6 + $0x2e0] ss:$24 sps:$4 sm:$0xff]  }
  0xb5   : > { %1269 = vmatpush2.bf16.msra.mxu1 %v4025_v60  ;;  %v4064_v60 = vld [vmem:[#allocation6 + $0x2e4] ss:$24 sps:$4 sm:$0xff]  }
  0xb6   : > { %1270 = vmatprep.subr.bf16.mxu1 %v4029_v62  ;;  %v4067_v62 = vld [vmem:[#allocation6 + $0x2b4] ss:$24 sps:$4 sm:$0xff]  }
  0xb7   : > { %1216 = vmatpush2.bf16.msra.mxu0 %v4034_v63  ;;  %v4065_v63 = vld [vmem:[#allocation6 + $0x2b0] ss:$24 sps:$4 sm:$0xff]  }
  0xb8   : > { %1217 = vmatprep.subr.bf16.mxu0 %v4035_v3  ;;  %v4071_v3 = vld [vmem:[#allocation6 + $0x250] ss:$24 sps:$4 sm:$0xff]  }
  0xb9   : > { %1271 = vmatpush2.bf16.msra.mxu1 %v4031_v0  ;;  %v4070_v0 = vld [vmem:[#allocation6 + $0x284] ss:$24 sps:$4 sm:$0xff]  }
  0xba   : > { %3797 = vmatprep.subr.bf16.mxu1 %v4598_v12 }
  0xbb   : > { %1218 = vmatpush2.bf16.msra.mxu0 %v4037_v4  ;;  %v4076_v4 = vld [vmem:[#allocation6 + $0x224] ss:$24 sps:$4 sm:$0xff]  }
  0xbc   : > { %1273 = vmatmul.mubr.bf16.vlgmr.msra.gmra.mxu1 %v4851_v5  ;;  %1293 = vmatprep.subr.bf16.mxu0 %v4040_v45 }
  0xbd   : > { %1282 = vmatprep.mubr.bf16.mxu1 %v4857_v8 }
  0xbe   : > { %1220 = vmatmul.mubr.bf16.vlgmr.msra.gmra.mxu0 %v4851_v5 }
  0xbf   : > { %1229 = vmatprep.mubr.bf16.mxu0 %v4857_v8  ;;  %1294 = vmatpush1.bf16.msra.mxu0 %v4038_v44 }
  0xc0   : > { %1295 = vmatprep.subr.bf16.mxu0 %v4043_v46 }
  0xc3   : > { %1296 = vmatpush1.bf16.msra.mxu0 %v4041_v47 }
  0xc4   : > { %1283 = vmatmul.mubr.bf16.gmra.mxu1 %v4864_v11 }
  0xc5   : > { %3799 = vmatprep.mubr.msk.bf16.mxu1 %vm4599_vm0, %v4598_v12 }
  0xc6   : > { %1230 = vmatmul.mubr.bf16.gmra.mxu0 %v4864_v11 }
  0xc7   : > { %1325 = vmatprep.mubr.bf16.mxu0 %v576_v48  ;;  %v4046_v48 = vld [vmem:[#allocation6 + $0x104] ss:$24 sps:$4 sm:$0xff]  }
  0xc8   : > { %1297 = vmatprep.subr.bf16.mxu0 %v4046_v48 }
  0xc9   : > { %1298 = vmatpush1.bf16.msra.mxu0 %v4044_v49 }
  0xca   : > { %1299 = vmatprep.subr.bf16.mxu0 %v4049_v50 }
  0xcd   : > { %1300 = vmatpush1.bf16.msra.mxu0 %v4047_v51 }
  0xce   : > { %1301 = vmatprep.subr.bf16.mxu0 %v4052_v52  ;;  %v4942_v52 = vsub.s32 1, %v4873_v14 }
  0xd1   : > { %1302 = vmatpush1.bf16.msra.mxu0 %v4050_v53 }
  0xd2   : > { %1303 = vmatprep.subr.bf16.mxu0 %v4055_v54 }
  0xd5   : > { %1304 = vmatpush1.bf16.msra.mxu0 %v4053_v55  ;;  %v684_v55 = vrot.slane %v4879_v16, %v4942_v52 }
  0xd6   : > { %1305 = vmatprep.subr.bf16.mxu0 %v4058_v56 }
  0xd9   : > { %1306 = vmatpush1.bf16.msra.mxu0 %v4056_v57 }
  0xda   : > { %1307 = vmatprep.subr.bf16.mxu0 %v4061_v58 }
  0xdd   : > { %1308 = vmatpush1.bf16.msra.mxu0 %v4059_v59 }
  0xde   : > { %1309 = vmatprep.subr.bf16.mxu0 %v4064_v60 }
  0xe1   : > { %1310 = vmatpush2.bf16.msra.mxu0 %v4062_v61  ;;  %v695_v61 = vsub.s32 4, %v4873_v14 }
  0xe2   : > { %1311 = vmatprep.subr.bf16.mxu0 %v4067_v62 }
  0xe5   : > { %1312 = vmatpush2.bf16.msra.mxu0 %v4065_v63 }
  0xe6   : > { %1313 = vmatprep.subr.bf16.mxu0 %v4070_v0  ;;  %v4960_v0 = vrot.slane %v4879_v16, %v695_v61 }
  0xe9   : > { %1314 = vmatpush2.bf16.msra.mxu0 %v4068_v1 }
  0xea   : > { %1315 = vmatprep.subr.bf16.mxu0 %v4073_v2 }
  0xed   : > { %1316 = vmatpush2.bf16.msra.mxu0 %v4071_v3 }
  0xee   : > { %1317 = vmatprep.subr.bf16.mxu0 %v4076_v4 }
  0xf1   : > { %1318 = vmatpush2.bf16.msra.mxu0 %v4074_v6 }
  0xf2   : > { %1319 = vmatprep.subr.bf16.mxu0 %v4079_v7 }
  0xf5   : > { %1320 = vmatpush2.bf16.msra.mxu0 %v4077_v10 }
  0xf6   : > { %1321 = vmatprep.subr.bf16.mxu0 %v4082_v13 }
 0x17c   : > { %v1274_v18 = vpop.f32.mrf.mxu1 }
 0x17d   : > { %v1275_v25 = vadd.f32 %v1274_v18, %v688_v19  ;;  %v4080_v18 = vld [vmem:[#allocation6 + $0x1c0] ss:$24 sps:$4 sm:$0xff]  }
 0x17e   : > { %v1276_v21 = vpop.f32.mrf.mxu1  ;;  %v1221_v23 = vpop.f32.mrf.mxu0  ;;  %1322 = vmatpush2.bf16.msra.mxu0 %v4080_v18 }
 0x17f   : > { %v4900_v30 = vadd.f32 %v1276_v21, %v4891_v22  ;;  %v1222_v35 = vadd.f32 %v1221_v23, %v4897_v29  ;;  %v4083_v21 = vld [vmem:[#allocation6 + $0x190] ss:$24 sps:$4 sm:$0xff]   ;;  %v1358_v23 = vld [vmem:[%s4927_s18] sm:$0x1] }
 0x180   : > { %v1278_v24 = vpop.f32.mrf.mxu1  ;;  %v4893_v27 = vpop.f32.mrf.mxu0 }
 0x181   : > { %v1279_v26 = vadd.f32 %v1278_v24, %v688_v19  ;;  %v1359_v24 = vunpack.c.l.bf16 %v1358_v23 }
 0x182   : > { %v1280_v28 = vpop.f32.mrf.mxu1  ;;  %v1225_v34 = vpop.f32.mrf.mxu0 }
 0x183   : > { %v1350_v31 = vpack.c.bf16 %v1279_v26, %v1275_v25  ;;  %v4903_v32 = vadd.f32 %v1280_v28, %v4891_v22  ;;  %v1226_v36 = vadd.f32 %v1225_v34, %v4897_v29  ;;  %v4931_v25 = vrot.slane %v1359_v24, %v4886_v20 }
 0x184   : > { %v1284_v38 = vpop.f32.mrf.mxu1  ;;  %v1227_v51 = vpop.f32.mrf.mxu0 }
 0x185   : > { %v1351_v33 = vpack.c.bf16 %v4903_v32, %v4900_v30  ;;  %3798 = vmatpush3.bf16.xpose.msra.mxu1 %v1350_v31  ;;  %v1346_v37 = vpack.c.bf16 %v1226_v36, %v1222_v35  ;;  %v4914_v40 = vadd.f32 %v1284_v38, %v688_v19 }
 0x186   : > { %3803 = vmatprep.subr.bf16.mxu1 %v4598_v12  ;;  %v4912_v39 = vpop.f32.mrf.mxu1  ;;  %v1231_v53 = vpop.f32.mrf.mxu0 }
 0x187   : > { %v4947_v56 = vadd.f32 %v1231_v53, %v4897_v29 }
 0x188   : > { %v1288_v41 = vpop.f32.mrf.mxu1  ;;  %v1233_v54 = vpop.f32.mrf.mxu0 }
 0x189   : > { %v4916_v42 = vadd.f32 %v1288_v41, %v688_v19  ;;  %v4085_v19 = vld [vmem:[#allocation6 + $0x194] ss:$24 sps:$4 sm:$0xff]   ;;  %v4949_v58 = vadd.f32 %v1233_v54, %v684_v55 }
 0x18a   : > { %1323 = vmatprep.subr.bf16.mxu0 %v4085_v19  ;;  %v4933_v26 = vpop.f32.mrf.mxu1  ;;  %v1235_v57 = vpop.f32.mrf.mxu0 }
 0x18b   : > { %v1352_v43 = vpack.c.bf16 %v4916_v42, %v4914_v40  ;;  %1324 = vmatpush2.bf16.msra.mxu0 %v4083_v21  ;;  %v4952_v59 = vadd.f32 %v1235_v57, %v4897_v29  ;;  %v699_v21 = vsub.s32 5, %v4873_v14  ;;  %v3608_v40 = vld [vmem:[%s4927_s18 + $0x1] sm:$0x1] }
 0x18c   : > { %3800 = vmatmul.mubr.bf16.vlgmr.msra.gmra.mxu1 %v1346_v37  ;;  %v1237_v60 = vpop.f32.mrf.mxu0 }
 0x18d   : > { %3805 = vmatprep.mubr.msk.bf16.mxu1 %vm4599_vm0, %v4598_v12  ;;  %v4955_v62 = vadd.f32 %v1237_v60, %v684_v55  ;;  %v1348_v63 = vpack.c.bf16 %v4952_v59, %v4947_v56 }
 0x18e   : > { %1326 = vmatmul.mubr.bf16.vlgmr.msra.gmra.mxu0 %v4851_v5 }
 0x18f   : > { %1335 = vmatprep.mubr.bf16.mxu0 %v4857_v8  ;;  %v1349_v2 = vpack.c.bf16 %v4955_v62, %v4949_v58 }
 0x196   : > { %1336 = vmatmul.mubr.bf16.gmra.mxu0 %v4864_v11 }
 0x24c   : > { %v1398_v5 = vpop.f32.mrf.mxu1 }
 0x24d   : > { %v1399_v8 = vadd.f32 %v1398_v5, %v4931_v25 }
 0x24e   : > { %v3801_v11 = vpop.f32.mrf.mxu1  ;;  %v1327_v1 = vpop.f32.mrf.mxu0 }
 0x24f   : > { %v1406_v28 = vsel %vm1405_vm1, %v1399_v8, -inf  ;;  %v1328_v4 = vadd.f32 %v1327_v1, %v4960_v0 }
 0x250   : > { %1407 = vmax.xlane.f32.xlu0 %v1406_v28  ;;  %v1401_v31 = vpop.f32.mrf.mxu1  ;;  %v1329_v3 = vpop.f32.mrf.mxu0  ;;  %v1224_v28 = vadd.f32 %v4893_v27, %v684_v55 }
 0x251   : > { %v1402_v34 = vadd.f32 %v1401_v31, %v4931_v25  ;;  %v1228_v31 = vadd.f32 %v1227_v51, %v684_v55 }
 0x252   : > { %v3802_v35 = vpop.f32.mrf.mxu1  ;;  %v1331_v29 = vpop.f32.mrf.mxu0 }
 0x253   : > { %v1409_v36 = vsel %vm1405_vm1, %v1402_v34, -inf  ;;  %v1332_v6 = vadd.f32 %v1331_v29, %v4960_v0  ;;  %v1347_v35 = vpack.c.bf16 %v1228_v31, %v1224_v28  ;;  %v4091_v29 = vld [vmem:[#allocation8 + $0x64] ss:$8 sps:$4 sm:$0xff]   ;;  %v4107_v31 = vld [vmem:[#allocation8] ss:$8 sps:$4 sm:$0xff]  }
 0x254   : > { %1410 = vmax.xlane.f32.xlu0 %v1409_v36  ;;  %v1333_v11 = vpop.f32.mrf.mxu0  ;;  %v4109_v28 = vld [vmem:[#allocation8 + $0x4] ss:$8 sps:$4 sm:$0xff]  }
 0x255   : > { %v1354_v7 = vpack.c.bf16 %v1332_v6, %v1328_v4  ;;  %v4088_v4 = vld [vmem:[#allocation8 + $0x74] ss:$8 sps:$4 sm:$0xff]   ;;  %v4089_v6 = vld [vmem:[#allocation8 + $0x60] ss:$8 sps:$4 sm:$0xff]  }
 0x256   : > { %2028 = vmatprep.subr.bf16.mxu0 %v4088_v4 }
 0x257   : > { %3804 = vmatpush3.bf16.msra.mxu1 %v1354_v7  ;;  %v4094_v7 = vld [vmem:[#allocation8 + $0x54] ss:$8 sps:$4 sm:$0xff]  }
 0x258   : > { %3809 = vmatprep.subr.bf16.mxu1 %v4598_v12 }
 0x2d9   : > { %v1408_v37 = vpop.xlane.xlu0 %1407 }
 0x2da   : > { %v1412_v38 = vsub.f32 %v1399_v8, %v1408_v37  ;;  %v4969_v8 = vrot.slane %v4879_v16, %v699_v21  ;;  %v4098_v21 = vld [vmem:[#allocation8 + $0x30] ss:$8 sps:$4 sm:$0xff]  }
 0x2dc   : > { %v1414_v41 = vmul.f32 1.442695, %v1412_v38  ;;  %v1334_v16 = vadd.f32 %v1333_v11, %v4969_v8  ;;  %v4104_v11 = vld [vmem:[#allocation8 + $0x10] ss:$8 sps:$4 sm:$0xff]  }
 0x2dd   : > { %v1411_v44 = vpop.xlane.xlu0 %1410 }
 0x2de   : > { %4326 = vpow2.f32 %v1414_v41  ;;  %v1413_v45 = vsub.f32 %v1402_v34, %v1411_v44  ;;  %v1330_v34 = vadd.f32 %v1329_v3, %v4969_v8  ;;  %v4086_v3 = vld [vmem:[#allocation8 + $0x70] ss:$8 sps:$4 sm:$0xff]  }
 0x2df   : > { %2029 = vmatpush1.bf16.msra.mxu0 %v4086_v3 }
 0x2e0   : > { %v1416_v46 = vmul.f32 1.442695, %v1413_v45  ;;  %v1355_v36 = vpack.c.bf16 %v1334_v16, %v1330_v34  ;;  %2030 = vmatprep.subr.bf16.mxu0 %v4091_v29  ;;  %v4112_v34 = vld [vmem:[#allocation8 + $0xf4] ss:$8 sps:$4 sm:$0xff]   ;;  %v4110_v16 = vld [vmem:[#allocation8 + $0xf0] ss:$8 sps:$4 sm:$0xff]  }
 0x2e2   : > { %4328 = vpow2.f32 %v1416_v46 }
 0x2e3   : > { %2031 = vmatpush1.bf16.msra.mxu0 %v4089_v6 }
 0x2e4   : > { %2032 = vmatprep.subr.bf16.mxu0 %v4094_v7 }
 0x2eb   : > { %v4327_v47 = vpop.eup %4326 }
 0x2ec   : > { %v1418_v48 = vsel %vm1405_vm1, %v4327_v47, 0.0 }
 0x2ed   : > { %1419 = vadd.xlane.f32.xlu1 %v1418_v48 }
 0x2ef   : > { %v4329_v49 = vpop.eup %4328 }
 0x2f0   : > { %v1421_v50 = vsel %vm1405_vm1, %v4329_v49, 0.0 }
 0x2f1   : > { %1422 = vadd.xlane.f32.xlu1 %v1421_v50 }
 0x376   : > { %v1420_v10 = vpop.xlane.xlu1 %1419 }
 0x377   : > { %4330 = vrcp.f32 %v1420_v10  ;;  %v4092_v10 = vld [vmem:[#allocation8 + $0x50] ss:$8 sps:$4 sm:$0xff]  }
 0x378   : > { %2033 = vmatpush1.bf16.msra.mxu0 %v4092_v10 }
 0x37a   : > { %v1423_v13 = vpop.xlane.xlu1 %1422 }
 0x37b   : > { %4332 = vrcp.f32 %v1423_v13  ;;  %v4097_v13 = vld [vmem:[#allocation8 + $0x44] ss:$8 sps:$4 sm:$0xff]  }
 0x37c   : > { %2034 = vmatprep.subr.bf16.mxu0 %v4097_v13 }
 0x384   : > { %v4331_v18 = vpop.eup %4330 }
 0x385   : > { %v1426_v23 = vmul.f32 %v4331_v18, %v4327_v47  ;;  %v4095_v18 = vld [vmem:[#allocation8 + $0x40] ss:$8 sps:$4 sm:$0xff]  }
 0x386   : > { %2035 = vmatpush1.bf16.msra.mxu0 %v4095_v18 }
 0x388   : > { %v4333_v19 = vpop.eup %4332 }
 0x389   : > { %v1427_v24 = vmul.f32 %v4333_v19, %v4329_v49  ;;  %v4100_v19 = vld [vmem:[#allocation8 + $0x34] ss:$8 sps:$4 sm:$0xff]  }
 0x38a   : > { %2036 = vmatprep.subr.bf16.mxu0 %v4100_v19 }
 0x38b   : > { %v1428_v5 = vpack.c.bf16 %v1427_v24, %v1426_v23  ;;  %v4103_v23 = vld [vmem:[#allocation8 + $0x24] ss:$8 sps:$4 sm:$0xff]   ;;  %2037 = vmatpush1.bf16.msra.mxu0 %v4098_v21  ;;  %v4101_v24 = vld [vmem:[#allocation8 + $0x20] ss:$8 sps:$4 sm:$0xff]   ;;  %v1337_v21 = vpop.f32.mrf.mxu0 }
 0x38c   : > { %2038 = vmatprep.subr.bf16.mxu0 %v4103_v23 }
 0x38d   : > { %3806 = vmatmul.mubr.msk.bf16.vlgmr.msra.gmra.mxu1 %vm1405_vm1, %v1428_v5  ;;  %v4106_v5 = vld [vmem:[#allocation8 + $0x14] ss:$8 sps:$4 sm:$0xff]   ;;  %v1339_v23 = vpop.f32.mrf.mxu0 }
 0x38e   : > { %3810 = vmatpush3.bf16.xpose.msra.mxu1 %v1351_v33  ;;  %3811 = vmatprep.mubr.msk.bf16.mxu1 %vm4599_vm0, %v4598_v12 }
 0x38f   : > { %3815 = vmatprep.subr.bf16.mxu1 %v4598_v12  ;;  %2039 = vmatpush1.bf16.msra.mxu0 %v4101_v24  ;;  %v1338_v24 = vadd.f32 %v1337_v21, %v4960_v0 }
 0x390   : > { %2040 = vmatprep.subr.bf16.mxu0 %v4106_v5  ;;  %v1341_v5 = vpop.f32.mrf.mxu0 }
 0x393   : > { %2041 = vmatpush1.bf16.msra.mxu0 %v4104_v11 }
 0x394   : > { %2042 = vmatprep.subr.bf16.mxu0 %v4109_v28 }
 0x395   : > { %3812 = vmatmul.mubr.bf16.vlgmr.msra.gmra.mxu1 %v1347_v35  ;;  %v4115_v35 = vld [vmem:[#allocation8 + $0xe4] ss:$8 sps:$4 sm:$0xff]  }
 0x396   : > { %3816 = vmatpush3.bf16.msra.mxu1 %v1355_v36  ;;  %3817 = vmatprep.mubr.msk.bf16.mxu1 %vm4599_vm0, %v4598_v12  ;;  %v4113_v36 = vld [vmem:[#allocation8 + $0xe0] ss:$8 sps:$4 sm:$0xff]  }
 0x397   : > { %3821 = vmatprep.subr.bf16.mxu1 %v4598_v12  ;;  %2043 = vmatpush1.bf16.msra.mxu0 %v4107_v31 }
 0x398   : > { %2044 = vmatprep.subr.bf16.mxu0 %v4112_v34 }
 0x39b   : > { %2045 = vmatpush2.bf16.msra.mxu0 %v4110_v16 }
 0x39c   : > { %2046 = vmatprep.subr.bf16.mxu0 %v4115_v35 }
 0x39f   : > { %2047 = vmatpush2.bf16.msra.mxu0 %v4113_v36 }
 0x44d   : > { %v4984_v30 = vpop.f32.mrf.mxu1 }
 0x44f   : > { %v3807_v32 = vpop.f32.mrf.mxu1 }
 0x450   : > { %v4118_v32 = vld [vmem:[#allocation8 + $0xd4] ss:$8 sps:$4 sm:$0xff]  }
 0x451   : > { %v4986_v27 = vpop.f32.mrf.mxu1  ;;  %2048 = vmatprep.subr.bf16.mxu0 %v4118_v32 }
 0x452   : > { %v1820_v33 = vpack.c.bf16 %v4986_v27, %v4984_v30  ;;  %v1342_v30 = vadd.f32 %v1341_v5, %v4960_v0 }
 0x453   : > { %v3808_v37 = vpop.f32.mrf.mxu1 }
 0x454   : > { %v4116_v37 = vld [vmem:[#allocation8 + $0xd0] ss:$8 sps:$4 sm:$0xff]   ;;  %v1356_v27 = vpack.c.bf16 %v1342_v30, %v1338_v24 }
 0x455   : > { %v1509_v38 = vpop.f32.mrf.mxu1  ;;  %2049 = vmatpush2.bf16.msra.mxu0 %v4116_v37 }
 0x456   : > { %v1510_v41 = vadd.f32 %v1509_v38, %v4931_v25  ;;  %v4121_v38 = vld [vmem:[#allocation8 + $0xc4] ss:$8 sps:$4 sm:$0xff]  }
 0x457   : > { %v3813_v44 = vpop.f32.mrf.mxu1  ;;  %2050 = vmatprep.subr.bf16.mxu0 %v4121_v38 }
 0x458   : > { %v1516_v45 = vsel %vm1405_vm1, %v1510_v41, -inf  ;;  %v4124_v44 = vld [vmem:[#allocation8 + $0xb4] ss:$8 sps:$4 sm:$0xff]  }
 0x459   : > { %1517 = vmax.xlane.f32.xlu0 %v1516_v45  ;;  %v1512_v46 = vpop.f32.mrf.mxu1  ;;  %v4122_v45 = vld [vmem:[#allocation8 + $0xb0] ss:$8 sps:$4 sm:$0xff]  }
 0x45a   : > { %v1513_v47 = vadd.f32 %v1512_v46, %v4931_v25  ;;  %v4127_v46 = vld [vmem:[#allocation8 + $0xa4] ss:$8 sps:$4 sm:$0xff]  }
 0x45b   : > { %v3814_v48 = vpop.f32.mrf.mxu1 }
 0x45c   : > { %v1519_v49 = vsel %vm1405_vm1, %v1513_v47, -inf }
 0x45d   : > { %1520 = vmax.xlane.f32.xlu1 %v1519_v49 }
 0x4e2   : > { %v1518_v50 = vpop.xlane.xlu0 %1517 }
 0x4e3   : > { %v1522_v51 = vsub.f32 %v1510_v41, %v1518_v50  ;;  %v4119_v41 = vld [vmem:[#allocation8 + $0xc0] ss:$8 sps:$4 sm:$0xff]  }
 0x4e4   : > { %2051 = vmatpush2.bf16.msra.mxu0 %v4119_v41 }
 0x4e5   : > { %v1524_v53 = vmul.f32 1.442695, %v1522_v51  ;;  %2052 = vmatprep.subr.bf16.mxu0 %v4124_v44 }
 0x4e6   : > { %v1521_v54 = vpop.xlane.xlu1 %1520 }
 0x4e7   : > { %4334 = vpow2.f32 %v1524_v53  ;;  %v1523_v55 = vsub.f32 %v1513_v47, %v1521_v54  ;;  %v4125_v47 = vld [vmem:[#allocation8 + $0xa0] ss:$8 sps:$4 sm:$0xff]  }
 0x4e8   : > { %2053 = vmatpush2.bf16.msra.mxu0 %v4122_v45  ;;  %v1287_v45 = vadd.f32 %v4912_v39, %v4891_v22 }
 0x4e9   : > { %v1526_v57 = vmul.f32 1.442695, %v1523_v55  ;;  %2054 = vmatprep.subr.bf16.mxu0 %v4127_v46  ;;  %v1291_v46 = vadd.f32 %v4933_v26, %v4891_v22 }
 0x4eb   : > { %4336 = vpow2.f32 %v1526_v57  ;;  %v4128_v57 = vld [vmem:[#allocation8 + $0x90] ss:$8 sps:$4 sm:$0xff]  }
 0x4ec   : > { %2055 = vmatpush2.bf16.msra.mxu0 %v4125_v47 }
 0x4f4   : > { %v4994_v60 = vpop.eup %4334 }
 0x4f5   : > { %v1528_v61 = vsel %vm1405_vm1, %v4994_v60, 0.0 }
 0x4f6   : > { %1529 = vadd.xlane.f32.xlu0 %v1528_v61  ;;  %v4133_v61 = vld [vmem:[#allocation8 + $0x84] ss:$8 sps:$4 sm:$0xff]  }
 0x4f8   : > { %v4998_v1 = vpop.eup %4336 }
 0x4f9   : > { %v1531_v25 = vsel %vm1405_vm1, %v4998_v1, 0.0 }
 0x4fa   : > { %1532 = vadd.xlane.f32.xlu1 %v1531_v25 }
 0x57f   : > { %v1530_v48 = vpop.xlane.xlu0 %1529 }
 0x580   : > { %4338 = vrcp.f32 %v1530_v48 }
 0x583   : > { %v1533_v49 = vpop.xlane.xlu1 %1532 }
 0x584   : > { %4340 = vrcp.f32 %v1533_v49 }
 0x58d   : > { %v4339_v50 = vpop.eup %4338 }
 0x58e   : > { %v1536_v53 = vmul.f32 %v4339_v50, %v4994_v60  ;;  %v4130_v60 = vld [vmem:[#allocation8 + $0x94] ss:$8 sps:$4 sm:$0xff]   ;;  %v1353_v50 = vpack.c.bf16 %v1291_v46, %v1287_v45 }
 0x58f   : > { %2056 = vmatprep.subr.bf16.mxu0 %v4130_v60 }
 0x590   : > { %2057 = vmatpush2.bf16.msra.mxu0 %v4128_v57 }
 0x591   : > { %v4341_v51 = vpop.eup %4340  ;;  %2058 = vmatprep.subr.bf16.mxu0 %v4133_v61 }
 0x592   : > { %v1537_v54 = vmul.f32 %v4341_v51, %v4998_v1  ;;  %v4131_v1 = vld [vmem:[#allocation8 + $0x80] ss:$8 sps:$4 sm:$0xff]   ;;  %v1343_v51 = vpop.f32.mrf.mxu0 }
 0x593   : > { %v1344_v39 = vadd.f32 %v1343_v51, %v4969_v8 }
 0x594   : > { %v1538_v55 = vpack.c.bf16 %v1537_v54, %v1536_v53  ;;  %2059 = vmatpush2.bf16.msra.mxu0 %v4131_v1  ;;  %v1340_v53 = vadd.f32 %v1339_v23, %v4969_v8  ;;  %v4374_v23 = vld [vmem:[%s4833_s8 + $0x8] sm:$0xff] }
 0x596   : > { %3818 = vmatmul.mubr.msk.bf16.vlgmr.msra.gmra.mxu1 %vm1405_vm1, %v1538_v55  ;;  %v1357_v54 = vpack.c.bf16 %v1344_v39, %v1340_v53  ;;  %v4134_v39 = vld [vmem:[#allocation9 + $0xe0] ss:$16 sps:$4 sm:$0xff]  }
 0x597   : > { %3822 = vmatpush3.bf16.xpose.msra.mxu1 %v1352_v43  ;;  %3823 = vmatprep.mubr.msk.bf16.mxu1 %vm4599_vm0, %v4598_v12  ;;  %v1587_v43 = vunpack.c.l.bf16 %v3608_v40 }
 0x598   : > { %3827 = vmatprep.subr.bf16.mxu1 %v4598_v12 }
 0x599   : > { %v5018_v56 = vrot.slane %v1587_v43, %v4886_v20 }
 0x59e   : > { %3824 = vmatmul.mubr.bf16.vlgmr.msra.gmra.mxu1 %v1348_v63 }
 0x59f   : > { %3829 = vmatprep.mubr.msk.bf16.mxu1 %vm4599_vm0, %v4598_v12  ;;  %3828 = vmatpush3.bf16.msra.mxu1 %v1356_v27  ;;  %v4375_v27 = vld [vmem:[%s4833_s8] sm:$0xff] }
 0x5a0   : > { %3833 = vmatprep.subr.bf16.mxu1 %v4598_v12 }
 0x656   : > { %v1576_v42 = vpop.f32.mrf.mxu1 }
 0x658   : > { %v3819_v25 = vpop.f32.mrf.mxu1 }
 0x65a   : > { %v1579_v3 = vpop.f32.mrf.mxu1 }
 0x65b   : > { %v1821_v4 = vpack.c.bf16 %v1579_v3, %v1576_v42 }
 0x65c   : > { %v3820_v59 = vpop.f32.mrf.mxu1 }
 0x65d   : > { %2060 = vmatprep.mubr.bf16.mxu0 %v1821_v4 }
 0x65e   : > { %v1626_v63 = vpop.f32.mrf.mxu1  ;;  %2061 = vmatmul.mubr.bf16.vlgmr.msra.gmra.mxu0 %v1820_v33 }
 0x65f   : > { %v1627_v29 = vadd.f32 %v1626_v63, %v5018_v56 }
 0x660   : > { %v3825_v6 = vpop.f32.mrf.mxu1 }
 0x661   : > { %v1633_v7 = vsel %vm1405_vm1, %v1627_v29, -inf  ;;  %v1856_v6 = vld [vmem:[%s5317_s5] sm:$0x3] }
 0x662   : > { %1634 = vmax.xlane.f32.xlu0 %v1633_v7  ;;  %v1629_v10 = vpop.f32.mrf.mxu1 }
 0x663   : > { %v1630_v13 = vadd.f32 %v1629_v10, %v5018_v56  ;;  %v5064_v10 = vrot.slane %v1856_v6, %v4886_v20 }
 0x664   : > { %v3826_v18 = vpop.f32.mrf.mxu1 }
 0x665   : > { %v1636_v19 = vsel %vm1405_vm1, %v1630_v13, -inf }
 0x666   : > { %1637 = vmax.xlane.f32.xlu1 %v1636_v19 }
 0x6eb   : > { %v1635_v33 = vpop.xlane.xlu0 %1634 }
 0x6ec   : > { %v1639_v11 = vsub.f32 %v1627_v29, %v1635_v33 }
 0x6ee   : > { %v1641_v28 = vmul.f32 1.442695, %v1639_v11 }
 0x6ef   : > { %v1638_v31 = vpop.xlane.xlu1 %1637 }
 0x6f0   : > { %4342 = vpow2.f32 %v1641_v28  ;;  %v1640_v34 = vsub.f32 %v1630_v13, %v1638_v31  ;;  %v4376_v31 = vld [vmem:[%s4833_s8 + $0x18] sm:$0xff] }
 0x6f2   : > { %v1643_v16 = vmul.f32 1.442695, %v1640_v34 }
 0x6f4   : > { %4344 = vpow2.f32 %v1643_v16 }
 0x6fd   : > { %v4343_v35 = vpop.eup %4342 }
 0x6fe   : > { %v1645_v36 = vsel %vm1405_vm1, %v4343_v35, 0.0 }
 0x6ff   : > { %1646 = vadd.xlane.f32.xlu0 %v1645_v36  ;;  %v4377_v36 = vld [vmem:[%s4833_s8 + $0x10] sm:$0xff] }
 0x701   : > { %v4345_v32 = vpop.eup %4344 }
 0x702   : > { %v1648_v37 = vsel %vm1405_vm1, %v4345_v32, 0.0 }
 0x703   : > { %1649 = vadd.xlane.f32.xlu1 %v1648_v37 }
 0x71e   : > { %v2062_v25 = vpop.f32.mrf.mxu0 }
 0x71f   : > { %v2063_v19 = vadd.f32 %v2062_v25, %v5064_v10  ;;  %v4163_v25 = vld [vmem:[#allocation9 + $0x6c] ss:$16 sps:$4 sm:$0xff]  }
 0x720   : > { %v2064_v63 = vpop.f32.mrf.mxu0 }
 0x721   : > { %v5074_v33 = vadd.f32 %v4375_v27, %v2063_v19  ;;  %v4173_v19 = vld [vmem:[#allocation9 + $0x28] ss:$16 sps:$4 sm:$0xff]  }
 0x722   : > { %v2066_v7 = vpop.f32.mrf.mxu0 }
 0x723   : > { %v2067_v11 = vadd.f32 %v2066_v7, %v5064_v10  ;;  %v4172_v7 = vld [vmem:[#allocation9 + $0x24] ss:$16 sps:$4 sm:$0xff]  }
 0x724   : > { %v2068_v18 = vpop.f32.mrf.mxu0 }
 0x788   : > { %v1647_v0 = vpop.xlane.xlu0 %1646 }
 0x789   : > { %4346 = vrcp.f32 %v1647_v0 }
 0x78c   : > { %v1650_v38 = vpop.xlane.xlu1 %1649 }
 0x78d   : > { %4348 = vrcp.f32 %v1650_v38 }
 0x796   : > { %v4347_v41 = vpop.eup %4346 }
 0x797   : > { %v1653_v47 = vmul.f32 %v4347_v41, %v4343_v35 }
 0x79a   : > { %v4349_v44 = vpop.eup %4348 }
 0x79b   : > { %v1654_v48 = vmul.f32 %v4349_v44, %v4345_v32  ;;  %v5084_v32 = vadd.f32 %v4377_v36, %v2067_v11 }
 0x79d   : > { %v1655_v49 = vpack.c.bf16 %v1654_v48, %v1653_v47 }
 0x79f   : > { %3830 = vmatmul.mubr.msk.bf16.vlgmr.msra.gmra.mxu1 %vm1405_vm1, %v1655_v49 }
 0x7a0   : > { %3834 = vmatpush3.bf16.xpose.msra.mxu1 %v1353_v50  ;;  %3835 = vmatprep.mubr.msk.bf16.mxu1 %vm4599_vm0, %v4598_v12 }
 0x7a1   : > { %3839 = vmatprep.subr.bf16.mxu1 %v4598_v12 }
 0x7a7   : > { %3836 = vmatmul.mubr.bf16.vlgmr.msra.gmra.mxu1 %v1349_v2 }
 0x7a8   : > { %3840 = vmatpush3.bf16.msra.mxu1 %v1357_v54  ;;  %3841 = vmatprep.mubr.msk.bf16.mxu1 %vm4599_vm0, %v4598_v12  ;;  %v4136_v54 = vld [vmem:[#allocation9 + $0xe4] ss:$16 sps:$4 sm:$0xff]  }
 0x7a9   : > { %2604 = vmatprep.subr.bf16.mxu1 %v4136_v54 }
 0x85f   : > { %v5047_v22 = vpop.f32.mrf.mxu1 }
 0x861   : > { %v3831_v26 = vpop.f32.mrf.mxu1 }
 0x862   : > { %v4137_v26 = vld [vmem:[#allocation9 + $0xe8] ss:$16 sps:$4 sm:$0xff]  }
 0x863   : > { %v5049_v55 = vpop.f32.mrf.mxu1 }
 0x864   : > { %v1822_v57 = vpack.c.bf16 %v5049_v55, %v5047_v22  ;;  %v4149_v22 = vld [vmem:[#allocation9 + $0xa8] ss:$16 sps:$4 sm:$0xff]   ;;  %v4154_v55 = vld [vmem:[#allocation9 + $0x84] ss:$16 sps:$4 sm:$0xff]  }
 0x865   : > { %v3832_v60 = vpop.f32.mrf.mxu1 }
 0x866   : > { %v4139_v60 = vld [vmem:[#allocation9 + $0xec] ss:$16 sps:$4 sm:$0xff]  }
 0x867   : > { %v1736_v61 = vpop.f32.mrf.mxu1  ;;  %2657 = vmatprep.subr.bf16.mxu0 %v4139_v60 }
 0x868   : > { %v1737_v8 = vadd.f32 %v1736_v61, %v5018_v56  ;;  %v4142_v61 = vld [vmem:[#allocation9 + $0xc4] ss:$16 sps:$4 sm:$0xff]   ;;  %2658 = vmatpush1.bf16.msra.mxu0 %v4137_v26 }
 0x869   : > { %v3837_v1 = vpop.f32.mrf.mxu1 }
 0x86a   : > { %v1743_v58 = vsel %vm1405_vm1, %v1737_v8, -inf  ;;  %v4140_v1 = vld [vmem:[#allocation9 + $0xc0] ss:$16 sps:$4 sm:$0xff]  }
 0x86b   : > { %1744 = vmax.xlane.f32.xlu0 %v1743_v58  ;;  %v1739_v62 = vpop.f32.mrf.mxu1  ;;  %v4143_v58 = vld [vmem:[#allocation9 + $0xc8] ss:$16 sps:$4 sm:$0xff]  }
 0x86c   : > { %v1740_v2 = vadd.f32 %v1739_v62, %v5018_v56  ;;  %v5061_v56 = vrot.slane %v1856_v6, %v4942_v52  ;;  %v4148_v62 = vld [vmem:[#allocation9 + $0xa4] ss:$16 sps:$4 sm:$0xff]   ;;  %v4167_v6 = vld [vmem:[#allocation9 + $0x48] ss:$16 sps:$4 sm:$0xff]  }
 0x86d   : > { %v3838_v12 = vpop.f32.mrf.mxu1 }
 0x86e   : > { %v1746_v40 = vsel %vm1405_vm1, %v1740_v2, -inf  ;;  %v2065_v13 = vadd.f32 %v2064_v63, %v5061_v56  ;;  %v2069_v5 = vadd.f32 %v2068_v18, %v5061_v56  ;;  %v4146_v12 = vld [vmem:[#allocation9 + $0xa0] ss:$16 sps:$4 sm:$0xff]   ;;  %v4169_v63 = vld [vmem:[#allocation9 + $0x4c] ss:$16 sps:$4 sm:$0xff]  }
 0x86f   : > { %1747 = vmax.xlane.f32.xlu1 %v1746_v40  ;;  %v4152_v40 = vld [vmem:[#allocation9 + $0x80] ss:$16 sps:$4 sm:$0xff]  }
 0x870   : > { %v5069_v24 = vadd.f32 %v4374_v23, %v2065_v13  ;;  %v5078_v34 = vadd.f32 %v4376_v31, %v2069_v5  ;;  %v4175_v13 = vld [vmem:[#allocation9 + $0x2c] ss:$16 sps:$4 sm:$0xff]   ;;  %v4170_v18 = vld [vmem:[#allocation9 + $0x20] ss:$16 sps:$4 sm:$0xff]  }
 0x871   : > { %v4181_v23 = vld [vmem:[#allocation9 + $0xc] ss:$16 sps:$4 sm:$0xff]   ;;  %v4176_v5 = vld [vmem:[#allocation9] ss:$16 sps:$4 sm:$0xff]  }
 0x872   : > { %v2091_v16 = vadd.f32 %v5069_v24, %v5074_v33  ;;  %v2094_v37 = vadd.f32 %v5078_v34, %v5084_v32 }
 0x8f4   : > { %v1745_v42 = vpop.xlane.xlu0 %1744 }
 0x8f5   : > { %v1749_v43 = vsub.f32 %v1737_v8, %v1745_v42  ;;  %v4145_v8 = vld [vmem:[#allocation9 + $0xcc] ss:$16 sps:$4 sm:$0xff]   ;;  %v4155_v42 = vld [vmem:[#allocation9 + $0x88] ss:$16 sps:$4 sm:$0xff]  }
 0x8f6   : > { %2659 = vmatprep.subr.bf16.mxu0 %v4145_v8  ;;  %v4184_v8 = vld [vmem:[#allocation9 + $0x1e4] ss:$16 sps:$4 sm:$0xff]  }
 0x8f7   : > { %v1751_v3 = vmul.f32 1.442695, %v1749_v43  ;;  %2660 = vmatpush1.bf16.msra.mxu0 %v4143_v58  ;;  %v4160_v43 = vld [vmem:[#allocation9 + $0x64] ss:$16 sps:$4 sm:$0xff]   ;;  %v4187_v58 = vld [vmem:[#allocation9 + $0x1ec] ss:$16 sps:$4 sm:$0xff]  }
 0x8f8   : > { %v1748_v4 = vpop.xlane.xlu1 %1747 }
 0x8f9   : > { %4350 = vpow2.f32 %v1751_v3  ;;  %v1750_v59 = vsub.f32 %v1740_v2, %v1748_v4  ;;  %v4151_v2 = vld [vmem:[#allocation9 + $0xac] ss:$16 sps:$4 sm:$0xff]   ;;  %v4158_v3 = vld [vmem:[#allocation9 + $0x60] ss:$16 sps:$4 sm:$0xff]   ;;  %v4161_v4 = vld [vmem:[#allocation9 + $0x68] ss:$16 sps:$4 sm:$0xff]  }
 0x8fa   : > { %2661 = vmatprep.subr.bf16.mxu0 %v4151_v2  ;;  %v4193_v2 = vld [vmem:[#allocation9 + $0x1cc] ss:$16 sps:$4 sm:$0xff]  }
 0x8fb   : > { %v1753_v29 = vmul.f32 1.442695, %v1750_v59  ;;  %2662 = vmatpush1.bf16.msra.mxu0 %v4149_v22  ;;  %v4166_v59 = vld [vmem:[#allocation9 + $0x44] ss:$16 sps:$4 sm:$0xff]   ;;  %v4191_v22 = vld [vmem:[#allocation9 + $0x1c8] ss:$16 sps:$4 sm:$0xff]  }
 0x8fd   : > { %4352 = vpow2.f32 %v1753_v29  ;;  %v4164_v29 = vld [vmem:[#allocation9 + $0x40] ss:$16 sps:$4 sm:$0xff]  }
 0x906   : > { %v4351_v21 = vpop.eup %4350 }
 0x907   : > { %v1755_v30 = vsel %vm1405_vm1, %v4351_v21, 0.0 }
 0x908   : > { %1756 = vadd.xlane.f32.xlu0 %v1755_v30  ;;  %v4179_v30 = vld [vmem:[#allocation9 + $0x8] ss:$16 sps:$4 sm:$0xff]  }
 0x90a   : > { %v4353_v28 = vpop.eup %4352 }
 0x90b   : > { %v1758_v35 = vsel %vm1405_vm1, %v4353_v28, 0.0 }
 0x90c   : > { %2092 = vadd.xlane.f32.xlu0 %v2091_v16  ;;  %1759 = vadd.xlane.f32.xlu1 %v1758_v35 }
 0x910   : > { %2095 = vadd.xlane.f32.xlu1 %v2094_v37 }
 0x991   : > { %v1757_v0 = vpop.xlane.xlu0 %1756 }
 0x992   : > { %4354 = vrcp.f32 %v1757_v0 }
 0x995   : > { %v1760_v38 = vpop.xlane.xlu1 %1759  ;;  %v2093_v27 = vpop.xlane.xlu0 %2092 }
 0x996   : > { %4356 = vrcp.f32 %v1760_v38  ;;  %v2104_v11 = vmul.f32 0.00390625, %v2093_v27  ;;  %v4226_v27 = vld [vmem:[#allocation9 + $0x104] ss:$16 sps:$4 sm:$0xff]  }
 0x998   : > { %v5094_v35 = vsub.f32 %v5074_v33, %v2104_v11  ;;  %v5097_v36 = vsub.f32 %v5069_v24, %v2104_v11  ;;  %v4229_v11 = vld [vmem:[#allocation9 + $0x10c] ss:$16 sps:$4 sm:$0xff]  }
 0x99a   : > { %v2116_v24 = vmul.f32 %v5094_v35, %v5094_v35 }
 0x99f   : > { %v4355_v41 = vpop.eup %4354 }
 0x9a0   : > { %v1763_v45 = vmul.f32 %v4355_v41, %v4351_v21  ;;  %v4178_v21 = vld [vmem:[#allocation9 + $0x4] ss:$16 sps:$4 sm:$0xff]  }
 0x9a3   : > { %v4357_v44 = vpop.eup %4356 }
 0x9a4   : > { %v1764_v46 = vmul.f32 %v4357_v44, %v4353_v28  ;;  %v2096_v28 = vpop.xlane.xlu1 %2095 }
 0x9a5   : > { %v2105_v0 = vmul.f32 0.00390625, %v2096_v28  ;;  %v4224_v28 = vld [vmem:[#allocation9 + $0x100] ss:$16 sps:$4 sm:$0xff]  }
 0x9a6   : > { %v1765_v47 = vpack.c.bf16 %v1764_v46, %v1763_v45  ;;  %v4378_v45 = vld [vmem:[%s4833_s8 + $0x28] sm:$0xff] }
 0x9a8   : > { %3842 = vmatmul.mubr.msk.bf16.vlgmr.msra.gmra.mxu1 %vm1405_vm1, %v1765_v47 }
 0x9a9   : > { %2605 = vmatpush1.bf16.msra.mxu1 %v4134_v39  ;;  %v4380_v39 = vld [vmem:[%s4833_s8 + $0x38] sm:$0xff] }
 0x9aa   : > { %2606 = vmatprep.subr.bf16.mxu1 %v4142_v61  ;;  %v4182_v61 = vld [vmem:[#allocation9 + $0x1e0] ss:$16 sps:$4 sm:$0xff]  }
 0x9ad   : > { %2607 = vmatpush1.bf16.msra.mxu1 %v4140_v1  ;;  %v4185_v1 = vld [vmem:[#allocation9 + $0x1e8] ss:$16 sps:$4 sm:$0xff]  }
 0x9ae   : > { %2608 = vmatprep.subr.bf16.mxu1 %v4148_v62  ;;  %v4190_v62 = vld [vmem:[#allocation9 + $0x1c4] ss:$16 sps:$4 sm:$0xff]  }
 0x9b1   : > { %2609 = vmatpush1.bf16.msra.mxu1 %v4146_v12  ;;  %v4188_v12 = vld [vmem:[#allocation9 + $0x1c0] ss:$16 sps:$4 sm:$0xff]  }
 0x9b2   : > { %2610 = vmatprep.subr.bf16.mxu1 %v4154_v55  ;;  %v4196_v55 = vld [vmem:[#allocation9 + $0x1a4] ss:$16 sps:$4 sm:$0xff]  }
 0x9b5   : > { %2611 = vmatpush1.bf16.msra.mxu1 %v4152_v40  ;;  %v4194_v40 = vld [vmem:[#allocation9 + $0x1a0] ss:$16 sps:$4 sm:$0xff]  }
 0x9b6   : > { %2612 = vmatprep.subr.bf16.mxu1 %v4160_v43  ;;  %v4202_v43 = vld [vmem:[#allocation9 + $0x184] ss:$16 sps:$4 sm:$0xff]  }
 0x9b9   : > { %2613 = vmatpush1.bf16.msra.mxu1 %v4158_v3  ;;  %v4200_v3 = vld [vmem:[#allocation9 + $0x180] ss:$16 sps:$4 sm:$0xff]  }
 0x9ba   : > { %2614 = vmatprep.subr.bf16.mxu1 %v4166_v59  ;;  %v4208_v59 = vld [vmem:[#allocation9 + $0x164] ss:$16 sps:$4 sm:$0xff]  }
 0x9bd   : > { %2615 = vmatpush1.bf16.msra.mxu1 %v4164_v29  ;;  %v4206_v29 = vld [vmem:[#allocation9 + $0x160] ss:$16 sps:$4 sm:$0xff]  }
 0x9be   : > { %2616 = vmatprep.subr.bf16.mxu1 %v4172_v7  ;;  %v4214_v7 = vld [vmem:[#allocation9 + $0x144] ss:$16 sps:$4 sm:$0xff]  }
 0x9c1   : > { %2617 = vmatpush1.bf16.msra.mxu1 %v4170_v18  ;;  %v4212_v18 = vld [vmem:[#allocation9 + $0x140] ss:$16 sps:$4 sm:$0xff]  }
 0x9c2   : > { %2618 = vmatprep.subr.bf16.mxu1 %v4178_v21  ;;  %v4220_v21 = vld [vmem:[#allocation9 + $0x124] ss:$16 sps:$4 sm:$0xff]  }
 0x9c5   : > { %2619 = vmatpush1.bf16.msra.mxu1 %v4176_v5  ;;  %v4218_v5 = vld [vmem:[#allocation9 + $0x120] ss:$16 sps:$4 sm:$0xff]  }
 0x9c6   : > { %2620 = vmatprep.subr.bf16.mxu1 %v4184_v8 }
 0x9c9   : > { %2621 = vmatpush2.bf16.msra.mxu1 %v4182_v61 }
 0x9ca   : > { %2622 = vmatprep.subr.bf16.mxu1 %v4190_v62 }
 0x9cd   : > { %2623 = vmatpush2.bf16.msra.mxu1 %v4188_v12 }
 0x9ce   : > { %2624 = vmatprep.subr.bf16.mxu1 %v4196_v55 }
 0x9d1   : > { %2625 = vmatpush2.bf16.msra.mxu1 %v4194_v40 }
 0x9d2   : > { %2626 = vmatprep.subr.bf16.mxu1 %v4202_v43 }
 0x9d5   : > { %2627 = vmatpush2.bf16.msra.mxu1 %v4200_v3 }
 0x9d6   : > { %2628 = vmatprep.subr.bf16.mxu1 %v4208_v59  ;;  %v4232_v59 = vld [vmem:[#allocation11 + $0x74] ss:$8 sps:$4 sm:$0xff]  }
 0x9d9   : > { %2629 = vmatpush2.bf16.msra.mxu1 %v4206_v29  ;;  %v4235_v29 = vld [vmem:[#allocation11 + $0x174] ss:$8 sps:$4 sm:$0xff]  }
 0x9da   : > { %2630 = vmatprep.subr.bf16.mxu1 %v4214_v7  ;;  %v4241_v7 = vld [vmem:[#allocation11 + $0x164] ss:$8 sps:$4 sm:$0xff]  }
 0x9dd   : > { %2631 = vmatpush2.bf16.msra.mxu1 %v4212_v18  ;;  %v4239_v18 = vld [vmem:[#allocation11 + $0x160] ss:$8 sps:$4 sm:$0xff]  }
 0x9de   : > { %2632 = vmatprep.subr.bf16.mxu1 %v4220_v21  ;;  %v4247_v21 = vld [vmem:[#allocation11 + $0x154] ss:$8 sps:$4 sm:$0xff]  }
 0x9e1   : > { %2633 = vmatpush2.bf16.msra.mxu1 %v4218_v5  ;;  %v4245_v5 = vld [vmem:[#allocation11 + $0x150] ss:$8 sps:$4 sm:$0xff]  }
 0x9e2   : > { %2634 = vmatprep.subr.bf16.mxu1 %v4226_v27  ;;  %v4253_v27 = vld [vmem:[#allocation11 + $0x144] ss:$8 sps:$4 sm:$0xff]  }
 0x9e5   : > { %2635 = vmatpush2.bf16.msra.mxu1 %v4224_v28  ;;  %v4251_v28 = vld [vmem:[#allocation11 + $0x140] ss:$8 sps:$4 sm:$0xff]  }
 0x9e6   : > { %3130 = vmatprep.subr.bf16.mxu1 %v4232_v59  ;;  %v4304_v59 = vld [vmem:[#allocation11 + $0xb4] ss:$8 sps:$4 sm:$0xff]  }
 0xa68   : > { %v1803_v48 = vpop.f32.mrf.mxu1 }
 0xa6a   : > { %v3843_v49 = vpop.f32.mrf.mxu1 }
 0xa6b   : > { %v5112_v49 = vsub.f32 %v5084_v32, %v2105_v0 }
 0xa6c   : > { %v1806_v50 = vpop.f32.mrf.mxu1 }
 0xa6d   : > { %v1823_v51 = vpack.c.bf16 %v1806_v50, %v1803_v48  ;;  %v2117_v48 = vmul.f32 %v5097_v36, %v5097_v36  ;;  %v5115_v50 = vsub.f32 %v5078_v34, %v2105_v0  ;;  %v2118_v34 = vmul.f32 %v5112_v49, %v5112_v49 }
 0xa6e   : > { %v3844_v53 = vpop.f32.mrf.mxu1 }
 0xa6f   : > { %2070 = vmatprep.mubr.bf16.mxu0 %v1823_v51  ;;  %v4379_v53 = vld [vmem:[%s4833_s8 + $0x30] sm:$0xff]  ;;  %v2124_v32 = vadd.f32 %v2117_v48, %v2116_v24  ;;  %s4513_s8 = scalar_lea.vmem %s5267_s2, 1024 }
 0xa70   : > { %2071 = vmatmul.mubr.bf16.gmra.mxu0 %v1822_v57  ;;  %v4157_v57 = vld [vmem:[#allocation9 + $0x8c] ss:$16 sps:$4 sm:$0xff]   ;;  %p4514_p7 = scmp.ne.s32.totalorder %s5267_s2, %s4513_s8  ;;  %p4521_p1 = scmp.lt.s32.totalorder %s4519_s21, %s4513_s8 }
 0xa71   : > { %2663 = vmatprep.subr.bf16.mxu0 %v4157_v57  ;;  %v4199_v57 = vld [vmem:[#allocation9 + $0x1ac] ss:$16 sps:$4 sm:$0xff]  }
 0xa72   : > { %2664 = vmatpush1.bf16.msra.mxu0 %v4155_v42  ;;  %v4197_v42 = vld [vmem:[#allocation9 + $0x1a8] ss:$16 sps:$4 sm:$0xff]   ;;  %p4515_p13 = pnand %p4514_p7, %p5363_p9  ;;  %p4522_p6 = por %p4521_p1, %p4520_p10 }
 0xa73   : > { %2665 = vmatprep.subr.bf16.mxu0 %v4163_v25  ;;  %v4205_v25 = vld [vmem:[#allocation9 + $0x18c] ss:$16 sps:$4 sm:$0xff]  }
 0xa74   : > { %p4516_p5 = pneg %p4515_p13 }
 0xa76   : > { %2666 = vmatpush1.bf16.msra.mxu0 %v4161_v4  ;;  %v4203_v4 = vld [vmem:[#allocation9 + $0x188] ss:$16 sps:$4 sm:$0xff]   ;;  %p4523_p2 = pnand %p4522_p6, %p4516_p5 }
 0xa77   : > { %2667 = vmatprep.subr.bf16.mxu0 %v4169_v63  ;;  %v4211_v63 = vld [vmem:[#allocation9 + $0x16c] ss:$16 sps:$4 sm:$0xff]  }
 0xa7a   : > { %2668 = vmatpush1.bf16.msra.mxu0 %v4167_v6  ;;  %v4209_v6 = vld [vmem:[#allocation9 + $0x168] ss:$16 sps:$4 sm:$0xff]  }
 0xa7b   : > { %2669 = vmatprep.subr.bf16.mxu0 %v4175_v13  ;;  %v4217_v13 = vld [vmem:[#allocation9 + $0x14c] ss:$16 sps:$4 sm:$0xff]  }
 0xa7e   : > { %2670 = vmatpush1.bf16.msra.mxu0 %v4173_v19  ;;  %v4215_v19 = vld [vmem:[#allocation9 + $0x148] ss:$16 sps:$4 sm:$0xff]  }
 0xa7f   : > { %2671 = vmatprep.subr.bf16.mxu0 %v4181_v23  ;;  %v4223_v23 = vld [vmem:[#allocation9 + $0x12c] ss:$16 sps:$4 sm:$0xff]  }
 0xa82   : > { %2672 = vmatpush1.bf16.msra.mxu0 %v4179_v30  ;;  %v4221_v30 = vld [vmem:[#allocation9 + $0x128] ss:$16 sps:$4 sm:$0xff]  }
 0xa83   : > { %2673 = vmatprep.subr.bf16.mxu0 %v4187_v58 }
 0xa86   : > { %2674 = vmatpush2.bf16.msra.mxu0 %v4185_v1 }
 0xa87   : > { %2675 = vmatprep.subr.bf16.mxu0 %v4193_v2 }
 0xa8a   : > { %2676 = vmatpush2.bf16.msra.mxu0 %v4191_v22 }
 0xa8b   : > { %2677 = vmatprep.subr.bf16.mxu0 %v4199_v57 }
 0xa8e   : > { %2678 = vmatpush2.bf16.msra.mxu0 %v4197_v42 }
 0xa8f   : > { %2679 = vmatprep.subr.bf16.mxu0 %v4205_v25 }
 0xa92   : > { %2680 = vmatpush2.bf16.msra.mxu0 %v4203_v4  ;;  %v4230_v4 = vld [vmem:[#allocation11 + $0x70] ss:$8 sps:$4 sm:$0xff]  }
 0xa93   : > { %2681 = vmatprep.subr.bf16.mxu0 %v4211_v63  ;;  %v4233_v63 = vld [vmem:[#allocation11 + $0x170] ss:$8 sps:$4 sm:$0xff]  }
 0xa96   : > { %2682 = vmatpush2.bf16.msra.mxu0 %v4209_v6  ;;  %v4238_v6 = vld [vmem:[#allocation11 + $0x64] ss:$8 sps:$4 sm:$0xff]  }
 0xa97   : > { %2683 = vmatprep.subr.bf16.mxu0 %v4217_v13  ;;  %v4236_v13 = vld [vmem:[#allocation11 + $0x60] ss:$8 sps:$4 sm:$0xff]  }
 0xa9a   : > { %2684 = vmatpush2.bf16.msra.mxu0 %v4215_v19  ;;  %v4244_v19 = vld [vmem:[#allocation11 + $0x54] ss:$8 sps:$4 sm:$0xff]  }
 0xa9b   : > { %2685 = vmatprep.subr.bf16.mxu0 %v4223_v23  ;;  %v4242_v23 = vld [vmem:[#allocation11 + $0x50] ss:$8 sps:$4 sm:$0xff]  }
 0xa9e   : > { %2686 = vmatpush2.bf16.msra.mxu0 %v4221_v30  ;;  %v4250_v30 = vld [vmem:[#allocation11 + $0x44] ss:$8 sps:$4 sm:$0xff]  }
 0xa9f   : > { %2687 = vmatprep.subr.bf16.mxu0 %v4229_v11  ;;  %v4248_v11 = vld [vmem:[#allocation11 + $0x40] ss:$8 sps:$4 sm:$0xff]  }
 0xb30   : > { %v2072_v31 = vpop.f32.mrf.mxu0 }
 0xb31   : > { %v2073_v16 = vadd.f32 %v2072_v31, %v5064_v10  ;;  %v4227_v31 = vld [vmem:[#allocation9 + $0x108] ss:$16 sps:$4 sm:$0xff]  }
 0xb32   : > { %v2074_v37 = vpop.f32.mrf.mxu0  ;;  %2688 = vmatpush2.bf16.msra.mxu0 %v4227_v31  ;;  %v4256_v31 = vld [vmem:[#allocation11 + $0x34] ss:$8 sps:$4 sm:$0xff]  }
 0xb33   : > { %v2075_v38 = vadd.f32 %v2074_v37, %v5061_v56  ;;  %v5101_v44 = vadd.f32 %v2073_v16, %v4860_v9  ;;  %3183 = vmatprep.subr.bf16.mxu0 %v4235_v29  ;;  %v4302_v29 = vld [vmem:[#allocation11 + $0xb0] ss:$8 sps:$4 sm:$0xff]  }
 0xb34   : > { %v2076_v41 = vpop.f32.mrf.mxu0 }
 0xb35   : > { %v5104_v46 = vadd.f32 %v4378_v45, %v2075_v38  ;;  %v2077_v47 = vadd.f32 %v2076_v41, %v5064_v10 }
 0xb36   : > { %v2078_v33 = vpop.f32.mrf.mxu0 }
 0xb37   : > { %v2079_v9 = vadd.f32 %v2078_v33, %v5061_v56  ;;  %v2097_v51 = vadd.f32 %v5104_v46, %v5101_v44  ;;  %v5121_v10 = vadd.f32 %v4379_v53, %v2077_v47  ;;  %v2119_v56 = vmul.f32 %v5115_v50, %v5115_v50 }
 0xb39   : > { %v5124_v54 = vadd.f32 %v4380_v39, %v2079_v9  ;;  %2098 = vadd.xlane.f32.xlu0 %v2097_v51  ;;  %v2127_v60 = vadd.f32 %v2119_v56, %v2118_v34 }
 0xb3b   : > { %v2100_v26 = vadd.f32 %v5124_v54, %v5121_v10 }
 0xb3d   : > { %2101 = vadd.xlane.f32.xlu1 %v2100_v26  ;;  %2125 = vadd.xlane.f32.xlu0 %v2124_v32 }
 0xb41   : > { %2128 = vadd.xlane.f32.xlu1 %v2127_v60  ;;  %v2090_v60 = vld [vmem:[%s5319_s7] sm:$0x3] }
 0xb42   : > { %v5167_v2 = vrot.slane %v2090_v60, %v4886_v20  ;;  %v5170_v12 = vrot.slane %v2090_v60, %v4942_v52  ;;  %v4281_v60 = vld [vmem:[#allocation11 + $0x1f0] ss:$8 sps:$4 sm:$0xff]  }
 0xbc2   : > { %v2099_v16 = vpop.xlane.xlu0 %2098 }
 0xbc3   : > { %v2106_v37 = vmul.f32 0.00390625, %v2099_v16  ;;  %v4259_v16 = vld [vmem:[#allocation11 + $0x134] ss:$8 sps:$4 sm:$0xff]  }
 0xbc5   : > { %v5133_v0 = vsub.f32 %v5101_v44, %v2106_v37  ;;  %v5136_v38 = vsub.f32 %v5104_v46, %v2106_v37  ;;  %v4254_v37 = vld [vmem:[#allocation11 + $0x30] ss:$8 sps:$4 sm:$0xff]  }
 0xbc6   : > { %v2102_v41 = vpop.xlane.xlu1 %2101  ;;  %v2126_v45 = vpop.xlane.xlu0 %2125 }
 0xbc7   : > { %v2107_v47 = vmul.f32 0.00390625, %v2102_v41  ;;  %v2136_v33 = vmul.f32 0.00390625, %v2126_v45  ;;  %v2120_v24 = vmul.f32 %v5133_v0, %v5133_v0  ;;  %v2121_v48 = vmul.f32 %v5136_v38, %v5136_v38  ;;  %v4257_v41 = vld [vmem:[#allocation11 + $0x130] ss:$8 sps:$4 sm:$0xff]   ;;  %v4262_v45 = vld [vmem:[#allocation11 + $0x24] ss:$8 sps:$4 sm:$0xff]  }
 0xbc9   : > { %v5143_v9 = vsub.f32 %v5121_v10, %v2107_v47  ;;  %v5146_v51 = vsub.f32 %v5124_v54, %v2107_v47  ;;  %v2140_v44 = vadd.f32 1e-05, %v2136_v33  ;;  %v2130_v53 = vadd.f32 %v2121_v48, %v2120_v24  ;;  %v2089_v10 = vld [vmem:[%s5318_s6] sm:$0x3]  ;;  %v4265_v47 = vld [vmem:[#allocation11 + $0x124] ss:$8 sps:$4 sm:$0xff]  }
 0xbca   : > { %v2129_v46 = vpop.xlane.xlu1 %2128  ;;  %v5160_v8 = vrot.slane %v2089_v10, %v4886_v20  ;;  %v5163_v1 = vrot.slane %v2089_v10, %v4942_v52  ;;  %v4260_v33 = vld [vmem:[#allocation11 + $0x20] ss:$8 sps:$4 sm:$0xff]   ;;  %v4268_v48 = vld [vmem:[#allocation11 + $0x14] ss:$8 sps:$4 sm:$0xff]  }
 0xbcb   : > { %4358 = vrsqrt.f32 %v2140_v44  ;;  %v2137_v39 = vmul.f32 0.00390625, %v2129_v46  ;;  %2131 = vadd.xlane.f32.xlu0 %v2130_v53  ;;  %v2122_v26 = vmul.f32 %v5143_v9, %v5143_v9  ;;  %v2123_v32 = vmul.f32 %v5146_v51, %v5146_v51  ;;  %v4263_v24 = vld [vmem:[#allocation11 + $0x120] ss:$8 sps:$4 sm:$0xff]   ;;  %v4271_v44 = vld [vmem:[#allocation11 + $0x114] ss:$8 sps:$4 sm:$0xff]  }
 0xbcc   : > { %v4266_v53 = vld [vmem:[#allocation11 + $0x10] ss:$8 sps:$4 sm:$0xff]   ;;  %v4283_v10 = vld [vmem:[#allocation11 + $0x1f4] ss:$8 sps:$4 sm:$0xff]  }
 0xbcd   : > { %v2141_v34 = vadd.f32 1e-05, %v2137_v39  ;;  %v2133_v56 = vadd.f32 %v2123_v32, %v2122_v26  ;;  %v4269_v46 = vld [vmem:[#allocation11 + $0x110] ss:$8 sps:$4 sm:$0xff]   ;;  %v4274_v39 = vld [vmem:[#allocation11 + $0x4] ss:$8 sps:$4 sm:$0xff]  }
 0xbce   : > { %v4277_v26 = vld [vmem:[#allocation11 + $0x104] ss:$8 sps:$4 sm:$0xff]   ;;  %v4272_v32 = vld [vmem:[#allocation11] ss:$8 sps:$4 sm:$0xff]  }
 0xbcf   : > { %4360 = vrsqrt.f32 %v2141_v34  ;;  %2134 = vadd.xlane.f32.xlu1 %v2133_v56  ;;  %v4275_v34 = vld [vmem:[#allocation11 + $0x100] ss:$8 sps:$4 sm:$0xff]   ;;  %v4280_v56 = vld [vmem:[#allocation11 + $0xf4] ss:$8 sps:$4 sm:$0xff]  }
 0xbd8   : > { %v4359_v54 = vpop.eup %4358 }
 0xbd9   : > { %v2149_v61 = vmul.f32 %v4359_v54, %v5097_v36  ;;  %v2148_v58 = vmul.f32 %v4359_v54, %v5094_v35  ;;  %v4278_v54 = vld [vmem:[#allocation11 + $0xf0] ss:$8 sps:$4 sm:$0xff]  }
 0xbdb   : > { %v2168_v55 = vmul.f32 %v5163_v1, %v2149_v61  ;;  %v2167_v57 = vmul.f32 %v5160_v8, %v2148_v58  ;;  %v4286_v61 = vld [vmem:[#allocation11 + $0xe4] ss:$8 sps:$4 sm:$0xff]  }
 0xbdc   : > { %v4361_v62 = vpop.eup %4360  ;;  %v4289_v58 = vld [vmem:[#allocation11 + $0x1e4] ss:$8 sps:$4 sm:$0xff]  }
 0xbdd   : > { %v2151_v22 = vmul.f32 %v4361_v62, %v5115_v50  ;;  %v2150_v36 = vmul.f32 %v4361_v62, %v5112_v49  ;;  %v5179_v35 = vadd.f32 %v5170_v12, %v2168_v55  ;;  %v5185_v25 = vadd.f32 %v5167_v2, %v2167_v57  ;;  %v4284_v62 = vld [vmem:[#allocation11 + $0xe0] ss:$8 sps:$4 sm:$0xff]   ;;  %v4292_v55 = vld [vmem:[#allocation11 + $0xd4] ss:$8 sps:$4 sm:$0xff]   ;;  %v4290_v57 = vld [vmem:[#allocation11 + $0xd0] ss:$8 sps:$4 sm:$0xff]  }
 0xbdf   : > { %v2170_v40 = vmul.f32 %v5163_v1, %v2151_v22  ;;  %v2169_v42 = vmul.f32 %v5160_v8, %v2150_v36  ;;  %v4287_v22 = vld [vmem:[#allocation11 + $0x1e0] ss:$8 sps:$4 sm:$0xff]   ;;  %v4295_v36 = vld [vmem:[#allocation11 + $0x1d4] ss:$8 sps:$4 sm:$0xff]  }
 0xbe1   : > { %v5182_v43 = vadd.f32 %v5170_v12, %v2170_v40  ;;  %v5188_v50 = vadd.f32 %v5167_v2, %v2169_v42  ;;  %v4293_v40 = vld [vmem:[#allocation11 + $0x1d0] ss:$8 sps:$4 sm:$0xff]   ;;  %v4298_v42 = vld [vmem:[#allocation11 + $0xc4] ss:$8 sps:$4 sm:$0xff]  }
 0xbe3   : > { %v2195_v49 = vpack.c.bf16 %v5182_v43, %v5179_v35  ;;  %v2194_v3 = vpack.c.bf16 %v5188_v50, %v5185_v25 }
 0xbe5   : > { %2636 = vmatprep.mubr.bf16.mxu1 %v2195_v49  ;;  %2689 = vmatprep.mubr.bf16.mxu0 %v2195_v49  ;;  %v4301_v49 = vld [vmem:[#allocation11 + $0x1c4] ss:$8 sps:$4 sm:$0xff]  }
 0xbe6   : > { %2637 = vmatmul.mubr.bf16.vlgmr.msra.gmra.mxu1 %v2194_v3  ;;  %2690 = vmatmul.mubr.bf16.vlgmr.msra.gmra.mxu0 %v2194_v3  ;;  %v4296_v3 = vld [vmem:[#allocation11 + $0xc0] ss:$8 sps:$4 sm:$0xff]  }
 0xbe7   : > { %3131 = vmatpush1.bf16.msra.mxu1 %v4230_v4  ;;  %3184 = vmatpush1.bf16.msra.mxu0 %v4233_v63  ;;  %v4299_v4 = vld [vmem:[#allocation11 + $0x1c0] ss:$8 sps:$4 sm:$0xff]   ;;  %v4307_v63 = vld [vmem:[#allocation11 + $0x1b4] ss:$8 sps:$4 sm:$0xff]  }
 0xbe8   : > { %3132 = vmatprep.subr.bf16.mxu1 %v4238_v6  ;;  %3185 = vmatprep.subr.bf16.mxu0 %v4241_v7  ;;  %v4305_v6 = vld [vmem:[#allocation11 + $0x1b0] ss:$8 sps:$4 sm:$0xff]   ;;  %v4310_v7 = vld [vmem:[#allocation11 + $0xa4] ss:$8 sps:$4 sm:$0xff]  }
 0xbeb   : > { %3133 = vmatpush1.bf16.msra.mxu1 %v4236_v13  ;;  %3186 = vmatpush1.bf16.msra.mxu0 %v4239_v18  ;;  %v4313_v13 = vld [vmem:[#allocation11 + $0x1a4] ss:$8 sps:$4 sm:$0xff]   ;;  %v4308_v18 = vld [vmem:[#allocation11 + $0xa0] ss:$8 sps:$4 sm:$0xff]  }
 0xbec   : > { %3134 = vmatprep.subr.bf16.mxu1 %v4244_v19  ;;  %3187 = vmatprep.subr.bf16.mxu0 %v4247_v21  ;;  %v4311_v19 = vld [vmem:[#allocation11 + $0x1a0] ss:$8 sps:$4 sm:$0xff]   ;;  %v4316_v21 = vld [vmem:[#allocation11 + $0x94] ss:$8 sps:$4 sm:$0xff]  }
 0xbef   : > { %3135 = vmatpush1.bf16.msra.mxu1 %v4242_v23  ;;  %3188 = vmatpush1.bf16.msra.mxu0 %v4245_v5  ;;  %v4319_v23 = vld [vmem:[#allocation11 + $0x194] ss:$8 sps:$4 sm:$0xff]   ;;  %v4314_v5 = vld [vmem:[#allocation11 + $0x90] ss:$8 sps:$4 sm:$0xff]  }
 0xbf0   : > { %3136 = vmatprep.subr.bf16.mxu1 %v4250_v30  ;;  %3189 = vmatprep.subr.bf16.mxu0 %v4253_v27  ;;  %v4317_v30 = vld [vmem:[#allocation11 + $0x190] ss:$8 sps:$4 sm:$0xff]   ;;  %v4322_v27 = vld [vmem:[#allocation11 + $0x84] ss:$8 sps:$4 sm:$0xff]  }
 0xbf3   : > { %3137 = vmatpush1.bf16.msra.mxu1 %v4248_v11  ;;  %3190 = vmatpush1.bf16.msra.mxu0 %v4251_v28  ;;  %v4325_v11 = vld [vmem:[#allocation11 + $0x184] ss:$8 sps:$4 sm:$0xff]   ;;  %v4320_v28 = vld [vmem:[#allocation11 + $0x80] ss:$8 sps:$4 sm:$0xff]  }
 0xbf4   : > { %3138 = vmatprep.subr.bf16.mxu1 %v4256_v31  ;;  %3191 = vmatprep.subr.bf16.mxu0 %v4259_v16  ;;  %v4323_v31 = vld [vmem:[#allocation11 + $0x180] ss:$8 sps:$4 sm:$0xff]  }
 0xbf7   : > { %3139 = vmatpush1.bf16.msra.mxu1 %v4254_v37  ;;  %3192 = vmatpush1.bf16.msra.mxu0 %v4257_v41 }
 0xbf8   : > { %3140 = vmatprep.subr.bf16.mxu1 %v4262_v45  ;;  %3193 = vmatprep.subr.bf16.mxu0 %v4265_v47 }
 0xbfb   : > { %3141 = vmatpush1.bf16.msra.mxu1 %v4260_v33  ;;  %3194 = vmatpush1.bf16.msra.mxu0 %v4263_v24 }
 0xbfc   : > { %3142 = vmatprep.subr.bf16.mxu1 %v4268_v48  ;;  %3195 = vmatprep.subr.bf16.mxu0 %v4271_v44 }
 0xbff   : > { %3143 = vmatpush1.bf16.msra.mxu1 %v4266_v53  ;;  %3196 = vmatpush1.bf16.msra.mxu0 %v4269_v46 }
 0xc00   : > { %3144 = vmatprep.subr.bf16.mxu1 %v4274_v39  ;;  %3197 = vmatprep.subr.bf16.mxu0 %v4277_v26 }
 0xc03   : > { %3145 = vmatpush1.bf16.msra.mxu1 %v4272_v32  ;;  %3198 = vmatpush1.bf16.msra.mxu0 %v4275_v34 }
 0xc04   : > { %3146 = vmatprep.subr.bf16.mxu1 %v4280_v56  ;;  %3199 = vmatprep.subr.bf16.mxu0 %v4283_v10 }
 0xc07   : > { %3147 = vmatpush2.bf16.msra.mxu1 %v4278_v54  ;;  %3200 = vmatpush2.bf16.msra.mxu0 %v4281_v60 }
 0xc08   : > { %3148 = vmatprep.subr.bf16.mxu1 %v4286_v61  ;;  %3201 = vmatprep.subr.bf16.mxu0 %v4289_v58 }
 0xc0b   : > { %3149 = vmatpush2.bf16.msra.mxu1 %v4284_v62  ;;  %3202 = vmatpush2.bf16.msra.mxu0 %v4287_v22 }
 0xc0c   : > { %3150 = vmatprep.subr.bf16.mxu1 %v4292_v55  ;;  %3203 = vmatprep.subr.bf16.mxu0 %v4295_v36 }
 0xc0f   : > { %3151 = vmatpush2.bf16.msra.mxu1 %v4290_v57  ;;  %3204 = vmatpush2.bf16.msra.mxu0 %v4293_v40 }
 0xc10   : > { %3152 = vmatprep.subr.bf16.mxu1 %v4298_v42  ;;  %3205 = vmatprep.subr.bf16.mxu0 %v4301_v49 }
 0xc13   : > { %3153 = vmatpush2.bf16.msra.mxu1 %v4296_v3  ;;  %3206 = vmatpush2.bf16.msra.mxu0 %v4299_v4 }
 0xc14   : > { %3154 = vmatprep.subr.bf16.mxu1 %v4304_v59  ;;  %3207 = vmatprep.subr.bf16.mxu0 %v4307_v63 }
 0xc17   : > { %3155 = vmatpush2.bf16.msra.mxu1 %v4302_v29  ;;  %3208 = vmatpush2.bf16.msra.mxu0 %v4305_v6 }
 0xc18   : > { %3156 = vmatprep.subr.bf16.mxu1 %v4310_v7  ;;  %3209 = vmatprep.subr.bf16.mxu0 %v4313_v13 }
 0xc1b   : > { %3157 = vmatpush2.bf16.msra.mxu1 %v4308_v18  ;;  %3210 = vmatpush2.bf16.msra.mxu0 %v4311_v19 }
 0xc1c   : > { %3158 = vmatprep.subr.bf16.mxu1 %v4316_v21  ;;  %3211 = vmatprep.subr.bf16.mxu0 %v4319_v23 }
 0xc1f   : > { %3159 = vmatpush2.bf16.msra.mxu1 %v4314_v5  ;;  %3212 = vmatpush2.bf16.msra.mxu0 %v4317_v30 }
 0xc20   : > { %3160 = vmatprep.subr.bf16.mxu1 %v4322_v27  ;;  %3213 = vmatprep.subr.bf16.mxu0 %v4325_v11 }
 0xc23   : > { %3161 = vmatpush2.bf16.msra.mxu1 %v4320_v28  ;;  %3214 = vmatpush2.bf16.msra.mxu0 %v4323_v31 }
 0xc54   : > { %v2132_v16 = vpop.xlane.xlu0 %2131 }
 0xc55   : > { %v2138_v37 = vmul.f32 0.00390625, %v2132_v16 }
 0xc57   : > { %v2142_v41 = vadd.f32 1e-05, %v2138_v37 }
 0xc58   : > { %v2135_v45 = vpop.xlane.xlu1 %2134 }
 0xc59   : > { %4362 = vrsqrt.f32 %v2142_v41  ;;  %v2139_v47 = vmul.f32 0.00390625, %v2135_v45 }
 0xc5b   : > { %v2143_v33 = vadd.f32 1e-05, %v2139_v47 }
 0xc5d   : > { %4364 = vrsqrt.f32 %v2143_v33 }
 0xc66   : > { %v4363_v24 = vpop.eup %4362 }
 0xc67   : > { %v2153_v48 = vmul.f32 %v4363_v24, %v5136_v38  ;;  %v2152_v44 = vmul.f32 %v4363_v24, %v5133_v0 }
 0xc69   : > { %v2172_v39 = vmul.f32 %v5163_v1, %v2153_v48  ;;  %v2171_v32 = vmul.f32 %v5160_v8, %v2152_v44 }
 0xc6a   : > { %v4365_v53 = vpop.eup %4364 }
 0xc6b   : > { %v2155_v46 = vmul.f32 %v4365_v53, %v5146_v51  ;;  %v2154_v26 = vmul.f32 %v4365_v53, %v5143_v9  ;;  %v5203_v10 = vadd.f32 %v5170_v12, %v2172_v39  ;;  %v5209_v0 = vadd.f32 %v5167_v2, %v2171_v32 }
 0xc6d   : > { %v2174_v34 = vmul.f32 %v5163_v1, %v2155_v46  ;;  %v2173_v56 = vmul.f32 %v5160_v8, %v2154_v26  ;;  %v2262_v8 = vld [vmem:[%s5321_s9] sm:$0xf] }
 0xc6e   : > { %v2271_v60 = vrot.slane %v2262_v8, %v4942_v52  ;;  %v2267_v61 = vrot.slane %v2262_v8, %v4886_v20  ;;  %v2275_v58 = vrot.slane %v2262_v8, %v687_v15 }
 0xc6f   : > { %v5206_v38 = vadd.f32 %v5170_v12, %v2174_v34  ;;  %v5212_v51 = vadd.f32 %v5167_v2, %v2173_v56  ;;  %v2279_v2 = vrot.slane %v2262_v8, %v691_v17 }
 0xc71   : > { %v2197_v9 = vpack.c.bf16 %v5206_v38, %v5203_v10  ;;  %v2196_v1 = vpack.c.bf16 %v5212_v51, %v5209_v0 }
 0xc73   : > { %2646 = vmatprep.mubr.bf16.mxu1 %v2197_v9  ;;  %2699 = vmatprep.mubr.bf16.mxu0 %v2197_v9 }
 0xc74   : > { %2647 = vmatmul.mubr.bf16.gmra.mxu1 %v2196_v1  ;;  %2700 = vmatmul.mubr.bf16.gmra.mxu0 %v2196_v1 }
 0xca6   : > { %v2638_v12 = vpop.f32.mrf.mxu1  ;;  %v2691_v54 = vpop.f32.mrf.mxu0 }
 0xca7   : > { %v2639_v3 = vadd.f32 %v2638_v12, %v2267_v61  ;;  %v2692_v4 = vadd.f32 %v2691_v54, %v2275_v58 }
 0xca8   : > { %v2640_v62 = vpop.f32.mrf.mxu1  ;;  %v2693_v22 = vpop.f32.mrf.mxu0 }
 0xca9   : > { %v2641_v57 = vadd.f32 %v2640_v62, %v2271_v60  ;;  %v2694_v40 = vadd.f32 %v2693_v22, %v2279_v2  ;;  %v2710_v19 = vmax.f32 %v2639_v3, 0.0  ;;  %v2712_v21 = vmax.f32 %v2692_v4, 0.0 }
 0xcaa   : > { %v2642_v55 = vpop.f32.mrf.mxu1  ;;  %v2695_v36 = vpop.f32.mrf.mxu0 }
 0xcab   : > { %v2643_v42 = vadd.f32 %v2642_v55, %v2267_v61  ;;  %v2696_v49 = vadd.f32 %v2695_v36, %v2275_v58  ;;  %v2711_v13 = vmax.f32 %v2641_v57, 0.0  ;;  %v2713_v18 = vmax.f32 %v2694_v40, 0.0 }
 0xcac   : > { %v2644_v59 = vpop.f32.mrf.mxu1  ;;  %v2697_v63 = vpop.f32.mrf.mxu0 }
 0xcad   : > { %v2645_v29 = vadd.f32 %v2644_v59, %v2271_v60  ;;  %v2698_v6 = vadd.f32 %v2697_v63, %v2279_v2  ;;  %v2714_v17 = vmax.f32 %v2643_v42, 0.0  ;;  %v2716_v7 = vmax.f32 %v2696_v49, 0.0 }
 0xcaf   : > { %v2715_v14 = vmax.f32 %v2645_v29, 0.0  ;;  %v2717_v15 = vmax.f32 %v2698_v6, 0.0  ;;  %v2726_v30 = vpack.c.bf16 %v2714_v17, %v2710_v19  ;;  %v2728_v27 = vpack.c.bf16 %v2716_v7, %v2712_v21 }
 0xcb1   : > { %v2727_v23 = vpack.c.bf16 %v2715_v14, %v2711_v13  ;;  %v2729_v5 = vpack.c.bf16 %v2717_v15, %v2713_v18 }
 0xcb3   : > { %3162 = vmatprep.mubr.bf16.mxu1 %v2727_v23  ;;  %3215 = vmatprep.mubr.bf16.mxu0 %v2729_v5 }
 0xcb4   : > { %3163 = vmatmul.mubr.bf16.vlgmr.msra.gmra.mxu1 %v2726_v30  ;;  %3216 = vmatmul.mubr.bf16.vlgmr.msra.gmra.mxu0 %v2728_v27 }
 0xd34   : > { %v2648_v11 = vpop.f32.mrf.mxu1  ;;  %v2701_v28 = vpop.f32.mrf.mxu0 }
 0xd35   : > { %v2649_v48 = vadd.f32 %v2648_v11, %v2267_v61  ;;  %v2702_v44 = vadd.f32 %v2701_v28, %v2275_v58 }
 0xd36   : > { %v2650_v31 = vpop.f32.mrf.mxu1  ;;  %v2703_v16 = vpop.f32.mrf.mxu0 }
 0xd37   : > { %v2651_v45 = vadd.f32 %v2650_v31, %v2271_v60  ;;  %v2704_v47 = vadd.f32 %v2703_v16, %v2279_v2  ;;  %v2718_v12 = vmax.f32 %v2649_v48, 0.0  ;;  %v2720_v54 = vmax.f32 %v2702_v44, 0.0 }
 0xd38   : > { %v2652_v37 = vpop.f32.mrf.mxu1  ;;  %v2705_v41 = vpop.f32.mrf.mxu0 }
 0xd39   : > { %v2653_v33 = vadd.f32 %v2652_v37, %v2267_v61  ;;  %v2706_v24 = vadd.f32 %v2705_v41, %v2275_v58  ;;  %v2719_v56 = vmax.f32 %v2651_v45, 0.0  ;;  %v2721_v9 = vmax.f32 %v2704_v47, 0.0 }
 0xd3a   : > { %v2654_v53 = vpop.f32.mrf.mxu1  ;;  %v2707_v46 = vpop.f32.mrf.mxu0 }
 0xd3b   : > { %v2655_v39 = vadd.f32 %v2654_v53, %v2271_v60  ;;  %v2708_v26 = vadd.f32 %v2707_v46, %v2279_v2  ;;  %v2722_v32 = vmax.f32 %v2653_v33, 0.0  ;;  %v2724_v34 = vmax.f32 %v2706_v24, 0.0  ;;  %v2798_v60 = vld [vmem:[%s5323_s11] sm:$0x3] }
 0xd3c   : > { %v2803_v2 = vrot.slane %v2798_v60, %v4886_v20  ;;  %v2807_v61 = vrot.slane %v2798_v60, %v4942_v52 }
 0xd3d   : > { %v2723_v1 = vmax.f32 %v2655_v39, 0.0  ;;  %v2725_v8 = vmax.f32 %v2708_v26, 0.0  ;;  %v2730_v55 = vpack.c.bf16 %v2722_v32, %v2718_v12  ;;  %v2732_v36 = vpack.c.bf16 %v2724_v34, %v2720_v54 }
 0xd3f   : > { %v2731_v62 = vpack.c.bf16 %v2723_v1, %v2719_v56  ;;  %v2733_v22 = vpack.c.bf16 %v2725_v8, %v2721_v9 }
 0xd41   : > { %3172 = vmatprep.mubr.bf16.mxu1 %v2731_v62  ;;  %3225 = vmatprep.mubr.bf16.mxu0 %v2733_v22 }
 0xd42   : > { %3173 = vmatmul.mubr.bf16.gmra.mxu1 %v2730_v55  ;;  %3226 = vmatmul.mubr.bf16.gmra.mxu0 %v2732_v36 }
 0xd74   : > { %v3164_v58 = vpop.f32.mrf.mxu1  ;;  %v3217_v57 = vpop.f32.mrf.mxu0 }
 0xd75   : > { %v3165_v40 = vadd.f32 %v3164_v58, %v2803_v2 }
 0xd76   : > { %v3166_v42 = vpop.f32.mrf.mxu1  ;;  %v3219_v49 = vpop.f32.mrf.mxu0 }
 0xd77   : > { %v3218_v3 = vadd.f32 %v3217_v57, %v3165_v40  ;;  %v3167_v4 = vadd.f32 %v3166_v42, %v2807_v61 }
 0xd78   : > { %v3168_v59 = vpop.f32.mrf.mxu1  ;;  %v3221_v63 = vpop.f32.mrf.mxu0 }
 0xd79   : > { %v3220_v29 = vadd.f32 %v3219_v49, %v3167_v4  ;;  %v3169_v6 = vadd.f32 %v3168_v59, %v2803_v2  ;;  %v3236_v7 = vadd.f32 %v3218_v3, %v5185_v25 }
 0xd7a   : > { %v3170_v17 = vpop.f32.mrf.mxu1  ;;  %v3223_v15 = vpop.f32.mrf.mxu0 }
 0xd7b   : > { %v3237_v13 = vadd.f32 %v3220_v29, %v5179_v35  ;;  %v3222_v18 = vadd.f32 %v3221_v63, %v3169_v6  ;;  %v3171_v14 = vadd.f32 %v3170_v17, %v2807_v61 }
 0xd7d   : > { %v3224_v19 = vadd.f32 %v3223_v15, %v3171_v14  ;;  %v3246_v21 = vadd.f32 %v3237_v13, %v3236_v7  ;;  %v3238_v23 = vadd.f32 %v3222_v18, %v5188_v50  ;;  %v3244_v15 = vld [vmem:[%s5324_s12] sm:$0x3] }
 0xd7f   : > { %v3239_v5 = vadd.f32 %v3224_v19, %v5182_v43  ;;  %3247 = vadd.xlane.f32.xlu0 %v3246_v21  ;;  %v3245_v19 = vld [vmem:[%s5325_s13] sm:$0x3]  ;;  %v3314_v21 = vrot.slane %v3244_v15, %v4886_v20 }
 0xd81   : > { %v3249_v30 = vadd.f32 %v3239_v5, %v3238_v23 }
 0xd83   : > { %3250 = vadd.xlane.f32.xlu1 %v3249_v30  ;;  %v3333_v30 = vrot.slane %v3245_v19, %v4886_v20 }
 0xe02   : > { %v3174_v27 = vpop.f32.mrf.mxu1  ;;  %v3227_v11 = vpop.f32.mrf.mxu0 }
 0xe03   : > { %v3175_v28 = vadd.f32 %v3174_v27, %v2803_v2  ;;  %v3337_v27 = vrot.slane %v3245_v19, %v4942_v52 }
 0xe04   : > { %v3176_v31 = vpop.f32.mrf.mxu1  ;;  %v3229_v16 = vpop.f32.mrf.mxu0 }
 0xe05   : > { %v3228_v25 = vadd.f32 %v3227_v11, %v3175_v28  ;;  %v3177_v37 = vadd.f32 %v3176_v31, %v2807_v61 }
 0xe06   : > { %v3178_v35 = vpop.f32.mrf.mxu1  ;;  %v3231_v41 = vpop.f32.mrf.mxu0 }
 0xe07   : > { %v3230_v45 = vadd.f32 %v3229_v16, %v3177_v37  ;;  %v3179_v47 = vadd.f32 %v3178_v35, %v2803_v2  ;;  %v3240_v24 = vadd.f32 %v3228_v25, %v5209_v0 }
 0xe08   : > { %v3180_v33 = vpop.f32.mrf.mxu1  ;;  %v3248_v44 = vpop.xlane.xlu0 %3247 }
 0xe09   : > { %v3241_v50 = vadd.f32 %v3230_v45, %v5203_v10  ;;  %v3232_v43 = vadd.f32 %v3231_v41, %v3179_v47  ;;  %v3181_v48 = vadd.f32 %v3180_v33, %v2807_v61  ;;  %v3233_v53 = vpop.f32.mrf.mxu0  ;;  %v3258_v46 = vmul.f32 0.00390625, %v3248_v44 }
 0xe0b   : > { %v3234_v39 = vadd.f32 %v3233_v53, %v3181_v48  ;;  %v3252_v26 = vadd.f32 %v3241_v50, %v3240_v24  ;;  %v3262_v32 = vsub.f32 %v3236_v7, %v3258_v46  ;;  %v3263_v34 = vsub.f32 %v3237_v13, %v3258_v46 }
 0xe0c   : > { %v3251_v56 = vpop.xlane.xlu1 %3250  ;;  %v3242_v9 = vadd.f32 %v3232_v43, %v5212_v51 }
 0xe0d   : > { %v3243_v1 = vadd.f32 %v3234_v39, %v5206_v38  ;;  %v3259_v8 = vmul.f32 0.00390625, %v3251_v56  ;;  %3253 = vadd.xlane.f32.xlu0 %v3252_v26  ;;  %v3270_v12 = vmul.f32 %v3262_v32, %v3262_v32  ;;  %v3271_v0 = vmul.f32 %v3263_v34, %v3263_v34 }
 0xe0f   : > { %v3264_v54 = vsub.f32 %v3238_v23, %v3259_v8  ;;  %v3265_v10 = vsub.f32 %v3239_v5, %v3259_v8  ;;  %v3255_v62 = vadd.f32 %v3243_v1, %v3242_v9  ;;  %v3278_v22 = vadd.f32 %v3271_v0, %v3270_v12 }
 0xe10   : > { %v3318_v23 = vrot.slane %v3244_v15, %v4942_v52 }
 0xe11   : > { %3256 = vadd.xlane.f32.xlu1 %v3255_v62  ;;  %v3272_v55 = vmul.f32 %v3264_v54, %v3264_v54  ;;  %v3273_v36 = vmul.f32 %v3265_v10, %v3265_v10  ;;  %3279 = vadd.xlane.f32.xlu0 %v3278_v22 }
 0xe13   : > { %v3281_v60 = vadd.f32 %v3273_v36, %v3272_v55 }
 0xe15   : > { %3282 = vadd.xlane.f32.xlu1 %v3281_v60 }
 0xe96   : > { %v3254_v2 = vpop.xlane.xlu0 %3253 }
 0xe97   : > { %v3260_v61 = vmul.f32 0.00390625, %v3254_v2 }
 0xe99   : > { %v3266_v58 = vsub.f32 %v3240_v24, %v3260_v61  ;;  %v3267_v51 = vsub.f32 %v3241_v50, %v3260_v61 }
 0xe9a   : > { %v3257_v57 = vpop.xlane.xlu1 %3256  ;;  %v3280_v40 = vpop.xlane.xlu0 %3279 }
 0xe9b   : > { %v3261_v38 = vmul.f32 0.00390625, %v3257_v57  ;;  %v3274_v42 = vmul.f32 %v3266_v58, %v3266_v58  ;;  %v3275_v49 = vmul.f32 %v3267_v51, %v3267_v51  ;;  %v3290_v3 = vmul.f32 0.00390625, %v3280_v40 }
 0xe9d   : > { %v3268_v4 = vsub.f32 %v3242_v9, %v3261_v38  ;;  %v3269_v59 = vsub.f32 %v3243_v1, %v3261_v38  ;;  %v3284_v63 = vadd.f32 %v3275_v49, %v3274_v42  ;;  %v3294_v29 = vadd.f32 1e-05, %v3290_v3 }
 0xe9e   : > { %v3283_v6 = vpop.xlane.xlu1 %3282 }
 0xe9f   : > { %v3291_v17 = vmul.f32 0.00390625, %v3283_v6  ;;  %3285 = vadd.xlane.f32.xlu0 %v3284_v63  ;;  %v3276_v7 = vmul.f32 %v3268_v4, %v3268_v4  ;;  %v3277_v13 = vmul.f32 %v3269_v59, %v3269_v59  ;;  %4366 = vrsqrt.f32 %v3294_v29 }
 0xea1   : > { %v3295_v18 = vadd.f32 1e-05, %v3291_v17  ;;  %v3287_v14 = vadd.f32 %v3277_v13, %v3276_v7 }
 0xea3   : > { %4368 = vrsqrt.f32 %v3295_v18  ;;  %3288 = vadd.xlane.f32.xlu1 %v3287_v14 }
 0xeac   : > { %v4367_v5 = vpop.eup %4366 }
 0xead   : > { %v3302_v11 = vmul.f32 %v4367_v5, %v3262_v32  ;;  %v3303_v28 = vmul.f32 %v4367_v5, %v3263_v34 }
 0xeaf   : > { %v3321_v16 = vmul.f32 %v3314_v21, %v3302_v11  ;;  %v3322_v25 = vmul.f32 %v3318_v23, %v3303_v28 }
 0xeb0   : > { %v4369_v31 = vpop.eup %4368 }
 0xeb1   : > { %v3304_v37 = vmul.f32 %v4369_v31, %v3264_v54  ;;  %v3305_v35 = vmul.f32 %v4369_v31, %v3265_v10  ;;  %v3340_v41 = vadd.f32 %v3333_v30, %v3321_v16  ;;  %v3341_v45 = vadd.f32 %v3337_v27, %v3322_v25 }
 0xeb3   : > { %v3323_v47 = vmul.f32 %v3314_v21, %v3304_v37  ;;  %v3324_v33 = vmul.f32 %v3318_v23, %v3305_v35  ;;  %3348 = vst [vmem:[%s5252_s23] sm:$0xff] %v3340_v41  ;;  %3349 = vst [vmem:[%s5252_s23 + $0x8] sm:$0xff] %v3341_v45 }
 0xeb5   : > { %v3342_v20 = vadd.f32 %v3333_v30, %v3323_v47  ;;  %v3343_v52 = vadd.f32 %v3337_v27, %v3324_v33 }
 0xeb7   : > { %3350 = vst [vmem:[%s5252_s23 + $0x10] sm:$0xff] %v3342_v20  ;;  %3351 = vst [vmem:[%s5252_s23 + $0x18] sm:$0xff] %v3343_v52 }
 0xf28   : > { %v3286_v24 = vpop.xlane.xlu0 %3285 }
 0xf29   : > { %v3292_v50 = vmul.f32 0.00390625, %v3286_v24 }
 0xf2b   : > { %v3296_v43 = vadd.f32 1e-05, %v3292_v50 }
 0xf2c   : > { %v3289_v48 = vpop.xlane.xlu1 %3288 }
 0xf2d   : > { %4370 = vrsqrt.f32 %v3296_v43  ;;  %v3293_v44 = vmul.f32 0.00390625, %v3289_v48 }
 0xf2f   : > { %v3297_v53 = vadd.f32 1e-05, %v3293_v44 }
 0xf31   : > { %4372 = vrsqrt.f32 %v3297_v53 }
 0xf3a   : > { %v4371_v46 = vpop.eup %4370 }
 0xf3b   : > { %v3306_v39 = vmul.f32 %v4371_v46, %v3266_v58  ;;  %v3307_v26 = vmul.f32 %v4371_v46, %v3267_v51 }
 0xf3d   : > { %v3325_v32 = vmul.f32 %v3314_v21, %v3306_v39  ;;  %v3326_v34 = vmul.f32 %v3318_v23, %v3307_v26 }
 0xf3e   : > { %v4373_v56 = vpop.eup %4372 }
 0xf3f   : > { %v3344_v9 = vadd.f32 %v3333_v30, %v3325_v32  ;;  %v3345_v1 = vadd.f32 %v3337_v27, %v3326_v34  ;;  %v3308_v8 = vmul.f32 %v4373_v56, %v3268_v4  ;;  %v3309_v12 = vmul.f32 %v4373_v56, %v3269_v59 }
 0xf41   : > { %3352 = vst [vmem:[%s5252_s23 + $0x20] sm:$0xff] %v3344_v9  ;;  %3353 = vst [vmem:[%s5252_s23 + $0x28] sm:$0xff] %v3345_v1  ;;  %v3327_v0 = vmul.f32 %v3314_v21, %v3308_v8  ;;  %v3328_v54 = vmul.f32 %v3318_v23, %v3309_v12 }
 0xf43   : > { %v3346_v10 = vadd.f32 %v3333_v30, %v3327_v0  ;;  %v3347_v62 = vadd.f32 %v3337_v27, %v3328_v54 }
 0xf45   : > { %3354 = vst [vmem:[%s5252_s23 + $0x30] sm:$0xff] %v3346_v10  ;;  %3355 = vst [vmem:[%s5252_s23 + $0x38] sm:$0xff] %v3347_v62 }
 0xf46   : > { %4526 = shalt.err (!%p4523_p2)
}
 0xf47   : > { %s4527_s25 = scalar_lea.hbm %s5265_s28, 1024  ;;  %s4531_s24 = scalar_lea.hbm %s5326_s14, 2048 }
 0xf48   : > { %p4528_p4 = scmp.ne.s32.totalorder %s5265_s28, %s4527_s25  ;;  %p4532_p11 = scmp.lt.s32.totalorder %s5265_s28, %s5326_s14 }
 0xf49   : > { %p4533_p3 = scmp.lt.s32.totalorder %s4531_s24, %s4527_s25 }
 0xf4a   : > { %p4529_p8 = pnand %p4528_p4, %p5363_p9 }
 0xf4b   : > { %p4534_p12 = por %p4533_p3, %p4532_p11 }
 0xf4c   : > { %p4530_p0 = pneg %p4529_p8 }
 0xf4e   : > { %p4535_p7 = pnand %p4534_p12, %p4530_p0 }
 0xf50   : > { %4538 = shalt.err (!%p4535_p7)
}
 0xf51   : > { %s4601_s10 = smov 256   ;;  %s4602_s20 = smov 16  }
 0xf52   : > { %3863 = dma.vmem_to_hbm [thread:$0]  (%p5363_p9), %s5267_s2, 1024, %s5265_s28, %s3357_s17, %s4601_s10, %s4601_s10, %s4602_s20  }
 0xf53 PF: > { %s5364_s8 = sld [smem:[#allocation17_spill]]  ;;  %p5367_p5 = scmp.ge.s32.totalorder %s4585_s16, 2 }
 0xf54   : > { %s5365_s4 = sld [smem:[#allocation19_spill]] }
 0xf59   : > { %s3386_s19 = sand.u32 1, %s5364_s8  }
 0xf5a   : > { %p5366_p13 = scmp.ne.s32.totalorder %s5365_s4, 0  ;;  %s3387_s21 = scalar_lea.sflag [#allocation5], %s3386_s19 }
 0xf5c   : > { %p3883_p10 = pnand %p5367_p5, %p5366_p13 }
 0xf5e   : > { %p3884_p1 = pneg %p3883_p10 }
 0xf60   : > { %4568 = dma.done.wait (%p3884_p1), %s3387_s21, 1024  }
 0xf61   : > { %4570 = vsyncadd (%p3884_p1), %s3387_s21, 4294966272  ;;  %s5368_s25 = sld [smem:[#allocation18_spill]]  ;;  %p29_p6 = scmp.ge.s32.totalorder %s4769_s27, 4  }
 0xf62   : > { %s5369_s15 = sld [smem:[#allocation20_spill]]  ;;  %s5370_s29 = smov %s4577_s30 }
 0xf63   : > { %s5372_s16 = smov %s4769_s27  ;;  %31 = sbr.rel (!%p29_p6) target bundleno = 12 (0xc), region = 141 }
 0xf67   : > { %s5371_s30 = smov %s5368_s25 }
 0xf68   :  { %3392 = vsyncpa [#allocation4], 1 }
 0xf69   :  { %3394 = vsyncpa [#allocation4 + $0x1], 1 }
 0xf6a   :  { %3395 = vsyncpa [#allocation7], 1 }
 0xf6b   :  { %3396 = vsyncpa [#allocation10], 1 }
 0xf6c   :  { %3397 = vsyncpa [#allocation5], 1 }
 0xf6d   :  { %3399 = vsyncpa [#allocation5 + $0x1], 1 }

</bundles_post_ra>
